<compile_context>
chip_gen: v7x
topology: tpu7x:2x2x1
jax: 0.10.0
libtpu: 0.0.40
codegen_flags: <defaults>
</compile_context>

<pallas_src>
import functools

import jax
import jax.numpy as jnp
from jax.experimental import pallas as pl
from jax.experimental.pallas import tpu as pltpu


_TM_MAX = 512          # conv M-tile rows (multiple of 16 for bf16 packing)
_EW_TILE_MAX = 2048    # elementwise (BN apply) tile rows
_LRELU_SLOPE = 0.2
_BN_EPS = 1e-5


def _round_up(x, m):
    return ((x + m - 1) // m) * m


@functools.lru_cache(maxsize=1)
def _vmem_limit():
    # Generation-aware scoped-VMEM budget: ~half of physical per TensorCore,
    # capped at 64 MiB (v5e/v6e: 128 MiB physical, v7x: 64 MiB per TC).
    # Working set here is <~13 MiB (2x A tiles + resident W + 2x out tiles).
    try:
        cap = int(pltpu.get_tpu_info().vmem_capacity_bytes)
        return max(32 * 1024 * 1024, min(cap // 2, 64 * 1024 * 1024))
    except Exception:
        return 32 * 1024 * 1024


# ---------------------------------------------------------------------------
# Pallas kernels
# ---------------------------------------------------------------------------
def _conv_bias_kernel(a_ref, w_ref, b_ref, o_ref, *, leaky):
    """One M tile of the im2col matmul (full K resident); bias (+LReLU) fused."""
    y = jnp.dot(a_ref[...], w_ref[...], preferred_element_type=jnp.float32)
    y = y + b_ref[...]
    if leaky:
        y = jnp.where(y > 0, y, _LRELU_SLOPE * y)
    o_ref[...] = y.astype(o_ref.dtype)


def _conv_stats_kernel(a_ref, w_ref, o_ref, sum_ref, ssq_ref, *, tm, m_valid):
    """Conv matmul (no bias: BN cancels it) + per-tile partial BN statistics."""
    mi = pl.program_id(0)
    y = jnp.dot(a_ref[...], w_ref[...], preferred_element_type=jnp.float32)
    o_ref[...] = y.astype(o_ref.dtype)
    # Mask zero-padded M rows so they don't pollute the batch statistics.
    rows = jax.lax.broadcasted_iota(jnp.int32, y.shape, 0) + mi * tm
    ym = jnp.where(rows < m_valid, y, 0.0)
    n = y.shape[1]
    s = jnp.sum(ym, axis=0, keepdims=True)
    sq = jnp.sum(ym * ym, axis=0, keepdims=True)
    # Per-M-tile partial sums, written to this tile's own (1, 8, N) block so
    # the M grid axis stays "parallel" (no revisited output block).
    sum_ref[0, :, :] = jnp.broadcast_to(s, (8, n))
    ssq_ref[0, :, :] = jnp.broadcast_to(sq, (8, n))


def _bn_lrelu_kernel(x_ref, scale_ref, shift_ref, o_ref):
    """Fused BN apply + LeakyReLU + bf16 cast (f32 math, bf16 in/out)."""
    y = x_ref[...].astype(jnp.float32) * scale_ref[...] + shift_ref[...]
    o_ref[...] = jnp.where(y > 0, y, _LRELU_SLOPE * y).astype(o_ref.dtype)


# ---------------------------------------------------------------------------
# pallas_call wrappers
# ---------------------------------------------------------------------------
def conv_matmul_bias(a, w, b, *, leaky, tm, out_dtype):
    m_pad, k = a.shape
    n = w.shape[1]
    return pl.pallas_call(
        functools.partial(_conv_bias_kernel, leaky=leaky),
        out_shape=jax.ShapeDtypeStruct((m_pad, n), out_dtype),
        grid_spec=pltpu.PrefetchScalarGridSpec(
            num_scalar_prefetch=0,
            grid=(m_pad // tm,),
            in_specs=[pl.BlockSpec((tm, k), lambda mi: (mi, 0)),
                      pl.BlockSpec((k, n), lambda mi: (0, 0)),   # resident W
                      pl.BlockSpec((1, n), lambda mi: (0, 0))],
            out_specs=pl.BlockSpec((tm, n), lambda mi: (mi, 0))),
        compiler_params=pltpu.CompilerParams(
            dimension_semantics=("parallel",),
            vmem_limit_bytes=_vmem_limit()),
    )(a, w, b)


def conv_matmul_stats(a, w, *, tm, m_valid, out_dtype):
    m_pad, k = a.shape
    n = w.shape[1]
    n_tiles = m_pad // tm
    return pl.pallas_call(
        functools.partial(_conv_stats_kernel, tm=tm, m_valid=m_valid),
        out_shape=(jax.ShapeDtypeStruct((m_pad, n), out_dtype),
                   jax.ShapeDtypeStruct((n_tiles, 8, n), jnp.float32),
                   jax.ShapeDtypeStruct((n_tiles, 8, n), jnp.float32)),
        grid_spec=pltpu.PrefetchScalarGridSpec(
            num_scalar_prefetch=0,
            grid=(n_tiles,),
            in_specs=[pl.BlockSpec((tm, k), lambda mi: (mi, 0)),
                      pl.BlockSpec((k, n), lambda mi: (0, 0))],  # resident W
            out_specs=(pl.BlockSpec((tm, n), lambda mi: (mi, 0)),
                       pl.BlockSpec((1, 8, n), lambda mi: (mi, 0, 0)),
                       pl.BlockSpec((1, 8, n), lambda mi: (mi, 0, 0)))),
        compiler_params=pltpu.CompilerParams(
            dimension_semantics=("parallel",),
            vmem_limit_bytes=_vmem_limit()),
    )(a, w)


def bn_lrelu(x, scale, shift, *, tm):
    m_pad, c = x.shape
    return pl.pallas_call(
        _bn_lrelu_kernel,
        out_shape=jax.ShapeDtypeStruct((m_pad, c), jnp.bfloat16),
        grid_spec=pltpu.PrefetchScalarGridSpec(
            num_scalar_prefetch=0,
            grid=(m_pad // tm,),
            in_specs=[pl.BlockSpec((tm, c), lambda i: (i, 0)),
                      pl.BlockSpec((1, c), lambda i: (0, 0)),
                      pl.BlockSpec((1, c), lambda i: (0, 0))],
            out_specs=pl.BlockSpec((tm, c), lambda i: (i, 0))),
        compiler_params=pltpu.CompilerParams(
            dimension_semantics=("parallel",),
            vmem_limit_bytes=_vmem_limit()),
    )(x, scale, shift)


# ---------------------------------------------------------------------------
# Plain-JAX glue (im2col extraction, tiling choices, parameter prep)
# ---------------------------------------------------------------------------
def _pick_m_tiling(m):
    m16 = _round_up(m, 16)
    if m16 <= _TM_MAX:
        return m16, m16
    return _TM_MAX, _round_up(m, _TM_MAX)


def _pick_ew_tile(m_pad, tm):
    # Largest multiple of the conv tile that divides m_pad and is <= 2048 rows.
    n_tiles = m_pad // tm
    for cand in range(n_tiles, 0, -1):
        if n_tiles % cand == 0 and cand * tm <= _EW_TILE_MAX:
            return cand * tm
    return tm


def im2col_nhwc(x, k, stride, pad):
    # x: (N, H, W, C) bf16 -> (N*Ho*Wo, k*k*C), K ordered (kh, kw, cin).
    # TODO(synk): do the kh*kw expansion in-kernel (shifted NHWC DMA tiles) so
    # the duplicated im2col matrix is never materialized in HBM.
    x = jnp.pad(x, ((0, 0), (pad, pad), (pad, pad), (0, 0)))
    n, h, w, c = x.shape
    ho = (h - k) // stride + 1
    wo = (w - k) // stride + 1
    cols = []
    for i in range(k):
        for j in range(k):
            cols.append(x[:, i:i + stride * ho:stride, j:j + stride * wo:stride, :])
    p = jnp.stack(cols, axis=3)                      # (N, Ho, Wo, k*k, C)
    return p.reshape(n * ho * wo, k * k * c), (n, ho, wo)


def _im2col_padded(x_nhwc, stride, pad):
    a, (nb, ho, wo) = im2col_nhwc(x_nhwc, 4, stride, pad)
    m = a.shape[0]
    tm, m_pad = _pick_m_tiling(m)
    if m_pad != m:
        a = jnp.pad(a, ((0, m_pad - m), (0, 0)))
    return a, m, tm, (nb, ho, wo)


def conv_lrelu_layer(x_nhwc, wk, b, *, stride, pad, leaky, cout, out_dtype):
    a, m, tm, (nb, ho, wo) = _im2col_padded(x_nhwc, stride, pad)
    y = conv_matmul_bias(a, wk, b, leaky=leaky, tm=tm, out_dtype=out_dtype)
    # TODO(synk): lane-pad Cout=64 (layer 1) to 128 without the extra slice pass.
    return y[:m, :cout].reshape(nb, ho, wo, cout)


def conv_bn_lrelu_layer(x_nhwc, wk, gamma, beta, *, stride, pad):
    a, m, tm, (nb, ho, wo) = _im2col_padded(x_nhwc, stride, pad)
    y, psum, pssq = conv_matmul_stats(a, wk, tm=tm, m_valid=m,
                                      out_dtype=jnp.bfloat16)
    cout = y.shape[1]
    ch_sum = jnp.sum(psum[:, 0, :], axis=0)
    ch_ssq = jnp.sum(pssq[:, 0, :], axis=0)
    mean = ch_sum / m
    # Training-mode (biased) variance; clamp f32 cancellation before rsqrt.
    var = jnp.maximum(ch_ssq / m - mean * mean, 0.0)
    inv = jax.lax.rsqrt(var + _BN_EPS)
    scale = (gamma * inv).reshape(1, cout).astype(jnp.float32)
    shift = (beta - mean * gamma * inv).reshape(1, cout).astype(jnp.float32)
    z = bn_lrelu(y, scale, shift, tm=_pick_ew_tile(y.shape[0], tm))
    return z[:m].reshape(nb, ho, wo, cout)


def patchgan_forward(x_nchw, kp):
    cin_pad = kp["w1"].shape[0] // 16                  # K1 = 4*4*cin_pad
    x = jnp.transpose(x_nchw, (0, 2, 3, 1)).astype(jnp.bfloat16)  # NCHW -> NHWC
    if cin_pad > x.shape[-1]:                          # lane-dense layer-1 K
        x = jnp.pad(x, ((0, 0), (0, 0), (0, 0), (0, cin_pad - x.shape[-1])))
    x = conv_lrelu_layer(x, kp["w1"], kp["b1"], stride=2, pad=1, leaky=True,
                         cout=kp["w1"].shape[1], out_dtype=jnp.bfloat16)
    x = conv_bn_lrelu_layer(x, kp["w2"], kp["g2"], kp["be2"], stride=2, pad=1)
    x = conv_bn_lrelu_layer(x, kp["w3"], kp["g3"], kp["be3"], stride=2, pad=1)
    x = conv_lrelu_layer(x, kp["w4"], kp["b4"], stride=1, pad=1, leaky=False,
                         cout=1, out_dtype=jnp.float32)  # Cout padded to 128
    return jnp.transpose(x, (0, 3, 1, 2)).astype(jnp.float32)


def _prep_conv(w_oihw, b=None, *, cin_pad=None, cout_pad=None):
    cout, cin, kh, kw = w_oihw.shape
    if cin_pad is not None and cin_pad > cin:
        w_oihw = jnp.pad(w_oihw, ((0, 0), (0, cin_pad - cin), (0, 0), (0, 0)))
        cin = cin_pad
    wk = jnp.transpose(w_oihw, (2, 3, 1, 0)).reshape(kh * kw * cin, cout)
    bb = None if b is None else b.reshape(1, cout).astype(jnp.float32)
    if cout_pad is not None and cout_pad > cout:
        wk = jnp.pad(wk, ((0, 0), (0, cout_pad - cout)))
        if bb is not None:
            bb = jnp.pad(bb, ((0, 0), (0, cout_pad - cout)))
    return wk.astype(jnp.bfloat16), bb


def prepare_params(p, input_channels=3):
    """One-time layout prep: (Cout,Cin,kh,kw) -> (K[, padded], Cout[, padded]) bf16."""
    cin_pad = _round_up(input_channels, 8)             # K1: 48 -> 128 lane-dense
    w1, b1 = _prep_conv(p["w1"], p["b1"], cin_pad=cin_pad)
    w2, _ = _prep_conv(p["w2"])                        # bias dropped: BN cancels it
    w3, _ = _prep_conv(p["w3"])
    w4, b4 = _prep_conv(p["w4"], p["b4"], cout_pad=128)  # lane-dense final layer
    return {"w1": w1, "b1": b1,
            "w2": w2, "g2": p["g2"], "be2": p["be2"],
            "w3": w3, "g3": p["g3"], "be3": p["be3"],
            "w4": w4, "b4": b4}


def init_params(key, input_channels=3):
    ks = jax.random.split(key, 8)

    def cw(k, cout, cin):
        return 0.02 * jax.random.normal(k, (cout, cin, 4, 4), jnp.float32)

    def cb(k, cout):
        return 0.02 * jax.random.normal(k, (cout,), jnp.float32)

    return {
        "w1": cw(ks[0], 64, input_channels), "b1": cb(ks[1], 64),
        "w2": cw(ks[2], 128, 64),            "b2": cb(ks[3], 128),
        "g2": jnp.ones((128,), jnp.float32), "be2": jnp.zeros((128,), jnp.float32),
        "w3": cw(ks[4], 256, 128),           "b3": cb(ks[5], 256),
        "g3": jnp.ones((256,), jnp.float32), "be3": jnp.zeros((256,), jnp.float32),
        "w4": cw(ks[6], 1, 256),             "b4": cb(ks[7], 1),
    }


if __name__ == "__main__":
    key = jax.random.PRNGKey(0)
    kx, kparam = jax.random.split(key)
    x = jax.random.normal(kx, (2, 3, 16, 16), jnp.float32)  # NCHW input
    params = prepare_params(init_params(kparam, input_channels=3),
                            input_channels=3)

    y = jax.jit(patchgan_forward)(x, params)
    y = jax.block_until_ready(y)

    # 16 -> 8 -> 4 -> 2 -> (k=4, s=1, p=1) -> 1
    assert y.shape == (2, 1, 1, 1), y.shape
    assert y.dtype == jnp.float32
    assert bool(jnp.all(jnp.isfinite(y)))
    print("KERNEL_OK")
</pallas_src>

<mosaic_0001>
module attributes {stable_mosaic.version = 11 : i64} {
  func.func @_conv_bias_kernel(%arg0: i32, %arg1: memref<128x128xbf16, #tpu.memory_space<vmem>>, %arg2: memref<128x64xbf16, #tpu.memory_space<vmem>>, %arg3: memref<1x64xf32, #tpu.memory_space<vmem>>, %arg4: memref<128x64xbf16, #tpu.memory_space<vmem>>) attributes {dimension_semantics = [#tpu.dimension_semantics<parallel>], iteration_bounds = array<i64: 1>, scalar_prefetch = 0 : i64, scratch_operands = 0 : i64, tpu.core_type = #tpu.core_type<tc>, window_params = [{transform_indices = @transform_0, window_bounds = array<i64: 128, 128>}, {pipeline_mode = #tpu.pipeline_mode<synchronous>, transform_indices = @transform_1, window_bounds = array<i64: 128, 64>}, {pipeline_mode = #tpu.pipeline_mode<synchronous>, transform_indices = @transform_2, window_bounds = array<i64: 1, 64>}, {transform_indices = @transform_3, window_bounds = array<i64: 128, 64>}]} {
    %c0 = arith.constant 0 : index
    %c0_0 = arith.constant 0 : index
    %0 = vector.load %arg1[%c0, %c0_0] : memref<128x128xbf16, #tpu.memory_space<vmem>>, vector<128x128xbf16>
    %c0_1 = arith.constant 0 : index
    %c0_2 = arith.constant 0 : index
    %1 = vector.load %arg2[%c0_1, %c0_2] : memref<128x64xbf16, #tpu.memory_space<vmem>>, vector<128x64xbf16>
    %cst = arith.constant dense<0.000000e+00> : vector<128x64xf32>
    %2 = tpu.matmul %0, %1, %cst {dimension_numbers = #tpu.dot_dimension_numbers<[1], [0], [0], [1], [0, 0, 1, 1], [], []>} : vector<128x128xbf16>, vector<128x64xbf16>, vector<128x64xf32> -> vector<128x64xf32>
    %c0_3 = arith.constant 0 : index
    %c0_4 = arith.constant 0 : index
    %3 = vector.load %arg3[%c0_3, %c0_4] : memref<1x64xf32, #tpu.memory_space<vmem>>, vector<1x64xf32>
    %4 = vector.broadcast %3 : vector<1x64xf32> to vector<128x64xf32>
    %5 = arith.addf %2, %4 : vector<128x64xf32>
    %cst_5 = arith.constant 0.000000e+00 : f32
    %6 = vector.broadcast %cst_5 : f32 to vector<128x64xf32>
    %7 = arith.cmpf ogt, %5, %6 : vector<128x64xf32>
    %cst_6 = arith.constant 2.000000e-01 : f32
    %8 = vector.broadcast %cst_6 : f32 to vector<128x64xf32>
    %9 = arith.mulf %8, %5 : vector<128x64xf32>
    %10 = arith.select %7, %5, %9 : vector<128x64xi1>, vector<128x64xf32>
    %11 = arith.truncf %10 : vector<128x64xf32> to vector<128x64xbf16>
    %c0_7 = arith.constant 0 : index
    %c0_8 = arith.constant 0 : index
    %12 = vector.load %arg4[%c0_7, %c0_8] : memref<128x64xbf16, #tpu.memory_space<vmem>>, vector<128x64xbf16>
    tpu.vector_store %arg4[%c0_7, %c0_8], %11 {strides = array<i32>} : memref<128x64xbf16, #tpu.memory_space<vmem>>, vector<128x64xbf16>,
    return
  }
  func.func @transform_0(%arg0: i32) -> (i32, i32) {
    %c0_i32 = arith.constant 0 : i32
    %c0_i32_0 = arith.constant 0 : i32
    return %arg0, %c0_i32 : i32, i32
  }
  func.func @transform_1(%arg0: i32) -> (i32, i32) {
    %c0_i32 = arith.constant 0 : i32
    %c0_i32_0 = arith.constant 0 : i32
    %c0_i32_1 = arith.constant 0 : i32
    return %c0_i32, %c0_i32_0 : i32, i32
  }
  func.func @transform_2(%arg0: i32) -> (i32, i32) {
    %c0_i32 = arith.constant 0 : i32
    %c0_i32_0 = arith.constant 0 : i32
    %c0_i32_1 = arith.constant 0 : i32
    return %c0_i32, %c0_i32_0 : i32, i32
  }
  func.func @transform_3(%arg0: i32) -> (i32, i32) {
    %c0_i32 = arith.constant 0 : i32
    %c0_i32_0 = arith.constant 0 : i32
    return %arg0, %c0_i32 : i32, i32
  }
}

module attributes {stable_mosaic.version = 11 : i64} {
  func.func @_conv_stats_kernel(%arg0: i32, %arg1: memref<32x1024xbf16, #tpu.memory_space<vmem>>, %arg2: memref<1024x128xbf16, #tpu.memory_space<vmem>>, %arg3: memref<32x128xbf16, #tpu.memory_space<vmem>>, %arg4: memref<1x8x128xf32, #tpu.memory_space<vmem>>, %arg5: memref<1x8x128xf32, #tpu.memory_space<vmem>>) attributes {dimension_semantics = [#tpu.dimension_semantics<parallel>], iteration_bounds = array<i64: 1>, scalar_prefetch = 0 : i64, scratch_operands = 0 : i64, tpu.core_type = #tpu.core_type<tc>, window_params = [{transform_indices = @transform_0, window_bounds = array<i64: 32, 1024>}, {pipeline_mode = #tpu.pipeline_mode<synchronous>, transform_indices = @transform_1, window_bounds = array<i64: 1024, 128>}, {transform_indices = @transform_2, window_bounds = array<i64: 32, 128>}, {transform_indices = @transform_3, window_bounds = array<i64: 1, 8, 128>}, {transform_indices = @transform_4, window_bounds = array<i64: 1, 8, 128>}]} {
    %c0 = arith.constant 0 : index
    %c0_0 = arith.constant 0 : index
    %0 = vector.load %arg1[%c0, %c0_0] : memref<32x1024xbf16, #tpu.memory_space<vmem>>, vector<32x1024xbf16>
    %c0_1 = arith.constant 0 : index
    %c0_2 = arith.constant 0 : index
    %1 = vector.load %arg2[%c0_1, %c0_2] : memref<1024x128xbf16, #tpu.memory_space<vmem>>, vector<1024x128xbf16>
    %cst = arith.constant dense<0.000000e+00> : vector<32x128xf32>
    %2 = tpu.matmul %0, %1, %cst {dimension_numbers = #tpu.dot_dimension_numbers<[1], [0], [0], [1], [0, 0, 1, 1], [], []>} : vector<32x1024xbf16>, vector<1024x128xbf16>, vector<32x128xf32> -> vector<32x128xf32>
    %3 = arith.truncf %2 : vector<32x128xf32> to vector<32x128xbf16>
    %c0_3 = arith.constant 0 : index
    %c0_4 = arith.constant 0 : index
    %4 = vector.load %arg3[%c0_3, %c0_4] : memref<32x128xbf16, #tpu.memory_space<vmem>>, vector<32x128xbf16>
    tpu.vector_store %arg3[%c0_3, %c0_4], %3 {strides = array<i32>} : memref<32x128xbf16, #tpu.memory_space<vmem>>, vector<32x128xbf16>,
    %5 = tpu.iota {dimensions = array<i32: 0>} : vector<32x128xi32>
    %c32_i32 = arith.constant 32 : i32
    %6 = arith.muli %arg0, %c32_i32 : i32
    %7 = vector.broadcast %6 : i32 to vector<32x128xi32>
    %8 = arith.addi %5, %7 : vector<32x128xi32>
    %c32_i32_5 = arith.constant 32 : i32
    %9 = vector.broadcast %c32_i32_5 : i32 to vector<32x128xi32>
    %10 = arith.cmpi slt, %8, %9 : vector<32x128xi32>
    %cst_6 = arith.constant 0.000000e+00 : f32
    %11 = vector.broadcast %cst_6 : f32 to vector<32x128xf32>
    %12 = arith.select %10, %2, %11 : vector<32x128xi1>, vector<32x128xf32>
    %cst_7 = arith.constant dense<0.000000e+00> : vector<128xf32>
    %13 = vector.multi_reduction <add>, %12, %cst_7 [0] : vector<32x128xf32> to vector<128xf32>
    %14 = vector.shape_cast %13 : vector<128xf32> to vector<1x128xf32>
    %15 = arith.mulf %12, %12 : vector<32x128xf32>
    %cst_8 = arith.constant dense<0.000000e+00> : vector<128xf32>
    %16 = vector.multi_reduction <add>, %15, %cst_8 [0] : vector<32x128xf32> to vector<128xf32>
    %17 = vector.shape_cast %16 : vector<128xf32> to vector<1x128xf32>
    %18 = vector.shape_cast %14 : vector<1x128xf32> to vector<1x128xf32>
    %19 = vector.broadcast %18 : vector<1x128xf32> to vector<8x128xf32>
    %c0_9 = arith.constant 0 : index
    %c0_10 = arith.constant 0 : index
    %c0_11 = arith.constant 0 : index
    %20 = vector.load %arg4[%c0_9, %c0_10, %c0_11] : memref<1x8x128xf32, #tpu.memory_space<vmem>>, vector<1x8x128xf32>
    %21 = vector.shape_cast %20 : vector<1x8x128xf32> to vector<8x128xf32>
    %22 = vector.shape_cast %19 : vector<8x128xf32> to vector<1x8x128xf32>
    tpu.vector_store %arg4[%c0_9, %c0_10, %c0_11], %22 {strides = array<i32>} : memref<1x8x128xf32, #tpu.memory_space<vmem>>, vector<1x8x128xf32>,
    %23 = vector.shape_cast %17 : vector<1x128xf32> to vector<1x128xf32>
    %24 = vector.broadcast %23 : vector<1x128xf32> to vector<8x128xf32>
    %c0_12 = arith.constant 0 : index
    %c0_13 = arith.constant 0 : index
    %c0_14 = arith.constant 0 : index
    %25 = vector.load %arg5[%c0_12, %c0_13, %c0_14] : memref<1x8x128xf32, #tpu.memory_space<vmem>>, vector<1x8x128xf32>
    %26 = vector.shape_cast %25 : vector<1x8x128xf32> to vector<8x128xf32>
    %27 = vector.shape_cast %24 : vector<8x128xf32> to vector<1x8x128xf32>
    tpu.vector_store %arg5[%c0_12, %c0_13, %c0_14], %27 {strides = array<i32>} : memref<1x8x128xf32, #tpu.memory_space<vmem>>, vector<1x8x128xf32>,
    return
  }
  func.func @transform_0(%arg0: i32) -> (i32, i32) {
    %c0_i32 = arith.constant 0 : i32
    %c0_i32_0 = arith.constant 0 : i32
    return %arg0, %c0_i32 : i32, i32
  }
  func.func @transform_1(%arg0: i32) -> (i32, i32) {
    %c0_i32 = arith.constant 0 : i32
    %c0_i32_0 = arith.constant 0 : i32
    %c0_i32_1 = arith.constant 0 : i32
    return %c0_i32, %c0_i32_0 : i32, i32
  }
  func.func @transform_2(%arg0: i32) -> (i32, i32) {
    %c0_i32 = arith.constant 0 : i32
    %c0_i32_0 = arith.constant 0 : i32
    return %arg0, %c0_i32 : i32, i32
  }
  func.func @transform_3(%arg0: i32) -> (i32, i32, i32) {
    %c0_i32 = arith.constant 0 : i32
    %c0_i32_0 = arith.constant 0 : i32
    %c0_i32_1 = arith.constant 0 : i32
    return %arg0, %c0_i32, %c0_i32_0 : i32, i32, i32
  }
  func.func @transform_4(%arg0: i32) -> (i32, i32, i32) {
    %c0_i32 = arith.constant 0 : i32
    %c0_i32_0 = arith.constant 0 : i32
    %c0_i32_1 = arith.constant 0 : i32
    return %arg0, %c0_i32, %c0_i32_0 : i32, i32, i32
  }
}

module attributes {stable_mosaic.version = 11 : i64} {
  func.func @_bn_lrelu_kernel(%arg0: i32, %arg1: memref<32x128xbf16, #tpu.memory_space<vmem>>, %arg2: memref<1x128xf32, #tpu.memory_space<vmem>>, %arg3: memref<1x128xf32, #tpu.memory_space<vmem>>, %arg4: memref<32x128xbf16, #tpu.memory_space<vmem>>) attributes {dimension_semantics = [#tpu.dimension_semantics<parallel>], iteration_bounds = array<i64: 1>, scalar_prefetch = 0 : i64, scratch_operands = 0 : i64, tpu.core_type = #tpu.core_type<tc>, window_params = [{transform_indices = @transform_0, window_bounds = array<i64: 32, 128>}, {pipeline_mode = #tpu.pipeline_mode<synchronous>, transform_indices = @transform_1, window_bounds = array<i64: 1, 128>}, {pipeline_mode = #tpu.pipeline_mode<synchronous>, transform_indices = @transform_2, window_bounds = array<i64: 1, 128>}, {transform_indices = @transform_3, window_bounds = array<i64: 32, 128>}]} {
    %c0 = arith.constant 0 : index
    %c0_0 = arith.constant 0 : index
    %0 = vector.load %arg1[%c0, %c0_0] : memref<32x128xbf16, #tpu.memory_space<vmem>>, vector<32x128xbf16>
    %1 = arith.extf %0 : vector<32x128xbf16> to vector<32x128xf32>
    %c0_1 = arith.constant 0 : index
    %c0_2 = arith.constant 0 : index
    %2 = vector.load %arg2[%c0_1, %c0_2] : memref<1x128xf32, #tpu.memory_space<vmem>>, vector<1x128xf32>
    %3 = vector.broadcast %2 : vector<1x128xf32> to vector<32x128xf32>
    %4 = arith.mulf %1, %3 : vector<32x128xf32>
    %c0_3 = arith.constant 0 : index
    %c0_4 = arith.constant 0 : index
    %5 = vector.load %arg3[%c0_3, %c0_4] : memref<1x128xf32, #tpu.memory_space<vmem>>, vector<1x128xf32>
    %6 = vector.broadcast %5 : vector<1x128xf32> to vector<32x128xf32>
    %7 = arith.addf %4, %6 : vector<32x128xf32>
    %cst = arith.constant 0.000000e+00 : f32
    %8 = vector.broadcast %cst : f32 to vector<32x128xf32>
    %9 = arith.cmpf ogt, %7, %8 : vector<32x128xf32>
    %cst_5 = arith.constant 2.000000e-01 : f32
    %10 = vector.broadcast %cst_5 : f32 to vector<32x128xf32>
    %11 = arith.mulf %10, %7 : vector<32x128xf32>
    %12 = arith.select %9, %7, %11 : vector<32x128xi1>, vector<32x128xf32>
    %13 = arith.truncf %12 : vector<32x128xf32> to vector<32x128xbf16>
    %c0_6 = arith.constant 0 : index
    %c0_7 = arith.constant 0 : index
    %14 = vector.load %arg4[%c0_6, %c0_7] : memref<32x128xbf16, #tpu.memory_space<vmem>>, vector<32x128xbf16>
    tpu.vector_store %arg4[%c0_6, %c0_7], %13 {strides = array<i32>} : memref<32x128xbf16, #tpu.memory_space<vmem>>, vector<32x128xbf16>,
    return
  }
  func.func @transform_0(%arg0: i32) -> (i32, i32) {
    %c0_i32 = arith.constant 0 : i32
    %c0_i32_0 = arith.constant 0 : i32
    return %arg0, %c0_i32 : i32, i32
  }
  func.func @transform_1(%arg0: i32) -> (i32, i32) {
    %c0_i32 = arith.constant 0 : i32
    %c0_i32_0 = arith.constant 0 : i32
    %c0_i32_1 = arith.constant 0 : i32
    return %c0_i32, %c0_i32_0 : i32, i32
  }
  func.func @transform_2(%arg0: i32) -> (i32, i32) {
    %c0_i32 = arith.constant 0 : i32
    %c0_i32_0 = arith.constant 0 : i32
    %c0_i32_1 = arith.constant 0 : i32
    return %c0_i32, %c0_i32_0 : i32, i32
  }
  func.func @transform_3(%arg0: i32) -> (i32, i32) {
    %c0_i32 = arith.constant 0 : i32
    %c0_i32_0 = arith.constant 0 : i32
    return %arg0, %c0_i32 : i32, i32
  }
}

module attributes {stable_mosaic.version = 11 : i64} {
  func.func @_bn_lrelu_kernel(%arg0: i32, %arg1: memref<16x256xbf16, #tpu.memory_space<vmem>>, %arg2: memref<1x256xf32, #tpu.memory_space<vmem>>, %arg3: memref<1x256xf32, #tpu.memory_space<vmem>>, %arg4: memref<16x256xbf16, #tpu.memory_space<vmem>>) attributes {dimension_semantics = [#tpu.dimension_semantics<parallel>], iteration_bounds = array<i64: 1>, scalar_prefetch = 0 : i64, scratch_operands = 0 : i64, tpu.core_type = #tpu.core_type<tc>, window_params = [{transform_indices = @transform_0, window_bounds = array<i64: 16, 256>}, {pipeline_mode = #tpu.pipeline_mode<synchronous>, transform_indices = @transform_1, window_bounds = array<i64: 1, 256>}, {pipeline_mode = #tpu.pipeline_mode<synchronous>, transform_indices = @transform_2, window_bounds = array<i64: 1, 256>}, {transform_indices = @transform_3, window_bounds = array<i64: 16, 256>}]} {
    %c0 = arith.constant 0 : index
    %c0_0 = arith.constant 0 : index
    %0 = vector.load %arg1[%c0, %c0_0] : memref<16x256xbf16, #tpu.memory_space<vmem>>, vector<16x256xbf16>
    %1 = arith.extf %0 : vector<16x256xbf16> to vector<16x256xf32>
    %c0_1 = arith.constant 0 : index
    %c0_2 = arith.constant 0 : index
    %2 = vector.load %arg2[%c0_1, %c0_2] : memref<1x256xf32, #tpu.memory_space<vmem>>, vector<1x256xf32>
    %3 = vector.broadcast %2 : vector<1x256xf32> to vector<16x256xf32>
    %4 = arith.mulf %1, %3 : vector<16x256xf32>
    %c0_3 = arith.constant 0 : index
    %c0_4 = arith.constant 0 : index
    %5 = vector.load %arg3[%c0_3, %c0_4] : memref<1x256xf32, #tpu.memory_space<vmem>>, vector<1x256xf32>
    %6 = vector.broadcast %5 : vector<1x256xf32> to vector<16x256xf32>
    %7 = arith.addf %4, %6 : vector<16x256xf32>
    %cst = arith.constant 0.000000e+00 : f32
    %8 = vector.broadcast %cst : f32 to vector<16x256xf32>
    %9 = arith.cmpf ogt, %7, %8 : vector<16x256xf32>
    %cst_5 = arith.constant 2.000000e-01 : f32
    %10 = vector.broadcast %cst_5 : f32 to vector<16x256xf32>
    %11 = arith.mulf %10, %7 : vector<16x256xf32>
    %12 = arith.select %9, %7, %11 : vector<16x256xi1>, vector<16x256xf32>
    %13 = arith.truncf %12 : vector<16x256xf32> to vector<16x256xbf16>
    %c0_6 = arith.constant 0 : index
    %c0_7 = arith.constant 0 : index
    %14 = vector.load %arg4[%c0_6, %c0_7] : memref<16x256xbf16, #tpu.memory_space<vmem>>, vector<16x256xbf16>
    tpu.vector_store %arg4[%c0_6, %c0_7], %13 {strides = array<i32>} : memref<16x256xbf16, #tpu.memory_space<vmem>>, vector<16x256xbf16>,
    return
  }
  func.func @transform_0(%arg0: i32) -> (i32, i32) {
    %c0_i32 = arith.constant 0 : i32
    %c0_i32_0 = arith.constant 0 : i32
    return %arg0, %c0_i32 : i32, i32
  }
  func.func @transform_1(%arg0: i32) -> (i32, i32) {
    %c0_i32 = arith.constant 0 : i32
    %c0_i32_0 = arith.constant 0 : i32
    %c0_i32_1 = arith.constant 0 : i32
    return %c0_i32, %c0_i32_0 : i32, i32
  }
  func.func @transform_2(%arg0: i32) -> (i32, i32) {
    %c0_i32 = arith.constant 0 : i32
    %c0_i32_0 = arith.constant 0 : i32
    %c0_i32_1 = arith.constant 0 : i32
    return %c0_i32, %c0_i32_0 : i32, i32
  }
  func.func @transform_3(%arg0: i32) -> (i32, i32) {
    %c0_i32 = arith.constant 0 : i32
    %c0_i32_0 = arith.constant 0 : i32
    return %arg0, %c0_i32 : i32, i32
  }
}

module attributes {stable_mosaic.version = 11 : i64} {
  func.func @_conv_stats_kernel(%arg0: i32, %arg1: memref<16x2048xbf16, #tpu.memory_space<vmem>>, %arg2: memref<2048x256xbf16, #tpu.memory_space<vmem>>, %arg3: memref<16x256xbf16, #tpu.memory_space<vmem>>, %arg4: memref<1x8x256xf32, #tpu.memory_space<vmem>>, %arg5: memref<1x8x256xf32, #tpu.memory_space<vmem>>) attributes {dimension_semantics = [#tpu.dimension_semantics<parallel>], iteration_bounds = array<i64: 1>, scalar_prefetch = 0 : i64, scratch_operands = 0 : i64, tpu.core_type = #tpu.core_type<tc>, window_params = [{transform_indices = @transform_0, window_bounds = array<i64: 16, 2048>}, {pipeline_mode = #tpu.pipeline_mode<synchronous>, transform_indices = @transform_1, window_bounds = array<i64: 2048, 256>}, {transform_indices = @transform_2, window_bounds = array<i64: 16, 256>}, {transform_indices = @transform_3, window_bounds = array<i64: 1, 8, 256>}, {transform_indices = @transform_4, window_bounds = array<i64: 1, 8, 256>}]} {
    %c0 = arith.constant 0 : index
    %c0_0 = arith.constant 0 : index
    %0 = vector.load %arg1[%c0, %c0_0] : memref<16x2048xbf16, #tpu.memory_space<vmem>>, vector<16x2048xbf16>
    %c0_1 = arith.constant 0 : index
    %c0_2 = arith.constant 0 : index
    %1 = vector.load %arg2[%c0_1, %c0_2] : memref<2048x256xbf16, #tpu.memory_space<vmem>>, vector<2048x256xbf16>
    %cst = arith.constant dense<0.000000e+00> : vector<16x256xf32>
    %2 = tpu.matmul %0, %1, %cst {dimension_numbers = #tpu.dot_dimension_numbers<[1], [0], [0], [1], [0, 0, 1, 1], [], []>} : vector<16x2048xbf16>, vector<2048x256xbf16>, vector<16x256xf32> -> vector<16x256xf32>
    %3 = arith.truncf %2 : vector<16x256xf32> to vector<16x256xbf16>
    %c0_3 = arith.constant 0 : index
    %c0_4 = arith.constant 0 : index
    %4 = vector.load %arg3[%c0_3, %c0_4] : memref<16x256xbf16, #tpu.memory_space<vmem>>, vector<16x256xbf16>
    tpu.vector_store %arg3[%c0_3, %c0_4], %3 {strides = array<i32>} : memref<16x256xbf16, #tpu.memory_space<vmem>>, vector<16x256xbf16>,
    %5 = tpu.iota {dimensions = array<i32: 0>} : vector<16x256xi32>
    %c16_i32 = arith.constant 16 : i32
    %6 = arith.muli %arg0, %c16_i32 : i32
    %7 = vector.broadcast %6 : i32 to vector<16x256xi32>
    %8 = arith.addi %5, %7 : vector<16x256xi32>
    %c8_i32 = arith.constant 8 : i32
    %9 = vector.broadcast %c8_i32 : i32 to vector<16x256xi32>
    %10 = arith.cmpi slt, %8, %9 : vector<16x256xi32>
    %cst_5 = arith.constant 0.000000e+00 : f32
    %11 = vector.broadcast %cst_5 : f32 to vector<16x256xf32>
    %12 = arith.select %10, %2, %11 : vector<16x256xi1>, vector<16x256xf32>
    %cst_6 = arith.constant dense<0.000000e+00> : vector<256xf32>
    %13 = vector.multi_reduction <add>, %12, %cst_6 [0] : vector<16x256xf32> to vector<256xf32>
    %14 = vector.shape_cast %13 : vector<256xf32> to vector<1x256xf32>
    %15 = arith.mulf %12, %12 : vector<16x256xf32>
    %cst_7 = arith.constant dense<0.000000e+00> : vector<256xf32>
    %16 = vector.multi_reduction <add>, %15, %cst_7 [0] : vector<16x256xf32> to vector<256xf32>
    %17 = vector.shape_cast %16 : vector<256xf32> to vector<1x256xf32>
    %18 = vector.shape_cast %14 : vector<1x256xf32> to vector<1x256xf32>
    %19 = vector.broadcast %18 : vector<1x256xf32> to vector<8x256xf32>
    %c0_8 = arith.constant 0 : index
    %c0_9 = arith.constant 0 : index
    %c0_10 = arith.constant 0 : index
    %20 = vector.load %arg4[%c0_8, %c0_9, %c0_10] : memref<1x8x256xf32, #tpu.memory_space<vmem>>, vector<1x8x256xf32>
    %21 = vector.shape_cast %20 : vector<1x8x256xf32> to vector<8x256xf32>
    %22 = vector.shape_cast %19 : vector<8x256xf32> to vector<1x8x256xf32>
    tpu.vector_store %arg4[%c0_8, %c0_9, %c0_10], %22 {strides = array<i32>} : memref<1x8x256xf32, #tpu.memory_space<vmem>>, vector<1x8x256xf32>,
    %23 = vector.shape_cast %17 : vector<1x256xf32> to vector<1x256xf32>
    %24 = vector.broadcast %23 : vector<1x256xf32> to vector<8x256xf32>
    %c0_11 = arith.constant 0 : index
    %c0_12 = arith.constant 0 : index
    %c0_13 = arith.constant 0 : index
    %25 = vector.load %arg5[%c0_11, %c0_12, %c0_13] : memref<1x8x256xf32, #tpu.memory_space<vmem>>, vector<1x8x256xf32>
    %26 = vector.shape_cast %25 : vector<1x8x256xf32> to vector<8x256xf32>
    %27 = vector.shape_cast %24 : vector<8x256xf32> to vector<1x8x256xf32>
    tpu.vector_store %arg5[%c0_11, %c0_12, %c0_13], %27 {strides = array<i32>} : memref<1x8x256xf32, #tpu.memory_space<vmem>>, vector<1x8x256xf32>,
    return
  }
  func.func @transform_0(%arg0: i32) -> (i32, i32) {
    %c0_i32 = arith.constant 0 : i32
    %c0_i32_0 = arith.constant 0 : i32
    return %arg0, %c0_i32 : i32, i32
  }
  func.func @transform_1(%arg0: i32) -> (i32, i32) {
    %c0_i32 = arith.constant 0 : i32
    %c0_i32_0 = arith.constant 0 : i32
    %c0_i32_1 = arith.constant 0 : i32
    return %c0_i32, %c0_i32_0 : i32, i32
  }
  func.func @transform_2(%arg0: i32) -> (i32, i32) {
    %c0_i32 = arith.constant 0 : i32
    %c0_i32_0 = arith.constant 0 : i32
    return %arg0, %c0_i32 : i32, i32
  }
  func.func @transform_3(%arg0: i32) -> (i32, i32, i32) {
    %c0_i32 = arith.constant 0 : i32
    %c0_i32_0 = arith.constant 0 : i32
    %c0_i32_1 = arith.constant 0 : i32
    return %arg0, %c0_i32, %c0_i32_0 : i32, i32, i32
  }
  func.func @transform_4(%arg0: i32) -> (i32, i32, i32) {
    %c0_i32 = arith.constant 0 : i32
    %c0_i32_0 = arith.constant 0 : i32
    %c0_i32_1 = arith.constant 0 : i32
    return %arg0, %c0_i32, %c0_i32_0 : i32, i32, i32
  }
}

module attributes {stable_mosaic.version = 11 : i64} {
  func.func @_conv_bias_kernel(%arg0: i32, %arg1: memref<16x4096xbf16, #tpu.memory_space<vmem>>, %arg2: memref<4096x128xbf16, #tpu.memory_space<vmem>>, %arg3: memref<1x128xf32, #tpu.memory_space<vmem>>, %arg4: memref<16x128xf32, #tpu.memory_space<vmem>>) attributes {dimension_semantics = [#tpu.dimension_semantics<parallel>], iteration_bounds = array<i64: 1>, scalar_prefetch = 0 : i64, scratch_operands = 0 : i64, tpu.core_type = #tpu.core_type<tc>, window_params = [{transform_indices = @transform_0, window_bounds = array<i64: 16, 4096>}, {pipeline_mode = #tpu.pipeline_mode<synchronous>, transform_indices = @transform_1, window_bounds = array<i64: 4096, 128>}, {pipeline_mode = #tpu.pipeline_mode<synchronous>, transform_indices = @transform_2, window_bounds = array<i64: 1, 128>}, {transform_indices = @transform_3, window_bounds = array<i64: 16, 128>}]} {
    %c0 = arith.constant 0 : index
    %c0_0 = arith.constant 0 : index
    %0 = vector.load %arg1[%c0, %c0_0] : memref<16x4096xbf16, #tpu.memory_space<vmem>>, vector<16x4096xbf16>
    %c0_1 = arith.constant 0 : index
    %c0_2 = arith.constant 0 : index
    %1 = vector.load %arg2[%c0_1, %c0_2] : memref<4096x128xbf16, #tpu.memory_space<vmem>>, vector<4096x128xbf16>
    %cst = arith.constant dense<0.000000e+00> : vector<16x128xf32>
    %2 = tpu.matmul %0, %1, %cst {dimension_numbers = #tpu.dot_dimension_numbers<[1], [0], [0], [1], [0, 0, 1, 1], [], []>} : vector<16x4096xbf16>, vector<4096x128xbf16>, vector<16x128xf32> -> vector<16x128xf32>
    %c0_3 = arith.constant 0 : index
    %c0_4 = arith.constant 0 : index
    %3 = vector.load %arg3[%c0_3, %c0_4] : memref<1x128xf32, #tpu.memory_space<vmem>>, vector<1x128xf32>
    %4 = vector.broadcast %3 : vector<1x128xf32> to vector<16x128xf32>
    %5 = arith.addf %2, %4 : vector<16x128xf32>
    %c0_5 = arith.constant 0 : index
    %c0_6 = arith.constant 0 : index
    %6 = vector.load %arg4[%c0_5, %c0_6] : memref<16x128xf32, #tpu.memory_space<vmem>>, vector<16x128xf32>
    tpu.vector_store %arg4[%c0_5, %c0_6], %5 {strides = array<i32>} : memref<16x128xf32, #tpu.memory_space<vmem>>, vector<16x128xf32>,
    return
  }
  func.func @transform_0(%arg0: i32) -> (i32, i32) {
    %c0_i32 = arith.constant 0 : i32
    %c0_i32_0 = arith.constant 0 : i32
    return %arg0, %c0_i32 : i32, i32
  }
  func.func @transform_1(%arg0: i32) -> (i32, i32) {
    %c0_i32 = arith.constant 0 : i32
    %c0_i32_0 = arith.constant 0 : i32
    %c0_i32_1 = arith.constant 0 : i32
    return %c0_i32, %c0_i32_0 : i32, i32
  }
  func.func @transform_2(%arg0: i32) -> (i32, i32) {
    %c0_i32 = arith.constant 0 : i32
    %c0_i32_0 = arith.constant 0 : i32
    %c0_i32_1 = arith.constant 0 : i32
    return %c0_i32, %c0_i32_0 : i32, i32
  }
  func.func @transform_3(%arg0: i32) -> (i32, i32) {
    %c0_i32 = arith.constant 0 : i32
    %c0_i32_0 = arith.constant 0 : i32
    return %arg0, %c0_i32 : i32, i32
  }
}

</mosaic_0001>

<bundles_post_ra>
// kernel: patchgan_forward.6
= control target key start
LH: loop header
LB: loop body
LE: loop exit
PB: predicated region body
PF: predicated region fallthrough
CT: control target
= control target key end

     0   :  { %vm359_vm0 = vcmask 519168   ;;  %s662_s1 = inlined_call_operand.vmem [shape: bf16[128,64], index: 1, kind: input, shape index: {}]   ;;  %s663_s0 = inlined_call_operand.vmem [shape: bf16[128,128], index: 0, kind: input, shape index: {}]   ;;  %s664_s2 = inlined_call_operand.vmem [shape: f32[1,64], index: 2, kind: input, shape index: {}]   ;;  %s665_s3 = inlined_call_operand.vmem [shape: bf16[128,64], index: 3, kind: output, shape index: {}]  }
   0x1   :  { %v493_v0 = vld [vmem:[%s662_s1] sm:$0xff]   ;;  %v494_v1 = vld [vmem:[%s662_s1 + $0x8] sm:$0xff]   ;;  %v495_v2 = vld [vmem:[%s662_s1 + $0x10] sm:$0xff]  }
   0x2   :  { %445 = vmatprep.subr.bf16.mxu0 %v493_v0  ;;  %477 = vmatprep.subr.bf16.mxu1 %v493_v0  ;;  %v496_v3 = vld [vmem:[%s662_s1 + $0x18] sm:$0xff]   ;;  %v501_v4 = vld [vmem:[%s663_s0] sm:$0xff]   ;;  %v498_v7 = vld [vmem:[%s662_s1 + $0x28] sm:$0xff]  }
   0x3   :  { %446 = vmatpush3.bf16.msra.mxu0 %v493_v0  ;;  %485 = vmatpush3.bf16.msra.mxu1 %v493_v0  ;;  %v502_v5 = vld [vmem:[%s663_s0 + $0x20] sm:$0xff]   ;;  %v499_v8 = vld [vmem:[%s662_s1 + $0x30] sm:$0xff]   ;;  %v500_v9 = vld [vmem:[%s662_s1 + $0x38] sm:$0xff]  }
   0x4   :  { %447 = vmatprep.subr.bf16.mxu0 %v494_v1  ;;  %478 = vmatprep.subr.bf16.mxu1 %v494_v1  ;;  %v497_v6 = vld [vmem:[%s662_s1 + $0x20] sm:$0xff]   ;;  %v503_v10 = vld [vmem:[%s663_s0 + $0x8] sm:$0xff]   ;;  %v505_v12 = vld [vmem:[%s663_s0 + $0x10] sm:$0xff]  }
   0x5   :  { %461 = vmatprep.mubr.bf16.mxu0 %v501_v4  ;;  %469 = vmatprep.mubr.bf16.mxu1 %v502_v5  ;;  %v504_v11 = vld [vmem:[%s663_s0 + $0x28] sm:$0xff]   ;;  %v506_v13 = vld [vmem:[%s663_s0 + $0x30] sm:$0xff]   ;;  %v507_v14 = vld [vmem:[%s663_s0 + $0x18] sm:$0xff]  }
   0x6   :  { %v508_v15 = vld [vmem:[%s663_s0 + $0x38] sm:$0xff]   ;;  %v580_v16 = vld [vmem:[%s664_s2] ss:$0 sm:$0xff] }
   0x7   :  { %448 = vmatpush3.bf16.msra.mxu0 %v494_v1  ;;  %486 = vmatpush3.bf16.msra.mxu1 %v494_v1 }
   0x8   :  { %449 = vmatprep.subr.bf16.mxu0 %v495_v2  ;;  %479 = vmatprep.subr.bf16.mxu1 %v495_v2 }
   0xb   :  { %450 = vmatpush3.bf16.msra.mxu0 %v495_v2  ;;  %487 = vmatpush3.bf16.msra.mxu1 %v495_v2 }
   0xc   :  { %451 = vmatprep.subr.bf16.mxu0 %v496_v3  ;;  %480 = vmatprep.subr.bf16.mxu1 %v496_v3 }
   0xf   :  { %452 = vmatpush3.bf16.msra.mxu0 %v496_v3  ;;  %488 = vmatpush3.bf16.msra.mxu1 %v496_v3 }
  0x10   :  { %453 = vmatprep.subr.bf16.mxu0 %v497_v6  ;;  %481 = vmatprep.subr.bf16.mxu1 %v497_v6 }
  0x13   :  { %454 = vmatpush3.bf16.msra.mxu0 %v497_v6  ;;  %489 = vmatpush3.bf16.msra.mxu1 %v497_v6 }
  0x14   :  { %455 = vmatprep.subr.bf16.mxu0 %v498_v7  ;;  %482 = vmatprep.subr.bf16.mxu1 %v498_v7 }
  0x17   :  { %456 = vmatpush3.bf16.msra.mxu0 %v498_v7  ;;  %490 = vmatpush3.bf16.msra.mxu1 %v498_v7 }
  0x18   :  { %457 = vmatprep.subr.bf16.mxu0 %v499_v8  ;;  %483 = vmatprep.subr.bf16.mxu1 %v499_v8 }
  0x1b   :  { %458 = vmatpush3.bf16.msra.mxu0 %v499_v8  ;;  %491 = vmatpush3.bf16.msra.mxu1 %v499_v8 }
  0x1c   :  { %459 = vmatprep.subr.bf16.mxu0 %v500_v9  ;;  %484 = vmatprep.subr.bf16.mxu1 %v500_v9 }
  0x1f   :  { %460 = vmatpush3.bf16.msra.mxu0 %v500_v9  ;;  %492 = vmatpush3.bf16.msra.mxu1 %v500_v9 }
  0x22   :  { %462 = vmatmul.mubr.bf16.vlgmr.msra.gmra.mrb[0].mxu0 %v503_v10  ;;  %470 = vmatmul.mubr.bf16.vlgmr.msra.gmra.mrb[0].mxu1 %v504_v11 }
  0x23   :  { %465 = vmatprep.mubr.bf16.mxu0 %v505_v12  ;;  %473 = vmatprep.mubr.bf16.mxu1 %v506_v13 }
  0x2a   :  { %466 = vmatmul.mubr.bf16.gmra.mrb[4].mxu0 %v507_v14  ;;  %474 = vmatmul.mubr.bf16.gmra.mrb[4].mxu1 %v508_v15 }
  0xf5   :  { %v463_v17 = vpop.f32.mrb[0].mxu0  ;;  %v471_v18 = vpop.f32.mrb[0].mxu1 }
  0xf6   :  { %v193_v19 = vadd.f32 %v463_v17, %v580_v16  ;;  %v225_v20 = vadd.f32 %v471_v18, %v580_v16  ;;  %v184_v21 = vpop.f32.mrb[1].mxu0  ;;  %v216_v22 = vpop.f32.mrb[1].mxu1 }
  0xf7   :  { %v185_v23 = vadd.f32 %v580_v16, %v184_v21  ;;  %v217_v24 = vadd.f32 %v580_v16, %v216_v22  ;;  %v464_v25 = vpop.f32.mrb[2].mxu0  ;;  %v472_v26 = vpop.f32.mrb[2].mxu1 }
  0xf8   :  { %vm249_vm1 = vcmp.gt.f32.partialorder %v193_v19, 0.0  ;;  %v265_v27 = vmul.f32 0.2, %v193_v19  ;;  %vm257_vm2 = vcmp.gt.f32.partialorder %v225_v20, 0.0  ;;  %v273_v28 = vmul.f32 0.2, %v225_v20 }
  0xf9   :  { %vm247_vm3 = vcmp.gt.f32.partialorder %v185_v23, 0.0  ;;  %v263_v29 = vmul.f32 0.2, %v185_v23  ;;  %vm255_vm4 = vcmp.gt.f32.partialorder %v217_v24, 0.0  ;;  %v271_v30 = vmul.f32 0.2, %v217_v24 }
  0xfa   :  { %v281_v31 = vsel %vm249_vm1, %v193_v19, %v265_v27  ;;  %v289_v32 = vsel %vm257_vm2, %v225_v20, %v273_v28  ;;  %v196_v33 = vadd.f32 %v464_v25, %v580_v16  ;;  %v228_v34 = vadd.f32 %v472_v26, %v580_v16  ;;  %v187_v35 = vpop.f32.mrb[3].mxu0  ;;  %v219_v36 = vpop.f32.mrb[3].mxu1 }
  0xfb   :  { %v415_v37 = vpack.c.bf16 %v281_v31, %v281_v31  ;;  %v423_v38 = vpack.c.bf16 %v289_v32, %v289_v32  ;;  %v279_v39 = vsel %vm247_vm3, %v185_v23, %v263_v29  ;;  %v287_v40 = vsel %vm255_vm4, %v217_v24, %v271_v30 }
  0xfc   :  { %v413_v41 = vpack.c.bf16 %v279_v39, %v279_v39  ;;  %v421_v42 = vpack.c.bf16 %v287_v40, %v287_v40  ;;  %vm250_vm5 = vcmp.gt.f32.partialorder %v196_v33, 0.0  ;;  %v266_v43 = vmul.f32 0.2, %v196_v33 }
  0xfd   :  { %362 = vst.msk [vmem:[%s665_s3 + $0x8] sm:$0xf] %vm359_vm0, %v415_v37  ;;  %370 = vst.msk [vmem:[%s665_s3 + $0x28] sm:$0xf] %vm359_vm0, %v423_v38  ;;  %vm258_vm6 = vcmp.gt.f32.partialorder %v228_v34, 0.0  ;;  %v188_v45 = vadd.f32 %v580_v16, %v187_v35  ;;  %v220_v46 = vadd.f32 %v580_v16, %v219_v36  ;;  %v467_v47 = vpop.f32.mrb[4].mxu0 }
  0xfe   :  { %v274_v44 = vmul.f32 0.2, %v228_v34  ;;  %v475_v48 = vpop.f32.mrb[4].mxu1  ;;  %360 = vst.msk [vmem:[%s665_s3] sm:$0xf] %vm359_vm0, %v413_v41  ;;  %v282_v49 = vsel %vm250_vm5, %v196_v33, %v266_v43  ;;  %v209_v50 = vadd.f32 %v467_v47, %v580_v16  ;;  %v200_v52 = vpop.f32.mrb[5].mxu0 }
  0xff   :  { %368 = vst.msk [vmem:[%s665_s3 + $0x20] sm:$0xf] %vm359_vm0, %v421_v42  ;;  %v241_v51 = vadd.f32 %v475_v48, %v580_v16  ;;  %v232_v53 = vpop.f32.mrb[5].mxu1  ;;  %v416_v54 = vpack.c.bf16 %v282_v49, %v282_v49  ;;  %vm248_vm7 = vcmp.gt.f32.partialorder %v188_v45, 0.0  ;;  %v264_v56 = vmul.f32 0.2, %v188_v45 }
 0x100   :  { %v290_v55 = vsel %vm258_vm6, %v228_v34, %v274_v44  ;;  %v468_v57 = vpop.f32.mrb[6].mxu0  ;;  %v476_v58 = vpop.f32.mrb[6].mxu1  ;;  %vm256_vm8 = vcmp.gt.f32.partialorder %v220_v46, 0.0  ;;  %v272_v60 = vmul.f32 0.2, %v220_v46  ;;  %vm253_vm9 = vcmp.gt.f32.partialorder %v209_v50, 0.0 }
 0x101   :  { %v424_v59 = vpack.c.bf16 %v290_v55, %v290_v55  ;;  %v203_v61 = vpop.f32.mrb[7].mxu0  ;;  %v235_v62 = vpop.f32.mrb[7].mxu1  ;;  %363 = vst.msk [vmem:[%s665_s3 + $0xc] sm:$0xf] %vm359_vm0, %v416_v54  ;;  %v280_v63 = vsel %vm248_vm7, %v188_v45, %v264_v56  ;;  %v269_v0 = vmul.f32 0.2, %v209_v50  ;;  %v201_v4 = vadd.f32 %v580_v16, %v200_v52 }
 0x102   :  { %vm261_vm10 = vcmp.gt.f32.partialorder %v241_v51, 0.0  ;;  %v277_v1 = vmul.f32 0.2, %v241_v51  ;;  %v414_v2 = vpack.c.bf16 %v280_v63, %v280_v63  ;;  %v288_v3 = vsel %vm256_vm8, %v220_v46, %v272_v60 }
 0x103   :  { %371 = vst.msk [vmem:[%s665_s3 + $0x2c] sm:$0xf] %vm359_vm0, %v424_v59  ;;  %v233_v5 = vadd.f32 %v580_v16, %v232_v53  ;;  %v422_v6 = vpack.c.bf16 %v288_v3, %v288_v3  ;;  %v285_v7 = vsel %vm253_vm9, %v209_v50, %v269_v0  ;;  %v212_v9 = vadd.f32 %v468_v57, %v580_v16 }
 0x104   :  { %v293_v8 = vsel %vm261_vm10, %v241_v51, %v277_v1  ;;  %361 = vst.msk [vmem:[%s665_s3 + $0x4] sm:$0xf] %vm359_vm0, %v414_v2  ;;  %v419_v10 = vpack.c.bf16 %v285_v7, %v285_v7  ;;  %vm251_vm11 = vcmp.gt.f32.partialorder %v201_v4, 0.0  ;;  %v267_v12 = vmul.f32 0.2, %v201_v4 }
 0x105   :  { %v427_v11 = vpack.c.bf16 %v293_v8, %v293_v8  ;;  %369 = vst.msk [vmem:[%s665_s3 + $0x24] sm:$0xf] %vm359_vm0, %v422_v6  ;;  %vm259_vm12 = vcmp.gt.f32.partialorder %v233_v5, 0.0  ;;  %v275_v13 = vmul.f32 0.2, %v233_v5  ;;  %vm254_vm13 = vcmp.gt.f32.partialorder %v212_v9, 0.0 }
 0x106   :  { %v270_v14 = vmul.f32 0.2, %v212_v9  ;;  %366 = vst.msk [vmem:[%s665_s3 + $0x18] sm:$0xf] %vm359_vm0, %v419_v10  ;;  %v283_v15 = vsel %vm251_vm11, %v201_v4, %v267_v12  ;;  %v244_v17 = vadd.f32 %v476_v58, %v580_v16  ;;  %v204_v18 = vadd.f32 %v580_v16, %v203_v61 }
 0x107   :  { %374 = vst.msk [vmem:[%s665_s3 + $0x38] sm:$0xf] %vm359_vm0, %v427_v11  ;;  %v236_v19 = vadd.f32 %v580_v16, %v235_v62  ;;  %v417_v20 = vpack.c.bf16 %v283_v15, %v283_v15  ;;  %v291_v21 = vsel %vm259_vm12, %v233_v5, %v275_v13 }
 0x108   :  { %v286_v22 = vsel %vm254_vm13, %v212_v9, %v270_v14  ;;  %v425_v23 = vpack.c.bf16 %v291_v21, %v291_v21  ;;  %vm262_vm14 = vcmp.gt.f32.partialorder %v244_v17, 0.0  ;;  %v278_v25 = vmul.f32 0.2, %v244_v17 }
 0x109   :  { %v420_v24 = vpack.c.bf16 %v286_v22, %v286_v22  ;;  %364 = vst.msk [vmem:[%s665_s3 + $0x10] sm:$0xf] %vm359_vm0, %v417_v20  ;;  %vm252_vm15 = vcmp.gt.f32.partialorder %v204_v18, 0.0  ;;  %v268_v26 = vmul.f32 0.2, %v204_v18  ;;  %vm260_vm1 = vcmp.gt.f32.partialorder %v236_v19, 0.0 }
 0x10a   :  { %v276_v27 = vmul.f32 0.2, %v236_v19  ;;  %372 = vst.msk [vmem:[%s665_s3 + $0x30] sm:$0xf] %vm359_vm0, %v425_v23  ;;  %v294_v16 = vsel %vm262_vm14, %v244_v17, %v278_v25 }
 0x10b   :  { %367 = vst.msk [vmem:[%s665_s3 + $0x1c] sm:$0xf] %vm359_vm0, %v420_v24  ;;  %v428_v28 = vpack.c.bf16 %v294_v16, %v294_v16  ;;  %v284_v29 = vsel %vm252_vm15, %v204_v18, %v268_v26 }
 0x10c   :  { %v292_v30 = vsel %vm260_vm1, %v236_v19, %v276_v27  ;;  %v418_v31 = vpack.c.bf16 %v284_v29, %v284_v29 }
 0x10d   :  { %v426_v32 = vpack.c.bf16 %v292_v30, %v292_v30  ;;  %375 = vst.msk [vmem:[%s665_s3 + $0x3c] sm:$0xf] %vm359_vm0, %v428_v28 }
 0x10e   :  { %365 = vst.msk [vmem:[%s665_s3 + $0x14] sm:$0xf] %vm359_vm0, %v418_v31 }
 0x10f   :  { %373 = vst.msk [vmem:[%s665_s3 + $0x34] sm:$0xf] %vm359_vm0, %v426_v32 }

// kernel: patchgan_forward.7
= control target key start
LH: loop header
LB: loop body
LE: loop exit
PB: predicated region body
PF: predicated region fallthrough
CT: control target
= control target key end

     0   :  { %s1446_s1 = inlined_call_operand.vmem [shape: bf16[1024,128], index: 1, kind: input, shape index: {}]   ;;  %s1447_s0 = inlined_call_operand.vmem [shape: bf16[32,1024], index: 0, kind: input, shape index: {}]   ;;  %s1448_s2 = inlined_call_operand.vmem [shape: bf16[32,128], index: 2, kind: output, shape index: {0}]   ;;  %s1449_s3 = inlined_call_operand.vmem [shape: f32[1,8,128], index: 3, kind: output, shape index: {1}]   ;;  %s1450_s4 = inlined_call_operand.vmem [shape: f32[1,8,128], index: 4, kind: output, shape index: {2}]  }
   0x1   :  { %v1105_v0 = vld [vmem:[%s1446_s1 + $0x40] sm:$0xff]   ;;  %v1109_v4 = vld [vmem:[%s1446_s1 + $0x48] sm:$0xff]   ;;  %v1113_v8 = vld [vmem:[%s1446_s1 + $0x50] sm:$0xff]  }
   0x2   :  { %v1106_v1 = vld [vmem:[%s1446_s1 + $0xc0] sm:$0xff]   ;;  %993 = vmatprep.subr.bf16.mxu0 %v1105_v0  ;;  %v1110_v5 = vld [vmem:[%s1446_s1 + $0xc8] sm:$0xff]   ;;  %v1114_v9 = vld [vmem:[%s1446_s1 + $0xd0] sm:$0xff]  }
   0x3   :  { %v1107_v2 = vld [vmem:[%s1446_s1] sm:$0xff]   ;;  %1021 = vmatprep.subr.bf16.mxu1 %v1106_v1  ;;  %v1111_v6 = vld [vmem:[%s1446_s1 + $0x8] sm:$0xff]   ;;  %v1115_v10 = vld [vmem:[%s1446_s1 + $0x10] sm:$0xff]  }
   0x4   :  { %v1108_v3 = vld [vmem:[%s1446_s1 + $0x80] sm:$0xff]   ;;  %994 = vmatpush3.bf16.msra.mxu0 %v1107_v2  ;;  %v1112_v7 = vld [vmem:[%s1446_s1 + $0x88] sm:$0xff]   ;;  %v1116_v11 = vld [vmem:[%s1446_s1 + $0x90] sm:$0xff]  }
   0x5   :  { %1022 = vmatpush3.bf16.msra.mxu1 %v1108_v3  ;;  %995 = vmatprep.subr.bf16.mxu0 %v1109_v4  ;;  %v1117_v12 = vld [vmem:[%s1446_s1 + $0x58] sm:$0xff]   ;;  %v1121_v16 = vld [vmem:[%s1446_s1 + $0x60] sm:$0xff]   ;;  %v1125_v20 = vld [vmem:[%s1446_s1 + $0x68] sm:$0xff]  }
   0x6   :  { %1023 = vmatprep.subr.bf16.mxu1 %v1110_v5  ;;  %v1118_v13 = vld [vmem:[%s1446_s1 + $0xd8] sm:$0xff]   ;;  %v1122_v17 = vld [vmem:[%s1446_s1 + $0xe0] sm:$0xff]   ;;  %v1126_v21 = vld [vmem:[%s1446_s1 + $0xe8] sm:$0xff]  }
   0x7   :  { %v1119_v14 = vld [vmem:[%s1446_s1 + $0x18] sm:$0xff]   ;;  %v1123_v18 = vld [vmem:[%s1446_s1 + $0x20] sm:$0xff]   ;;  %v1127_v22 = vld [vmem:[%s1446_s1 + $0x28] sm:$0xff]  }
   0x8   :  { %996 = vmatpush3.bf16.msra.mxu0 %v1111_v6  ;;  %v1120_v15 = vld [vmem:[%s1446_s1 + $0x98] sm:$0xff]   ;;  %v1124_v19 = vld [vmem:[%s1446_s1 + $0xa0] sm:$0xff]   ;;  %v1128_v23 = vld [vmem:[%s1446_s1 + $0xa8] sm:$0xff]  }
   0x9   :  { %1024 = vmatpush3.bf16.msra.mxu1 %v1112_v7  ;;  %997 = vmatprep.subr.bf16.mxu0 %v1113_v8  ;;  %v1129_v24 = vld [vmem:[%s1446_s1 + $0x70] sm:$0xff]   ;;  %v1133_v28 = vld [vmem:[%s1446_s1 + $0x78] sm:$0xff]   ;;  %v15_v32 = vld [vmem:[%s1447_s0] sm:$0xff] }
   0xa   :  { %1025 = vmatprep.subr.bf16.mxu1 %v1114_v9  ;;  %v1130_v25 = vld [vmem:[%s1446_s1 + $0xf0] sm:$0xff]   ;;  %v1134_v29 = vld [vmem:[%s1446_s1 + $0xf8] sm:$0xff]   ;;  %v19_v33 = vld [vmem:[%s1447_s0 + $0x20] sm:$0xff] }
   0xb   :  { %v1131_v26 = vld [vmem:[%s1446_s1 + $0x30] sm:$0xff]   ;;  %v1135_v30 = vld [vmem:[%s1446_s1 + $0x38] sm:$0xff]   ;;  %v16_v34 = vld [vmem:[%s1447_s0 + $0x8] sm:$0xff]  ;;  %v894_v35 = vcombine.low %v15_v32, %v19_v33  ;;  %v895_v36 = vcombine.high %v15_v32, %v19_v33 }
   0xc   :  { %998 = vmatpush3.bf16.msra.mxu0 %v1115_v10  ;;  %v1132_v27 = vld [vmem:[%s1446_s1 + $0xb0] sm:$0xff]   ;;  %v1136_v31 = vld [vmem:[%s1446_s1 + $0xb8] sm:$0xff]   ;;  %v20_v37 = vld [vmem:[%s1447_s0 + $0x28] sm:$0xff] }
   0xd   :  { %1026 = vmatpush3.bf16.msra.mxu1 %v1116_v11  ;;  %999 = vmatprep.subr.bf16.mxu0 %v1117_v12  ;;  %v896_v38 = vcombine.low %v16_v34, %v20_v37  ;;  %v897_v39 = vcombine.high %v16_v34, %v20_v37  ;;  %v1137_v40 = vld [vmem:[%s1446_s1 + $0x140] sm:$0xff]   ;;  %v1141_v44 = vld [vmem:[%s1446_s1 + $0x148] sm:$0xff]   ;;  %v1145_v48 = vld [vmem:[%s1446_s1 + $0x150] sm:$0xff]  }
   0xe   :  { %1027 = vmatprep.subr.bf16.mxu1 %v1118_v13  ;;  %655 = vmatprep.mubr.bf16.mxu0 %v895_v36  ;;  %v1138_v41 = vld [vmem:[%s1446_s1 + $0x1c0] sm:$0xff]   ;;  %v1142_v45 = vld [vmem:[%s1446_s1 + $0x1c8] sm:$0xff]   ;;  %v1146_v49 = vld [vmem:[%s1446_s1 + $0x1d0] sm:$0xff]  }
   0xf   :  { %704 = vmatprep.mubr.bf16.mxu1 %v897_v39  ;;  %v1139_v42 = vld [vmem:[%s1446_s1 + $0x100] sm:$0xff]   ;;  %v1143_v46 = vld [vmem:[%s1446_s1 + $0x108] sm:$0xff]   ;;  %v1147_v50 = vld [vmem:[%s1446_s1 + $0x110] sm:$0xff]  }
  0x10   :  { %1000 = vmatpush3.bf16.msra.mxu0 %v1119_v14  ;;  %v1140_v43 = vld [vmem:[%s1446_s1 + $0x180] sm:$0xff]   ;;  %v1144_v47 = vld [vmem:[%s1446_s1 + $0x188] sm:$0xff]   ;;  %v1148_v51 = vld [vmem:[%s1446_s1 + $0x190] sm:$0xff]  }
  0x11   :  { %1028 = vmatpush3.bf16.msra.mxu1 %v1120_v15  ;;  %1001 = vmatprep.subr.bf16.mxu0 %v1121_v16  ;;  %v1149_v52 = vld [vmem:[%s1446_s1 + $0x158] sm:$0xff]   ;;  %v1153_v56 = vld [vmem:[%s1446_s1 + $0x160] sm:$0xff]   ;;  %v24_v63 = vld [vmem:[%s1447_s0 + $0x48] sm:$0xff] }
  0x12   :  { %1029 = vmatprep.subr.bf16.mxu1 %v1122_v17  ;;  %v1150_v53 = vld [vmem:[%s1446_s1 + $0x1d8] sm:$0xff]   ;;  %v1154_v57 = vld [vmem:[%s1446_s1 + $0x1e0] sm:$0xff]   ;;  %v28_v0 = vld [vmem:[%s1447_s0 + $0x68] sm:$0xff] }
  0x13   :  { %v1151_v54 = vld [vmem:[%s1446_s1 + $0x118] sm:$0xff]   ;;  %v1155_v58 = vld [vmem:[%s1446_s1 + $0x120] sm:$0xff]   ;;  %v905_v2 = vcombine.high %v24_v63, %v28_v0  ;;  %v1157_v3 = vld [vmem:[%s1446_s1 + $0x168] sm:$0xff]   ;;  %v904_v4 = vcombine.low %v24_v63, %v28_v0 }
  0x14   :  { %1002 = vmatpush3.bf16.msra.mxu0 %v1123_v18  ;;  %v1152_v55 = vld [vmem:[%s1446_s1 + $0x198] sm:$0xff]   ;;  %v1156_v59 = vld [vmem:[%s1446_s1 + $0x1a0] sm:$0xff]   ;;  %v1158_v5 = vld [vmem:[%s1446_s1 + $0x1e8] sm:$0xff]  }
  0x15   :  { %1030 = vmatpush3.bf16.msra.mxu1 %v1124_v19  ;;  %1003 = vmatprep.subr.bf16.mxu0 %v1125_v20  ;;  %v23_v60 = vld [vmem:[%s1447_s0 + $0x40] sm:$0xff]  ;;  %v1159_v6 = vld [vmem:[%s1446_s1 + $0x128] sm:$0xff]   ;;  %v1161_v8 = vld [vmem:[%s1446_s1 + $0x170] sm:$0xff]  }
  0x16   :  { %1031 = vmatprep.subr.bf16.mxu1 %v1126_v21  ;;  %v27_v61 = vld [vmem:[%s1447_s0 + $0x60] sm:$0xff]  ;;  %v1160_v7 = vld [vmem:[%s1446_s1 + $0x1a8] sm:$0xff]   ;;  %v1162_v9 = vld [vmem:[%s1446_s1 + $0x1f0] sm:$0xff]  }
  0x17   :  { %v903_v62 = vcombine.high %v23_v60, %v27_v61  ;;  %v902_v1 = vcombine.low %v23_v60, %v27_v61  ;;  %v1163_v10 = vld [vmem:[%s1446_s1 + $0x130] sm:$0xff]   ;;  %v1165_v12 = vld [vmem:[%s1446_s1 + $0x178] sm:$0xff]  }
  0x18   :  { %1004 = vmatpush3.bf16.msra.mxu0 %v1127_v22  ;;  %v1164_v11 = vld [vmem:[%s1446_s1 + $0x1b0] sm:$0xff]   ;;  %v1166_v13 = vld [vmem:[%s1446_s1 + $0x1f8] sm:$0xff]  }
  0x19   :  { %1032 = vmatpush3.bf16.msra.mxu1 %v1128_v23  ;;  %1005 = vmatprep.subr.bf16.mxu0 %v1129_v24  ;;  %v1167_v14 = vld [vmem:[%s1446_s1 + $0x138] sm:$0xff]   ;;  %v17_v16 = vld [vmem:[%s1447_s0 + $0x10] sm:$0xff] }
  0x1a   :  { %1033 = vmatprep.subr.bf16.mxu1 %v1130_v25  ;;  %v1168_v15 = vld [vmem:[%s1446_s1 + $0x1b8] sm:$0xff]   ;;  %v21_v17 = vld [vmem:[%s1447_s0 + $0x30] sm:$0xff] }
  0x1b   :  { %v18_v18 = vld [vmem:[%s1447_s0 + $0x18] sm:$0xff]  ;;  %v898_v20 = vcombine.low %v17_v16, %v21_v17  ;;  %v899_v21 = vcombine.high %v17_v16, %v21_v17  ;;  %v25_v24 = vld [vmem:[%s1447_s0 + $0x50] sm:$0xff] }
  0x1c   :  { %1006 = vmatpush3.bf16.msra.mxu0 %v1131_v26  ;;  %v22_v19 = vld [vmem:[%s1447_s0 + $0x38] sm:$0xff]  ;;  %v29_v25 = vld [vmem:[%s1447_s0 + $0x70] sm:$0xff] }
  0x1d   :  { %1034 = vmatpush3.bf16.msra.mxu1 %v1132_v27  ;;  %1007 = vmatprep.subr.bf16.mxu0 %v1133_v28  ;;  %v900_v22 = vcombine.low %v18_v18, %v22_v19  ;;  %v901_v23 = vcombine.high %v18_v18, %v22_v19  ;;  %v26_v26 = vld [vmem:[%s1447_s0 + $0x58] sm:$0xff]  ;;  %v907_v27 = vcombine.high %v25_v24, %v29_v25 }
  0x1e   :  { %1035 = vmatprep.subr.bf16.mxu1 %v1134_v29  ;;  %v30_v28 = vld [vmem:[%s1447_s0 + $0x78] sm:$0xff] }
  0x1f   :  { %v909_v29 = vcombine.high %v26_v26, %v30_v28 }
  0x20   :  { %1008 = vmatpush3.bf16.msra.mxu0 %v1135_v30  ;;  %v906_v30 = vcombine.low %v25_v24, %v29_v25 }
  0x21   :  { %1036 = vmatpush3.bf16.msra.mxu1 %v1136_v31  ;;  %1049 = vmatprep.subr.bf16.mxu0 %v1137_v40  ;;  %v908_v31 = vcombine.low %v26_v26, %v30_v28 }
  0x22   :  { %1077 = vmatprep.subr.bf16.mxu1 %v1138_v41 }
  0x23   :  { %656 = vmatmul.mubr.bf16.vlgmr.msra.gmra.mrb[0].mxu0 %v894_v35 }
  0x24   :  { %705 = vmatmul.mubr.bf16.vlgmr.msra.gmra.mrb[0].mxu1 %v896_v38  ;;  %1050 = vmatpush3.bf16.msra.mxu0 %v1139_v42 }
  0x25   :  { %1078 = vmatpush3.bf16.msra.mxu1 %v1140_v43  ;;  %1051 = vmatprep.subr.bf16.mxu0 %v1141_v44 }
  0x26   :  { %1079 = vmatprep.subr.bf16.mxu1 %v1142_v45  ;;  %663 = vmatprep.mubr.bf16.mxu0 %v903_v62 }
  0x27   :  { %712 = vmatprep.mubr.bf16.mxu1 %v905_v2 }
  0x28   :  { %1052 = vmatpush3.bf16.msra.mxu0 %v1143_v46 }
  0x29   :  { %1080 = vmatpush3.bf16.msra.mxu1 %v1144_v47  ;;  %1053 = vmatprep.subr.bf16.mxu0 %v1145_v48 }
  0x2a   :  { %1081 = vmatprep.subr.bf16.mxu1 %v1146_v49 }
  0x2b   :  { %664 = vmatmul.mubr.bf16.gmra.mrb[4].mxu0 %v902_v1 }
  0x2c   :  { %1054 = vmatpush3.bf16.msra.mxu0 %v1147_v50  ;;  %713 = vmatmul.mubr.bf16.gmra.mrb[4].mxu1 %v904_v4 }
  0x2d   :  { %1082 = vmatpush3.bf16.msra.mxu1 %v1148_v51  ;;  %1055 = vmatprep.subr.bf16.mxu0 %v1149_v52 }
  0x2e   :  { %1083 = vmatprep.subr.bf16.mxu1 %v1150_v53  ;;  %753 = vmatprep.mubr.bf16.mxu0 %v899_v21 }
  0x2f   :  { %802 = vmatprep.mubr.bf16.mxu1 %v901_v23 }
  0x30   :  { %1056 = vmatpush3.bf16.msra.mxu0 %v1151_v54 }
  0x31   :  { %1084 = vmatpush3.bf16.msra.mxu1 %v1152_v55  ;;  %1057 = vmatprep.subr.bf16.mxu0 %v1153_v56 }
  0x32   :  { %1085 = vmatprep.subr.bf16.mxu1 %v1154_v57 }
  0x34   :  { %1058 = vmatpush3.bf16.msra.mxu0 %v1155_v58 }
  0x35   :  { %1086 = vmatpush3.bf16.msra.mxu1 %v1156_v59  ;;  %1059 = vmatprep.subr.bf16.mxu0 %v1157_v3 }
  0x36   :  { %1087 = vmatprep.subr.bf16.mxu1 %v1158_v5 }
  0x38   :  { %1060 = vmatpush3.bf16.msra.mxu0 %v1159_v6 }
  0x39   :  { %1088 = vmatpush3.bf16.msra.mxu1 %v1160_v7  ;;  %1061 = vmatprep.subr.bf16.mxu0 %v1161_v8 }
  0x3a   :  { %1089 = vmatprep.subr.bf16.mxu1 %v1162_v9 }
  0x3c   :  { %1062 = vmatpush3.bf16.msra.mxu0 %v1163_v10 }
  0x3d   :  { %1090 = vmatpush3.bf16.msra.mxu1 %v1164_v11  ;;  %1063 = vmatprep.subr.bf16.mxu0 %v1165_v12 }
  0x3e   :  { %1091 = vmatprep.subr.bf16.mxu1 %v1166_v13 }
  0x40   :  { %1064 = vmatpush3.bf16.msra.mxu0 %v1167_v14 }
  0x41   :  { %1092 = vmatpush3.bf16.msra.mxu1 %v1168_v15 }
  0x43   :  { %754 = vmatmul.mubr.bf16.vlgmr.msra.gmra.mrb[8].mxu0 %v898_v20 }
  0x44   :  { %803 = vmatmul.mubr.bf16.vlgmr.msra.gmra.mrb[8].mxu1 %v900_v22  ;;  %761 = vmatprep.mubr.bf16.mxu0 %v907_v27 }
  0x45   :  { %810 = vmatprep.mubr.bf16.mxu1 %v909_v29 }
  0x4b   :  { %762 = vmatmul.mubr.bf16.gmra.mrb[12].mxu0 %v906_v30 }
  0x4c   :  { %811 = vmatmul.mubr.bf16.gmra.mrb[12].mxu1 %v908_v31 }
  0xf6   :  { %v1009_v32 = vpop.f32.mrb[0].mxu0 }
  0xf7   :  { %v1037_v33 = vpop.f32.mrb[0].mxu1  ;;  %v1010_v34 = vpop.f32.mrb[1].mxu0 }
  0xf8   :  { %v1011_v35 = vadd.f32 %v1010_v34, %v1009_v32  ;;  %v1038_v36 = vpop.f32.mrb[1].mxu1  ;;  %v1012_v37 = vpop.f32.mrb[2].mxu0 }
  0xf9   :  { %v1039_v38 = vadd.f32 %v1038_v36, %v1037_v33  ;;  %v1040_v39 = vpop.f32.mrb[2].mxu1  ;;  %v1013_v40 = vpop.f32.mrb[3].mxu0 }
  0xfa   :  { %v1014_v41 = vadd.f32 %v1013_v40, %v1012_v37  ;;  %v1041_v42 = vpop.f32.mrb[3].mxu1 }
  0xfb   :  { %v707_v43 = vadd.f32 %v1039_v38, %v1011_v35  ;;  %v1042_v44 = vadd.f32 %v1041_v42, %v1040_v39 }
  0xfd   :  { %v710_v45 = vadd.f32 %v1042_v44, %v1014_v41 }
  0xfe   :  { %v1015_v46 = vpop.f32.mrb[4].mxu0 }
  0xff   :  { %v1043_v47 = vpop.f32.mrb[4].mxu1  ;;  %v1016_v48 = vpop.f32.mrb[5].mxu0 }
 0x100   :  { %v1017_v49 = vadd.f32 %v1016_v48, %v1015_v46  ;;  %v1044_v50 = vpop.f32.mrb[5].mxu1  ;;  %v1018_v51 = vpop.f32.mrb[6].mxu0 }
 0x101   :  { %v1045_v52 = vadd.f32 %v1044_v50, %v1043_v47  ;;  %v1046_v53 = vpop.f32.mrb[6].mxu1  ;;  %v1019_v54 = vpop.f32.mrb[7].mxu0 }
 0x102   :  { %v1020_v55 = vadd.f32 %v1019_v54, %v1018_v51  ;;  %v1047_v56 = vpop.f32.mrb[7].mxu1 }
 0x103   :  { %v715_v57 = vadd.f32 %v1045_v52, %v1017_v49  ;;  %v1048_v58 = vadd.f32 %v1047_v56, %v1046_v53 }
 0x105   :  { %v718_v59 = vadd.f32 %v1048_v58, %v1020_v55 }
 0x116   :  { %v1065_v60 = vpop.f32.mrb[8].mxu0 }
 0x117   :  { %v1093_v61 = vpop.f32.mrb[8].mxu1  ;;  %v1066_v62 = vpop.f32.mrb[9].mxu0 }
 0x118   :  { %v1094_v63 = vpop.f32.mrb[9].mxu1  ;;  %v1067_v0 = vadd.f32 %v1066_v62, %v1065_v60  ;;  %v1068_v2 = vpop.f32.mrb[10].mxu0 }
 0x119   :  { %v1095_v1 = vadd.f32 %v1094_v63, %v1093_v61  ;;  %v1096_v3 = vpop.f32.mrb[10].mxu1  ;;  %v1069_v4 = vpop.f32.mrb[11].mxu0 }
 0x11a   :  { %v1097_v5 = vpop.f32.mrb[11].mxu1  ;;  %v756_v6 = vadd.f32 %v1067_v0, %v707_v43  ;;  %v1070_v7 = vadd.f32 %v1069_v4, %v1068_v2 }
 0x11b   :  { %v1098_v8 = vadd.f32 %v1097_v5, %v1096_v3 }
 0x11c   :  { %v805_v9 = vadd.f32 %v1095_v1, %v756_v6  ;;  %v759_v10 = vadd.f32 %v1070_v7, %v710_v45 }
 0x11e   :  { %v808_v11 = vadd.f32 %v1098_v8, %v759_v10  ;;  %v1071_v12 = vpop.f32.mrb[12].mxu0  ;;  %v867_v14 = vmul.f32 %v805_v9, %v805_v9 }
 0x11f   :  { %v1099_v13 = vpop.f32.mrb[12].mxu1  ;;  %v1072_v15 = vpop.f32.mrb[13].mxu0 }
 0x120   :  { %v1100_v16 = vpop.f32.mrb[13].mxu1  ;;  %v985_v17 = vpack.c.bf16 %v808_v11, %v805_v9  ;;  %v858_v18 = vadd.f32 %v808_v11, %v805_v9  ;;  %v868_v19 = vmul.f32 %v808_v11, %v808_v11  ;;  %v1073_v20 = vadd.f32 %v1072_v15, %v1071_v12  ;;  %v1074_v21 = vpop.f32.mrb[14].mxu0 }
 0x121   :  { %v1102_v22 = vpop.f32.mrb[14].mxu1  ;;  %v1101_v23 = vadd.f32 %v1100_v16, %v1099_v13  ;;  %v1075_v24 = vpop.f32.mrb[15].mxu0 }
 0x122   :  { %v1103_v25 = vpop.f32.mrb[15].mxu1  ;;  %986 = vst [vmem:[%s1448_s2] sm:$0xff] %v985_v17   ;;  %v871_v26 = vadd.f32 %v868_v19, %v867_v14  ;;  %v764_v27 = vadd.f32 %v1073_v20, %v715_v57  ;;  %v1076_v28 = vadd.f32 %v1075_v24, %v1074_v21 }
 0x123   :  { %v1104_v29 = vadd.f32 %v1103_v25, %v1102_v22 }
 0x124   :  { %v813_v30 = vadd.f32 %v1101_v23, %v764_v27  ;;  %v767_v31 = vadd.f32 %v1076_v28, %v718_v59 }
 0x126   :  { %v859_v32 = vadd.f32 %v858_v18, %v813_v30  ;;  %v869_v33 = vmul.f32 %v813_v30, %v813_v30  ;;  %v816_v34 = vadd.f32 %v1104_v29, %v767_v31 }
 0x128   :  { %v872_v35 = vadd.f32 %v871_v26, %v869_v33  ;;  %v990_v36 = vpack.c.bf16 %v816_v34, %v813_v30  ;;  %v860_v37 = vadd.f32 %v859_v32, %v816_v34  ;;  %v870_v38 = vmul.f32 %v816_v34, %v816_v34 }
 0x12a   :  { %992 = vst [vmem:[%s1448_s2 + $0x8] sm:$0xff] %v990_v36   ;;  %v861_v39 = vrot.slane %v860_v37, 4  ;;  %v873_v40 = vadd.f32 %v872_v35, %v870_v38 }
 0x12c   :  { %v862_v41 = vadd.f32 %v861_v39, %v860_v37  ;;  %v874_v42 = vrot.slane %v873_v40, 4 }
 0x12e   :  { %v863_v43 = vrot.slane %v862_v41, 2  ;;  %v875_v44 = vadd.f32 %v874_v42, %v873_v40 }
 0x130   :  { %v864_v45 = vadd.f32 %v863_v43, %v862_v41  ;;  %v876_v46 = vrot.slane %v875_v44, 2 }
 0x132   :  { %v865_v47 = vrot.slane %v864_v45, 1  ;;  %v877_v48 = vadd.f32 %v876_v46, %v875_v44 }
 0x134   :  { %v866_v49 = vadd.f32 %v865_v47, %v864_v45  ;;  %v878_v50 = vrot.slane %v877_v48, 1 }
 0x136   :  { %v879_v51 = vadd.f32 %v878_v50, %v877_v48  ;;  %880 = vst [vmem:[%s1449_s3] sm:$0xff] %v866_v49 }
 0x138   :  { %881 = vst [vmem:[%s1450_s4] sm:$0xff] %v879_v51 }

// kernel: patchgan_forward.8
= control target key start
LH: loop header
LB: loop body
LE: loop exit
PB: predicated region body
PF: predicated region fallthrough
CT: control target
= control target key end

     0   :  { %s148_s0 = inlined_call_operand.vmem [shape: bf16[32,128], index: 0, kind: input, shape index: {}]   ;;  %s149_s1 = inlined_call_operand.vmem [shape: f32[1,128], index: 1, kind: input, shape index: {}]   ;;  %s150_s2 = inlined_call_operand.vmem [shape: f32[1,128], index: 2, kind: input, shape index: {}]   ;;  %s151_s3 = inlined_call_operand.vmem [shape: bf16[32,128], index: 3, kind: output, shape index: {}]  }
   0x1   :  { %v91_v0 = vld [vmem:[%s148_s0] sm:$0xff]   ;;  %v108_v4 = vld [vmem:[%s148_s0 + $0x8] sm:$0xff]  }
   0x2   :  { %v80_v1 = vld [vmem:[%s149_s1] ss:$0 sm:$0xff]  ;;  %v92_v2 = vunpack.c.l.bf16 %v91_v0  ;;  %v93_v3 = vunpack.c.h.bf16 %v91_v0  ;;  %v96_v6 = vunpack.c.l.bf16 %v108_v4  ;;  %v97_v7 = vunpack.c.h.bf16 %v108_v4 }
   0x3   :  { %v81_v5 = vld [vmem:[%s150_s2] ss:$0 sm:$0xff] }
   0x4   :  { %v29_v8 = vmul.f32 %v92_v2, %v80_v1  ;;  %v30_v9 = vmul.f32 %v93_v3, %v80_v1  ;;  %v31_v10 = vmul.f32 %v96_v6, %v80_v1  ;;  %v32_v11 = vmul.f32 %v97_v7, %v80_v1 }
   0x6   :  { %v40_v12 = vadd.f32 %v81_v5, %v29_v8  ;;  %v41_v13 = vadd.f32 %v81_v5, %v30_v9  ;;  %v42_v14 = vadd.f32 %v81_v5, %v31_v10  ;;  %v43_v15 = vadd.f32 %v81_v5, %v32_v11 }
   0x8   :  { %vm44_vm0 = vcmp.gt.f32.partialorder %v40_v12, 0.0  ;;  %vm45_vm1 = vcmp.gt.f32.partialorder %v41_v13, 0.0  ;;  %v48_v16 = vmul.f32 0.2, %v40_v12  ;;  %v49_v17 = vmul.f32 0.2, %v41_v13 }
   0x9   :  { %vm46_vm2 = vcmp.gt.f32.partialorder %v42_v14, 0.0  ;;  %vm47_vm3 = vcmp.gt.f32.partialorder %v43_v15, 0.0  ;;  %v50_v18 = vmul.f32 0.2, %v42_v14  ;;  %v51_v19 = vmul.f32 0.2, %v43_v15 }
   0xa   :  { %v52_v20 = vsel %vm44_vm0, %v40_v12, %v48_v16  ;;  %v53_v21 = vsel %vm45_vm1, %v41_v13, %v49_v17 }
   0xb   :  { %v101_v22 = vpack.c.bf16 %v53_v21, %v52_v20  ;;  %v54_v23 = vsel %vm46_vm2, %v42_v14, %v50_v18  ;;  %v55_v24 = vsel %vm47_vm3, %v43_v15, %v51_v19 }
   0xc   :  { %v106_v25 = vpack.c.bf16 %v55_v24, %v54_v23 }
   0xd   :  { %102 = vst [vmem:[%s151_s3] sm:$0xff] %v101_v22  }
   0xe   :  { %109 = vst [vmem:[%s151_s3 + $0x8] sm:$0xff] %v106_v25  }

// kernel: patchgan_forward.10
= control target key start
LH: loop header
LB: loop body
LE: loop exit
PB: predicated region body
PF: predicated region fallthrough
CT: control target
= control target key end

     0   :  { %v22_v0 = vlaneseq  ;;  %s124_s0 = inlined_call_operand.vmem [shape: bf16[16,256], index: 0, kind: input, shape index: {}]   ;;  %s125_s1 = inlined_call_operand.vmem [shape: f32[1,256], index: 1, kind: input, shape index: {}]   ;;  %s126_s2 = inlined_call_operand.vmem [shape: f32[1,256], index: 2, kind: input, shape index: {}]   ;;  %s127_s3 = inlined_call_operand.vmem [shape: bf16[16,256], index: 3, kind: output, shape index: {}]  }
   0x1   :  { %v14_v1 = vld [vmem:[%s124_s0] sm:$0xff]  ;;  %v15_v3 = vld [vmem:[%s124_s0 + $0x8] sm:$0xff] }
   0x2   :  { %v23_v2 = vshrl.u32 %v22_v0, 7  ;;  %v16_v4 = vunpack.c.l.bf16 %v14_v1  ;;  %v17_v5 = vunpack.c.h.bf16 %v14_v1  ;;  %v20_v6 = vld [vmem:[%s125_s1] sm:$0x3]  ;;  %v18_v10 = vunpack.c.l.bf16 %v15_v3 }
   0x3   :  { %v36_v7 = vld [vmem:[%s126_s2] sm:$0x3]  ;;  %v19_v11 = vunpack.c.h.bf16 %v15_v3 }
   0x4   :  { %v24_v8 = vsub.s32 0, %v23_v2  ;;  %v28_v9 = vsub.s32 1, %v23_v2 }
   0x6   :  { %v25_v12 = vrot.slane %v20_v6, %v24_v8  ;;  %v29_v13 = vrot.slane %v20_v6, %v28_v9  ;;  %v41_v14 = vrot.slane %v36_v7, %v24_v8  ;;  %v45_v15 = vrot.slane %v36_v7, %v28_v9 }
   0x8   :  { %v32_v16 = vmul.f32 %v25_v12, %v16_v4  ;;  %v33_v17 = vmul.f32 %v29_v13, %v17_v5  ;;  %v34_v18 = vmul.f32 %v25_v12, %v18_v10  ;;  %v35_v19 = vmul.f32 %v29_v13, %v19_v11 }
   0xa   :  { %v48_v20 = vadd.f32 %v41_v14, %v32_v16  ;;  %v49_v21 = vadd.f32 %v45_v15, %v33_v17  ;;  %v50_v22 = vadd.f32 %v41_v14, %v34_v18  ;;  %v51_v23 = vadd.f32 %v45_v15, %v35_v19 }
   0xc   :  { %vm52_vm0 = vcmp.gt.f32.partialorder %v48_v20, 0.0  ;;  %vm53_vm1 = vcmp.gt.f32.partialorder %v49_v21, 0.0  ;;  %v56_v24 = vmul.f32 0.2, %v48_v20  ;;  %v57_v25 = vmul.f32 0.2, %v49_v21 }
   0xd   :  { %vm54_vm2 = vcmp.gt.f32.partialorder %v50_v22, 0.0  ;;  %vm55_vm3 = vcmp.gt.f32.partialorder %v51_v23, 0.0  ;;  %v58_v26 = vmul.f32 0.2, %v50_v22  ;;  %v59_v27 = vmul.f32 0.2, %v51_v23 }
   0xe   :  { %v60_v28 = vsel %vm52_vm0, %v48_v20, %v56_v24  ;;  %v61_v29 = vsel %vm53_vm1, %v49_v21, %v57_v25 }
   0xf   :  { %v84_v30 = vpack.c.bf16 %v61_v29, %v60_v28  ;;  %v62_v31 = vsel %vm54_vm2, %v50_v22, %v58_v26  ;;  %v63_v32 = vsel %vm55_vm3, %v51_v23, %v59_v27 }
  0x10   :  { %v85_v33 = vpack.c.bf16 %v63_v32, %v62_v31 }
  0x11   :  { %76 = vst [vmem:[%s127_s3] sm:$0xff] %v84_v30 }
  0x12   :  { %77 = vst [vmem:[%s127_s3 + $0x8] sm:$0xff] %v85_v33 }

// kernel: patchgan_forward.9
= control target key start
LH: loop header
LB: loop body
LE: loop exit
PB: predicated region body
PF: predicated region fallthrough
CT: control target
= control target key end

     0   :  { %s3660_s1 = inlined_call_operand.vmem [shape: bf16[2048,256], index: 1, kind: input, shape index: {}]   ;;  %s3661_s0 = inlined_call_operand.vmem [shape: bf16[16,2048], index: 0, kind: input, shape index: {}]   ;;  %s3662_s2 = inlined_call_operand.vmem [shape: bf16[16,256], index: 2, kind: output, shape index: {0}]   ;;  %s3663_s3 = inlined_call_operand.vmem [shape: f32[1,8,256], index: 3, kind: output, shape index: {1}]   ;;  %s3664_s4 = inlined_call_operand.vmem [shape: f32[1,8,256], index: 4, kind: output, shape index: {2}]  }
   0x1   :  { %v2369_v0 = vld [vmem:[%s3660_s1 + $0x4] ss:$8 sps:$4 sm:$0xff]   ;;  %v2373_v2 = vld [vmem:[%s3660_s1] ss:$8 sps:$4 sm:$0xff]   ;;  %v2375_v4 = vld [vmem:[%s3660_s1 + $0x14] ss:$8 sps:$4 sm:$0xff]  }
   0x2   :  { %v2371_v1 = vld [vmem:[%s3660_s1 + $0x404] ss:$8 sps:$4 sm:$0xff]   ;;  %1646 = vmatprep.subr.bf16.mxu1 %v2369_v0  ;;  %v2374_v3 = vld [vmem:[%s3660_s1 + $0x400] ss:$8 sps:$4 sm:$0xff]   ;;  %v2377_v5 = vld [vmem:[%s3660_s1 + $0x414] ss:$8 sps:$4 sm:$0xff]  }
   0x3   :  { %1818 = vmatprep.subr.bf16.mxu0 %v2371_v1  ;;  %1647 = vmatpush1.bf16.msra.mxu1 %v2373_v2  ;;  %v2379_v6 = vld [vmem:[%s3660_s1 + $0x10] ss:$8 sps:$4 sm:$0xff]   ;;  %v2381_v8 = vld [vmem:[%s3660_s1 + $0x24] ss:$8 sps:$4 sm:$0xff]   ;;  %v2385_v10 = vld [vmem:[%s3660_s1 + $0x20] ss:$8 sps:$4 sm:$0xff]  }
   0x4   :  { %1819 = vmatpush1.bf16.msra.mxu0 %v2374_v3  ;;  %1648 = vmatprep.subr.bf16.mxu1 %v2375_v4  ;;  %v2380_v7 = vld [vmem:[%s3660_s1 + $0x410] ss:$8 sps:$4 sm:$0xff]   ;;  %v2383_v9 = vld [vmem:[%s3660_s1 + $0x424] ss:$8 sps:$4 sm:$0xff]   ;;  %v2386_v11 = vld [vmem:[%s3660_s1 + $0x420] ss:$8 sps:$4 sm:$0xff]  }
   0x5   :  { %1820 = vmatprep.subr.bf16.mxu0 %v2377_v5  ;;  %v2387_v12 = vld [vmem:[%s3660_s1 + $0x34] ss:$8 sps:$4 sm:$0xff]   ;;  %v2391_v14 = vld [vmem:[%s3660_s1 + $0x30] ss:$8 sps:$4 sm:$0xff]   ;;  %v2393_v16 = vld [vmem:[%s3660_s1 + $0x44] ss:$8 sps:$4 sm:$0xff]  }
   0x6   :  { %v2389_v13 = vld [vmem:[%s3660_s1 + $0x434] ss:$8 sps:$4 sm:$0xff]   ;;  %v2392_v15 = vld [vmem:[%s3660_s1 + $0x430] ss:$8 sps:$4 sm:$0xff]   ;;  %v2395_v17 = vld [vmem:[%s3660_s1 + $0x444] ss:$8 sps:$4 sm:$0xff]  }
   0x7   :  { %1649 = vmatpush1.bf16.msra.mxu1 %v2379_v6  ;;  %v2397_v18 = vld [vmem:[%s3660_s1 + $0x40] ss:$8 sps:$4 sm:$0xff]   ;;  %v2399_v20 = vld [vmem:[%s3660_s1 + $0x54] ss:$8 sps:$4 sm:$0xff]   ;;  %v2403_v22 = vld [vmem:[%s3660_s1 + $0x50] ss:$8 sps:$4 sm:$0xff]  }
   0x8   :  { %1821 = vmatpush1.bf16.msra.mxu0 %v2380_v7  ;;  %1650 = vmatprep.subr.bf16.mxu1 %v2381_v8  ;;  %v2398_v19 = vld [vmem:[%s3660_s1 + $0x440] ss:$8 sps:$4 sm:$0xff]   ;;  %v2401_v21 = vld [vmem:[%s3660_s1 + $0x454] ss:$8 sps:$4 sm:$0xff]   ;;  %v2404_v23 = vld [vmem:[%s3660_s1 + $0x450] ss:$8 sps:$4 sm:$0xff]  }
   0x9   :  { %1822 = vmatprep.subr.bf16.mxu0 %v2383_v9  ;;  %v2405_v24 = vld [vmem:[%s3660_s1 + $0x64] ss:$8 sps:$4 sm:$0xff]   ;;  %v2409_v26 = vld [vmem:[%s3660_s1 + $0x60] ss:$8 sps:$4 sm:$0xff]   ;;  %v2411_v28 = vld [vmem:[%s3660_s1 + $0x74] ss:$8 sps:$4 sm:$0xff]  }
   0xa   :  { %v2407_v25 = vld [vmem:[%s3660_s1 + $0x464] ss:$8 sps:$4 sm:$0xff]   ;;  %v2410_v27 = vld [vmem:[%s3660_s1 + $0x460] ss:$8 sps:$4 sm:$0xff]   ;;  %v2413_v29 = vld [vmem:[%s3660_s1 + $0x474] ss:$8 sps:$4 sm:$0xff]  }
   0xb   :  { %1651 = vmatpush1.bf16.msra.mxu1 %v2385_v10  ;;  %v2415_v30 = vld [vmem:[%s3660_s1 + $0x70] ss:$8 sps:$4 sm:$0xff]   ;;  %v2417_v32 = vld [vmem:[%s3660_s1 + $0x84] ss:$8 sps:$4 sm:$0xff]   ;;  %v2421_v34 = vld [vmem:[%s3660_s1 + $0x80] ss:$8 sps:$4 sm:$0xff]  }
   0xc   :  { %1823 = vmatpush1.bf16.msra.mxu0 %v2386_v11  ;;  %1652 = vmatprep.subr.bf16.mxu1 %v2387_v12  ;;  %v2416_v31 = vld [vmem:[%s3660_s1 + $0x470] ss:$8 sps:$4 sm:$0xff]   ;;  %v2419_v33 = vld [vmem:[%s3660_s1 + $0x484] ss:$8 sps:$4 sm:$0xff]   ;;  %v2422_v35 = vld [vmem:[%s3660_s1 + $0x480] ss:$8 sps:$4 sm:$0xff]  }
   0xd   :  { %1824 = vmatprep.subr.bf16.mxu0 %v2389_v13  ;;  %v2423_v36 = vld [vmem:[%s3660_s1 + $0x94] ss:$8 sps:$4 sm:$0xff]   ;;  %v2427_v38 = vld [vmem:[%s3660_s1 + $0x90] ss:$8 sps:$4 sm:$0xff]   ;;  %v2429_v40 = vld [vmem:[%s3660_s1 + $0xa4] ss:$8 sps:$4 sm:$0xff]  }
   0xe   :  { %v2425_v37 = vld [vmem:[%s3660_s1 + $0x494] ss:$8 sps:$4 sm:$0xff]   ;;  %v2428_v39 = vld [vmem:[%s3660_s1 + $0x490] ss:$8 sps:$4 sm:$0xff]   ;;  %v2431_v41 = vld [vmem:[%s3660_s1 + $0x4a4] ss:$8 sps:$4 sm:$0xff]  }
   0xf   :  { %1653 = vmatpush1.bf16.msra.mxu1 %v2391_v14  ;;  %v2433_v42 = vld [vmem:[%s3660_s1 + $0xa0] ss:$8 sps:$4 sm:$0xff]   ;;  %v2435_v44 = vld [vmem:[%s3660_s1 + $0xb4] ss:$8 sps:$4 sm:$0xff]   ;;  %v2439_v46 = vld [vmem:[%s3660_s1 + $0xb0] ss:$8 sps:$4 sm:$0xff]  }
  0x10   :  { %1825 = vmatpush1.bf16.msra.mxu0 %v2392_v15  ;;  %1654 = vmatprep.subr.bf16.mxu1 %v2393_v16  ;;  %v2434_v43 = vld [vmem:[%s3660_s1 + $0x4a0] ss:$8 sps:$4 sm:$0xff]   ;;  %v2437_v45 = vld [vmem:[%s3660_s1 + $0x4b4] ss:$8 sps:$4 sm:$0xff]   ;;  %v2440_v47 = vld [vmem:[%s3660_s1 + $0x4b0] ss:$8 sps:$4 sm:$0xff]  }
  0x11   :  { %1826 = vmatprep.subr.bf16.mxu0 %v2395_v17  ;;  %v14_v48 = vld [vmem:[%s3661_s0] sm:$0xff]  ;;  %v2447_v58 = vld [vmem:[%s3660_s1 + $0xd4] ss:$8 sps:$4 sm:$0xff]   ;;  %v2451_v60 = vld [vmem:[%s3660_s1 + $0xd0] ss:$8 sps:$4 sm:$0xff]  }
  0x12   :  { %v22_v49 = vld [vmem:[%s3661_s0 + $0x40] sm:$0xff]  ;;  %v2449_v59 = vld [vmem:[%s3660_s1 + $0x4d4] ss:$8 sps:$4 sm:$0xff]   ;;  %v2452_v61 = vld [vmem:[%s3660_s1 + $0x4d0] ss:$8 sps:$4 sm:$0xff]  }
  0x13   :  { %1655 = vmatpush1.bf16.msra.mxu1 %v2397_v18  ;;  %v2441_v50 = vld [vmem:[%s3660_s1 + $0xc4] ss:$8 sps:$4 sm:$0xff]   ;;  %v2066_v52 = vcombine.high %v14_v48, %v22_v49  ;;  %v2445_v56 = vld [vmem:[%s3660_s1 + $0xc0] ss:$8 sps:$4 sm:$0xff]   ;;  %v2459_v2 = vld [vmem:[%s3660_s1 + $0xf4] ss:$8 sps:$4 sm:$0xff]   ;;  %v2065_v8 = vcombine.low %v14_v48, %v22_v49 }
  0x14   :  { %1827 = vmatpush1.bf16.msra.mxu0 %v2398_v19  ;;  %1656 = vmatprep.subr.bf16.mxu1 %v2399_v20  ;;  %v2443_v51 = vld [vmem:[%s3660_s1 + $0x4c4] ss:$8 sps:$4 sm:$0xff]   ;;  %v2446_v57 = vld [vmem:[%s3660_s1 + $0x4c0] ss:$8 sps:$4 sm:$0xff]   ;;  %v2461_v3 = vld [vmem:[%s3660_s1 + $0x4f4] ss:$8 sps:$4 sm:$0xff]  }
  0x15   :  { %1828 = vmatprep.subr.bf16.mxu0 %v2401_v21  ;;  %v18_v53 = vld [vmem:[%s3661_s0 + $0x20] sm:$0xff]  ;;  %1678 = vmatprep.mubr.bf16.mxu1 %v2066_v52  ;;  %v2463_v4 = vld [vmem:[%s3660_s1 + $0xf0] ss:$8 sps:$4 sm:$0xff]   ;;  %v2473_v12 = vld [vmem:[%s3660_s1 + $0x114] ss:$8 sps:$4 sm:$0xff]  }
  0x16   :  { %v26_v54 = vld [vmem:[%s3661_s0 + $0x60] sm:$0xff]  ;;  %v2464_v5 = vld [vmem:[%s3660_s1 + $0x4f0] ss:$8 sps:$4 sm:$0xff]   ;;  %v2476_v13 = vld [vmem:[%s3660_s1 + $0x514] ss:$8 sps:$4 sm:$0xff]  }
  0x17   :  { %1657 = vmatpush1.bf16.msra.mxu1 %v2403_v22  ;;  %v2074_v55 = vcombine.high %v18_v53, %v26_v54  ;;  %v2453_v62 = vld [vmem:[%s3660_s1 + $0xe4] ss:$8 sps:$4 sm:$0xff]   ;;  %v2457_v0 = vld [vmem:[%s3660_s1 + $0xe0] ss:$8 sps:$4 sm:$0xff]   ;;  %v2073_v10 = vcombine.low %v18_v53, %v26_v54  ;;  %v2471_v14 = vld [vmem:[%s3660_s1 + $0x110] ss:$8 sps:$4 sm:$0xff]  }
  0x18   :  { %1829 = vmatpush1.bf16.msra.mxu0 %v2404_v23  ;;  %1658 = vmatprep.subr.bf16.mxu1 %v2405_v24  ;;  %v2455_v63 = vld [vmem:[%s3660_s1 + $0x4e4] ss:$8 sps:$4 sm:$0xff]   ;;  %v2458_v1 = vld [vmem:[%s3660_s1 + $0x4e0] ss:$8 sps:$4 sm:$0xff]   ;;  %v2474_v15 = vld [vmem:[%s3660_s1 + $0x510] ss:$8 sps:$4 sm:$0xff]  }
  0x19   :  { %1830 = vmatprep.subr.bf16.mxu0 %v2407_v25  ;;  %1850 = vmatprep.mubr.bf16.mxu0 %v2074_v55  ;;  %v2467_v6 = vld [vmem:[%s3660_s1 + $0x104] ss:$8 sps:$4 sm:$0xff]   ;;  %v2465_v9 = vld [vmem:[%s3660_s1 + $0x100] ss:$8 sps:$4 sm:$0xff]   ;;  %v2485_v20 = vld [vmem:[%s3660_s1 + $0x134] ss:$8 sps:$4 sm:$0xff]  }
  0x1a   :  { %v2470_v7 = vld [vmem:[%s3660_s1 + $0x504] ss:$8 sps:$4 sm:$0xff]   ;;  %v2468_v11 = vld [vmem:[%s3660_s1 + $0x500] ss:$8 sps:$4 sm:$0xff]   ;;  %v2488_v21 = vld [vmem:[%s3660_s1 + $0x534] ss:$8 sps:$4 sm:$0xff]  }
  0x1b   :  { %1659 = vmatpush1.bf16.msra.mxu1 %v2409_v26  ;;  %v2479_v16 = vld [vmem:[%s3660_s1 + $0x124] ss:$8 sps:$4 sm:$0xff]   ;;  %v2477_v18 = vld [vmem:[%s3660_s1 + $0x120] ss:$8 sps:$4 sm:$0xff]   ;;  %v2483_v22 = vld [vmem:[%s3660_s1 + $0x130] ss:$8 sps:$4 sm:$0xff]  }
  0x1c   :  { %1831 = vmatpush1.bf16.msra.mxu0 %v2410_v27  ;;  %1660 = vmatprep.subr.bf16.mxu1 %v2411_v28  ;;  %v2482_v17 = vld [vmem:[%s3660_s1 + $0x524] ss:$8 sps:$4 sm:$0xff]   ;;  %v2480_v19 = vld [vmem:[%s3660_s1 + $0x520] ss:$8 sps:$4 sm:$0xff]   ;;  %v2486_v23 = vld [vmem:[%s3660_s1 + $0x530] ss:$8 sps:$4 sm:$0xff]  }
  0x1d   :  { %1832 = vmatprep.subr.bf16.mxu0 %v2413_v29  ;;  %v2491_v24 = vld [vmem:[%s3660_s1 + $0x144] ss:$8 sps:$4 sm:$0xff]   ;;  %v2489_v26 = vld [vmem:[%s3660_s1 + $0x140] ss:$8 sps:$4 sm:$0xff]   ;;  %v2497_v28 = vld [vmem:[%s3660_s1 + $0x154] ss:$8 sps:$4 sm:$0xff]  }
  0x1e   :  { %v2494_v25 = vld [vmem:[%s3660_s1 + $0x544] ss:$8 sps:$4 sm:$0xff]   ;;  %v2492_v27 = vld [vmem:[%s3660_s1 + $0x540] ss:$8 sps:$4 sm:$0xff]   ;;  %v2500_v29 = vld [vmem:[%s3660_s1 + $0x554] ss:$8 sps:$4 sm:$0xff]  }
  0x1f   :  { %1661 = vmatpush1.bf16.msra.mxu1 %v2415_v30  ;;  %v2495_v30 = vld [vmem:[%s3660_s1 + $0x150] ss:$8 sps:$4 sm:$0xff]   ;;  %v2513_v48 = vld [vmem:[%s3660_s1 + $0x180] ss:$8 sps:$4 sm:$0xff]   ;;  %v2527_v54 = vld [vmem:[%s3660_s1 + $0x1a4] ss:$8 sps:$4 sm:$0xff]  }
  0x20   :  { %1833 = vmatpush1.bf16.msra.mxu0 %v2416_v31  ;;  %1662 = vmatprep.subr.bf16.mxu1 %v2417_v32  ;;  %v2498_v31 = vld [vmem:[%s3660_s1 + $0x550] ss:$8 sps:$4 sm:$0xff]   ;;  %v2503_v32 = vld [vmem:[%s3660_s1 + $0x164] ss:$8 sps:$4 sm:$0xff]   ;;  %v2516_v49 = vld [vmem:[%s3660_s1 + $0x580] ss:$8 sps:$4 sm:$0xff]  }
  0x21   :  { %1834 = vmatprep.subr.bf16.mxu0 %v2419_v33  ;;  %v2506_v33 = vld [vmem:[%s3660_s1 + $0x564] ss:$8 sps:$4 sm:$0xff]   ;;  %v2519_v52 = vld [vmem:[%s3660_s1 + $0x190] ss:$8 sps:$4 sm:$0xff]  }
  0x22   :  { %v2522_v53 = vld [vmem:[%s3660_s1 + $0x590] ss:$8 sps:$4 sm:$0xff]   ;;  %v2530_v55 = vld [vmem:[%s3660_s1 + $0x5a4] ss:$8 sps:$4 sm:$0xff]  }
  0x23   :  { %1663 = vmatpush1.bf16.msra.mxu1 %v2421_v34  ;;  %v2501_v34 = vld [vmem:[%s3660_s1 + $0x160] ss:$8 sps:$4 sm:$0xff]  }
  0x24   :  { %1835 = vmatpush1.bf16.msra.mxu0 %v2422_v35  ;;  %1664 = vmatprep.subr.bf16.mxu1 %v2423_v36  ;;  %v2504_v35 = vld [vmem:[%s3660_s1 + $0x560] ss:$8 sps:$4 sm:$0xff]  }
  0x25   :  { %1836 = vmatprep.subr.bf16.mxu0 %v2425_v37  ;;  %v3069_v36 = vld [vmem:[%s3661_s0 + $0x8] sm:$0xff] }
  0x26   :  { %v3074_v37 = vld [vmem:[%s3661_s0 + $0x48] sm:$0xff] }
  0x27   :  { %1665 = vmatpush1.bf16.msra.mxu1 %v2427_v38  ;;  %v2509_v38 = vld [vmem:[%s3660_s1 + $0x174] ss:$8 sps:$4 sm:$0xff]  }
  0x28   :  { %1837 = vmatpush1.bf16.msra.mxu0 %v2428_v39  ;;  %1666 = vmatprep.subr.bf16.mxu1 %v2429_v40  ;;  %v2512_v39 = vld [vmem:[%s3660_s1 + $0x574] ss:$8 sps:$4 sm:$0xff]   ;;  %v2068_v40 = vcombine.high %v3069_v36, %v3074_v37 }
  0x29   :  { %1838 = vmatprep.subr.bf16.mxu0 %v2431_v41  ;;  %v3087_v41 = vld [vmem:[%s3661_s0 + $0x28] sm:$0xff] }
  0x2b   :  { %1667 = vmatpush1.bf16.msra.mxu1 %v2433_v42  ;;  %v3092_v42 = vld [vmem:[%s3661_s0 + $0x68] sm:$0xff] }
  0x2c   :  { %1839 = vmatpush1.bf16.msra.mxu0 %v2434_v43  ;;  %1668 = vmatprep.subr.bf16.mxu1 %v2435_v44  ;;  %v2076_v43 = vcombine.high %v3087_v41, %v3092_v42  ;;  %v2507_v44 = vld [vmem:[%s3660_s1 + $0x170] ss:$8 sps:$4 sm:$0xff]  }
  0x2d   :  { %1840 = vmatprep.subr.bf16.mxu0 %v2437_v45  ;;  %v2510_v45 = vld [vmem:[%s3660_s1 + $0x570] ss:$8 sps:$4 sm:$0xff]  }
  0x2f   :  { %1669 = vmatpush1.bf16.msra.mxu1 %v2439_v46  ;;  %v2515_v46 = vld [vmem:[%s3660_s1 + $0x184] ss:$8 sps:$4 sm:$0xff]  }
  0x30   :  { %1841 = vmatpush1.bf16.msra.mxu0 %v2440_v47  ;;  %1670 = vmatprep.subr.bf16.mxu1 %v2441_v50  ;;  %v2518_v47 = vld [vmem:[%s3660_s1 + $0x584] ss:$8 sps:$4 sm:$0xff]   ;;  %v2521_v50 = vld [vmem:[%s3660_s1 + $0x194] ss:$8 sps:$4 sm:$0xff]  }
  0x31   :  { %1842 = vmatprep.subr.bf16.mxu0 %v2443_v51  ;;  %v2524_v51 = vld [vmem:[%s3660_s1 + $0x594] ss:$8 sps:$4 sm:$0xff]  }
  0x33   :  { %1671 = vmatpush1.bf16.msra.mxu1 %v2445_v56  ;;  %v2525_v56 = vld [vmem:[%s3660_s1 + $0x1a0] ss:$8 sps:$4 sm:$0xff]  }
  0x34   :  { %1843 = vmatpush1.bf16.msra.mxu0 %v2446_v57  ;;  %1672 = vmatprep.subr.bf16.mxu1 %v2447_v58  ;;  %v2528_v57 = vld [vmem:[%s3660_s1 + $0x5a0] ss:$8 sps:$4 sm:$0xff]   ;;  %v2533_v58 = vld [vmem:[%s3660_s1 + $0x1b4] ss:$8 sps:$4 sm:$0xff]  }
  0x35   :  { %1844 = vmatprep.subr.bf16.mxu0 %v2449_v59  ;;  %v2536_v59 = vld [vmem:[%s3660_s1 + $0x5b4] ss:$8 sps:$4 sm:$0xff]  }
  0x37   :  { %1673 = vmatpush1.bf16.msra.mxu1 %v2451_v60  ;;  %v2531_v60 = vld [vmem:[%s3660_s1 + $0x1b0] ss:$8 sps:$4 sm:$0xff]  }
  0x38   :  { %1845 = vmatpush1.bf16.msra.mxu0 %v2452_v61  ;;  %1674 = vmatprep.subr.bf16.mxu1 %v2453_v62  ;;  %v2534_v61 = vld [vmem:[%s3660_s1 + $0x5b0] ss:$8 sps:$4 sm:$0xff]   ;;  %v2539_v62 = vld [vmem:[%s3660_s1 + $0x1c4] ss:$8 sps:$4 sm:$0xff]  }
  0x39   :  { %1846 = vmatprep.subr.bf16.mxu0 %v2455_v63  ;;  %v2542_v63 = vld [vmem:[%s3660_s1 + $0x5c4] ss:$8 sps:$4 sm:$0xff]  }
  0x3b   :  { %1675 = vmatpush1.bf16.msra.mxu1 %v2457_v0  ;;  %v2537_v0 = vld [vmem:[%s3660_s1 + $0x1c0] ss:$8 sps:$4 sm:$0xff]  }
  0x3c   :  { %1847 = vmatpush1.bf16.msra.mxu0 %v2458_v1  ;;  %1676 = vmatprep.subr.bf16.mxu1 %v2459_v2  ;;  %v2540_v1 = vld [vmem:[%s3660_s1 + $0x5c0] ss:$8 sps:$4 sm:$0xff]   ;;  %v2545_v2 = vld [vmem:[%s3660_s1 + $0x1d4] ss:$8 sps:$4 sm:$0xff]  }
  0x3d   :  { %1848 = vmatprep.subr.bf16.mxu0 %v2461_v3  ;;  %v2548_v3 = vld [vmem:[%s3660_s1 + $0x5d4] ss:$8 sps:$4 sm:$0xff]  }
  0x3f   :  { %1677 = vmatpush1.bf16.msra.mxu1 %v2463_v4  ;;  %v2543_v4 = vld [vmem:[%s3660_s1 + $0x1d0] ss:$8 sps:$4 sm:$0xff]  }
  0x40   :  { %1849 = vmatpush1.bf16.msra.mxu0 %v2464_v5  ;;  %1689 = vmatprep.subr.bf16.mxu1 %v2467_v6  ;;  %v2546_v5 = vld [vmem:[%s3660_s1 + $0x5d0] ss:$8 sps:$4 sm:$0xff]   ;;  %v2551_v6 = vld [vmem:[%s3660_s1 + $0x1e4] ss:$8 sps:$4 sm:$0xff]  }
  0x41   :  { %1861 = vmatprep.subr.bf16.mxu0 %v2470_v7  ;;  %v2554_v7 = vld [vmem:[%s3660_s1 + $0x5e4] ss:$8 sps:$4 sm:$0xff]  }
  0x42   :  { %1679 = vmatmul.mubr.bf16.vlgmr.msra.gmra.mrb[0].mxu1 %v2065_v8  ;;  %v2549_v8 = vld [vmem:[%s3660_s1 + $0x1e0] ss:$8 sps:$4 sm:$0xff]  }
  0x43   :  { %1851 = vmatmul.mubr.bf16.vlgmr.msra.gmra.mrb[0].mxu0 %v2073_v10  ;;  %1690 = vmatpush1.bf16.msra.mxu1 %v2465_v9  ;;  %v2552_v9 = vld [vmem:[%s3660_s1 + $0x5e0] ss:$8 sps:$4 sm:$0xff]   ;;  %v2557_v10 = vld [vmem:[%s3660_s1 + $0x1f4] ss:$8 sps:$4 sm:$0xff]  }
  0x44   :  { %1862 = vmatpush1.bf16.msra.mxu0 %v2468_v11  ;;  %1691 = vmatprep.subr.bf16.mxu1 %v2473_v12  ;;  %v2560_v11 = vld [vmem:[%s3660_s1 + $0x5f4] ss:$8 sps:$4 sm:$0xff]   ;;  %v2555_v12 = vld [vmem:[%s3660_s1 + $0x1f0] ss:$8 sps:$4 sm:$0xff]  }
  0x45   :  { %1863 = vmatprep.subr.bf16.mxu0 %v2476_v13  ;;  %1721 = vmatprep.mubr.bf16.mxu1 %v2068_v40  ;;  %v2558_v13 = vld [vmem:[%s3660_s1 + $0x5f0] ss:$8 sps:$4 sm:$0xff]   ;;  %v2585_v40 = vld [vmem:[%s3660_s1 + $0x240] ss:$8 sps:$4 sm:$0xff]  }
  0x46   :  { %1893 = vmatprep.mubr.bf16.mxu0 %v2076_v43  ;;  %v2596_v43 = vld [vmem:[%s3660_s1 + $0x654] ss:$8 sps:$4 sm:$0xff]  }
  0x47   :  { %1692 = vmatpush1.bf16.msra.mxu1 %v2471_v14  ;;  %v2563_v14 = vld [vmem:[%s3660_s1 + $0x204] ss:$8 sps:$4 sm:$0xff]  }
  0x48   :  { %1864 = vmatpush1.bf16.msra.mxu0 %v2474_v15  ;;  %1693 = vmatprep.subr.bf16.mxu1 %v2479_v16  ;;  %v2566_v15 = vld [vmem:[%s3660_s1 + $0x604] ss:$8 sps:$4 sm:$0xff]   ;;  %v2067_v16 = vcombine.low %v3069_v36, %v3074_v37  ;;  %v2579_v36 = vld [vmem:[%s3660_s1 + $0x230] ss:$8 sps:$4 sm:$0xff]  }
  0x49   :  { %1865 = vmatprep.subr.bf16.mxu0 %v2482_v17  ;;  %v2561_v17 = vld [vmem:[%s3660_s1 + $0x200] ss:$8 sps:$4 sm:$0xff]   ;;  %v2582_v37 = vld [vmem:[%s3660_s1 + $0x630] ss:$8 sps:$4 sm:$0xff]  }
  0x4b   :  { %1694 = vmatpush1.bf16.msra.mxu1 %v2477_v18  ;;  %v2075_v18 = vcombine.low %v3087_v41, %v3092_v42  ;;  %v2588_v41 = vld [vmem:[%s3660_s1 + $0x640] ss:$8 sps:$4 sm:$0xff]   ;;  %v2593_v42 = vld [vmem:[%s3660_s1 + $0x254] ss:$8 sps:$4 sm:$0xff]  }
  0x4c   :  { %1866 = vmatpush1.bf16.msra.mxu0 %v2480_v19  ;;  %1695 = vmatprep.subr.bf16.mxu1 %v2485_v20  ;;  %v2564_v19 = vld [vmem:[%s3660_s1 + $0x600] ss:$8 sps:$4 sm:$0xff]   ;;  %v2569_v20 = vld [vmem:[%s3660_s1 + $0x214] ss:$8 sps:$4 sm:$0xff]  }
  0x4d   :  { %1867 = vmatprep.subr.bf16.mxu0 %v2488_v21  ;;  %v2572_v21 = vld [vmem:[%s3660_s1 + $0x614] ss:$8 sps:$4 sm:$0xff]  }
  0x4f   :  { %1696 = vmatpush1.bf16.msra.mxu1 %v2483_v22  ;;  %v2567_v22 = vld [vmem:[%s3660_s1 + $0x210] ss:$8 sps:$4 sm:$0xff]  }
  0x50   :  { %1868 = vmatpush1.bf16.msra.mxu0 %v2486_v23  ;;  %1697 = vmatprep.subr.bf16.mxu1 %v2491_v24  ;;  %v2570_v23 = vld [vmem:[%s3660_s1 + $0x610] ss:$8 sps:$4 sm:$0xff]  }
  0x51   :  { %1869 = vmatprep.subr.bf16.mxu0 %v2494_v25  ;;  %v3229_v24 = vld [vmem:[%s3661_s0 + $0x10] sm:$0xff] }
  0x52   :  { %v3234_v25 = vld [vmem:[%s3661_s0 + $0x50] sm:$0xff] }
  0x53   :  { %1698 = vmatpush1.bf16.msra.mxu1 %v2489_v26  ;;  %v2575_v26 = vld [vmem:[%s3660_s1 + $0x224] ss:$8 sps:$4 sm:$0xff]  }
  0x54   :  { %1870 = vmatpush1.bf16.msra.mxu0 %v2492_v27  ;;  %1699 = vmatprep.subr.bf16.mxu1 %v2497_v28  ;;  %v2578_v27 = vld [vmem:[%s3660_s1 + $0x624] ss:$8 sps:$4 sm:$0xff]   ;;  %v2070_v28 = vcombine.high %v3229_v24, %v3234_v25 }
  0x55   :  { %1871 = vmatprep.subr.bf16.mxu0 %v2500_v29  ;;  %v3247_v29 = vld [vmem:[%s3661_s0 + $0x30] sm:$0xff] }
  0x57   :  { %1700 = vmatpush1.bf16.msra.mxu1 %v2495_v30  ;;  %v3252_v30 = vld [vmem:[%s3661_s0 + $0x70] sm:$0xff] }
  0x58   :  { %1872 = vmatpush1.bf16.msra.mxu0 %v2498_v31  ;;  %1701 = vmatprep.subr.bf16.mxu1 %v2503_v32  ;;  %v2078_v31 = vcombine.high %v3247_v29, %v3252_v30  ;;  %v2573_v32 = vld [vmem:[%s3660_s1 + $0x220] ss:$8 sps:$4 sm:$0xff]  }
  0x59   :  { %1873 = vmatprep.subr.bf16.mxu0 %v2506_v33  ;;  %v2576_v33 = vld [vmem:[%s3660_s1 + $0x620] ss:$8 sps:$4 sm:$0xff]  }
  0x5b   :  { %1702 = vmatpush1.bf16.msra.mxu1 %v2501_v34  ;;  %v2581_v34 = vld [vmem:[%s3660_s1 + $0x234] ss:$8 sps:$4 sm:$0xff]  }
  0x5c   :  { %1874 = vmatpush1.bf16.msra.mxu0 %v2504_v35  ;;  %1703 = vmatprep.subr.bf16.mxu1 %v2509_v38  ;;  %v2584_v35 = vld [vmem:[%s3660_s1 + $0x634] ss:$8 sps:$4 sm:$0xff]   ;;  %v2587_v38 = vld [vmem:[%s3660_s1 + $0x244] ss:$8 sps:$4 sm:$0xff]  }
  0x5d   :  { %1875 = vmatprep.subr.bf16.mxu0 %v2512_v39  ;;  %v2590_v39 = vld [vmem:[%s3660_s1 + $0x644] ss:$8 sps:$4 sm:$0xff]  }
  0x5f   :  { %1704 = vmatpush1.bf16.msra.mxu1 %v2507_v44  ;;  %v2591_v44 = vld [vmem:[%s3660_s1 + $0x250] ss:$8 sps:$4 sm:$0xff]  }
  0x60   :  { %1876 = vmatpush1.bf16.msra.mxu0 %v2510_v45  ;;  %1705 = vmatprep.subr.bf16.mxu1 %v2515_v46  ;;  %v2594_v45 = vld [vmem:[%s3660_s1 + $0x650] ss:$8 sps:$4 sm:$0xff]   ;;  %v2599_v46 = vld [vmem:[%s3660_s1 + $0x264] ss:$8 sps:$4 sm:$0xff]  }
  0x61   :  { %1877 = vmatprep.subr.bf16.mxu0 %v2518_v47  ;;  %v2602_v47 = vld [vmem:[%s3660_s1 + $0x664] ss:$8 sps:$4 sm:$0xff]  }
  0x63   :  { %1706 = vmatpush1.bf16.msra.mxu1 %v2513_v48  ;;  %v2597_v48 = vld [vmem:[%s3660_s1 + $0x260] ss:$8 sps:$4 sm:$0xff]  }
  0x64   :  { %1878 = vmatpush1.bf16.msra.mxu0 %v2516_v49  ;;  %1707 = vmatprep.subr.bf16.mxu1 %v2521_v50  ;;  %v2600_v49 = vld [vmem:[%s3660_s1 + $0x660] ss:$8 sps:$4 sm:$0xff]   ;;  %v2605_v50 = vld [vmem:[%s3660_s1 + $0x274] ss:$8 sps:$4 sm:$0xff]  }
  0x65   :  { %1879 = vmatprep.subr.bf16.mxu0 %v2524_v51  ;;  %v2608_v51 = vld [vmem:[%s3660_s1 + $0x674] ss:$8 sps:$4 sm:$0xff]  }
  0x67   :  { %1708 = vmatpush1.bf16.msra.mxu1 %v2519_v52  ;;  %v2603_v52 = vld [vmem:[%s3660_s1 + $0x270] ss:$8 sps:$4 sm:$0xff]  }
  0x68   :  { %1880 = vmatpush1.bf16.msra.mxu0 %v2522_v53  ;;  %1709 = vmatprep.subr.bf16.mxu1 %v2527_v54  ;;  %v2606_v53 = vld [vmem:[%s3660_s1 + $0x670] ss:$8 sps:$4 sm:$0xff]   ;;  %v2611_v54 = vld [vmem:[%s3660_s1 + $0x284] ss:$8 sps:$4 sm:$0xff]  }
  0x69   :  { %1881 = vmatprep.subr.bf16.mxu0 %v2530_v55  ;;  %v2614_v55 = vld [vmem:[%s3660_s1 + $0x684] ss:$8 sps:$4 sm:$0xff]  }
  0x6b   :  { %1710 = vmatpush1.bf16.msra.mxu1 %v2525_v56  ;;  %v2609_v56 = vld [vmem:[%s3660_s1 + $0x280] ss:$8 sps:$4 sm:$0xff]  }
  0x6c   :  { %1882 = vmatpush1.bf16.msra.mxu0 %v2528_v57  ;;  %1711 = vmatprep.subr.bf16.mxu1 %v2533_v58  ;;  %v2612_v57 = vld [vmem:[%s3660_s1 + $0x680] ss:$8 sps:$4 sm:$0xff]   ;;  %v2617_v58 = vld [vmem:[%s3660_s1 + $0x294] ss:$8 sps:$4 sm:$0xff]  }
  0x6d   :  { %1883 = vmatprep.subr.bf16.mxu0 %v2536_v59  ;;  %v2620_v59 = vld [vmem:[%s3660_s1 + $0x694] ss:$8 sps:$4 sm:$0xff]  }
  0x6f   :  { %1712 = vmatpush1.bf16.msra.mxu1 %v2531_v60  ;;  %v2615_v60 = vld [vmem:[%s3660_s1 + $0x290] ss:$8 sps:$4 sm:$0xff]  }
  0x70   :  { %1884 = vmatpush1.bf16.msra.mxu0 %v2534_v61  ;;  %1713 = vmatprep.subr.bf16.mxu1 %v2539_v62  ;;  %v2618_v61 = vld [vmem:[%s3660_s1 + $0x690] ss:$8 sps:$4 sm:$0xff]   ;;  %v2623_v62 = vld [vmem:[%s3660_s1 + $0x2a4] ss:$8 sps:$4 sm:$0xff]  }
  0x71   :  { %1885 = vmatprep.subr.bf16.mxu0 %v2542_v63  ;;  %v2626_v63 = vld [vmem:[%s3660_s1 + $0x6a4] ss:$8 sps:$4 sm:$0xff]  }
  0x73   :  { %1714 = vmatpush1.bf16.msra.mxu1 %v2537_v0  ;;  %v2621_v0 = vld [vmem:[%s3660_s1 + $0x2a0] ss:$8 sps:$4 sm:$0xff]  }
  0x74   :  { %1886 = vmatpush1.bf16.msra.mxu0 %v2540_v1  ;;  %1715 = vmatprep.subr.bf16.mxu1 %v2545_v2  ;;  %v2624_v1 = vld [vmem:[%s3660_s1 + $0x6a0] ss:$8 sps:$4 sm:$0xff]   ;;  %v2629_v2 = vld [vmem:[%s3660_s1 + $0x2b4] ss:$8 sps:$4 sm:$0xff]  }
  0x75   :  { %1887 = vmatprep.subr.bf16.mxu0 %v2548_v3  ;;  %v2632_v3 = vld [vmem:[%s3660_s1 + $0x6b4] ss:$8 sps:$4 sm:$0xff]  }
  0x77   :  { %1716 = vmatpush1.bf16.msra.mxu1 %v2543_v4  ;;  %v2627_v4 = vld [vmem:[%s3660_s1 + $0x2b0] ss:$8 sps:$4 sm:$0xff]  }
  0x78   :  { %1888 = vmatpush1.bf16.msra.mxu0 %v2546_v5  ;;  %1717 = vmatprep.subr.bf16.mxu1 %v2551_v6  ;;  %v2630_v5 = vld [vmem:[%s3660_s1 + $0x6b0] ss:$8 sps:$4 sm:$0xff]   ;;  %v2635_v6 = vld [vmem:[%s3660_s1 + $0x2c4] ss:$8 sps:$4 sm:$0xff]  }
  0x79   :  { %1889 = vmatprep.subr.bf16.mxu0 %v2554_v7  ;;  %v2638_v7 = vld [vmem:[%s3660_s1 + $0x6c4] ss:$8 sps:$4 sm:$0xff]  }
  0x7b   :  { %1718 = vmatpush1.bf16.msra.mxu1 %v2549_v8  ;;  %v2633_v8 = vld [vmem:[%s3660_s1 + $0x2c0] ss:$8 sps:$4 sm:$0xff]  }
  0x7c   :  { %1890 = vmatpush1.bf16.msra.mxu0 %v2552_v9  ;;  %1719 = vmatprep.subr.bf16.mxu1 %v2557_v10  ;;  %v2636_v9 = vld [vmem:[%s3660_s1 + $0x6c0] ss:$8 sps:$4 sm:$0xff]   ;;  %v2641_v10 = vld [vmem:[%s3660_s1 + $0x2d4] ss:$8 sps:$4 sm:$0xff]  }
  0x7d   :  { %1891 = vmatprep.subr.bf16.mxu0 %v2560_v11  ;;  %v2644_v11 = vld [vmem:[%s3660_s1 + $0x6d4] ss:$8 sps:$4 sm:$0xff]  }
  0x7f   :  { %1720 = vmatpush1.bf16.msra.mxu1 %v2555_v12  ;;  %v2639_v12 = vld [vmem:[%s3660_s1 + $0x2d0] ss:$8 sps:$4 sm:$0xff]  }
  0x80   :  { %1892 = vmatpush1.bf16.msra.mxu0 %v2558_v13  ;;  %1732 = vmatprep.subr.bf16.mxu1 %v2563_v14  ;;  %v2642_v13 = vld [vmem:[%s3660_s1 + $0x6d0] ss:$8 sps:$4 sm:$0xff]   ;;  %v2647_v14 = vld [vmem:[%s3660_s1 + $0x2e4] ss:$8 sps:$4 sm:$0xff]  }
  0x81   :  { %1904 = vmatprep.subr.bf16.mxu0 %v2566_v15  ;;  %v2650_v15 = vld [vmem:[%s3660_s1 + $0x6e4] ss:$8 sps:$4 sm:$0xff]  }
  0x82   :  { %1722 = vmatmul.mubr.bf16.vlgmr.msra.gmra.mrb[0].mxu1 %v2067_v16  ;;  %v2645_v16 = vld [vmem:[%s3660_s1 + $0x2e0] ss:$8 sps:$4 sm:$0xff]  }
  0x83   :  { %1894 = vmatmul.mubr.bf16.vlgmr.msra.gmra.mrb[0].mxu0 %v2075_v18  ;;  %1733 = vmatpush1.bf16.msra.mxu1 %v2561_v17  ;;  %v2648_v17 = vld [vmem:[%s3660_s1 + $0x6e0] ss:$8 sps:$4 sm:$0xff]   ;;  %v2653_v18 = vld [vmem:[%s3660_s1 + $0x2f4] ss:$8 sps:$4 sm:$0xff]  }
  0x84   :  { %1905 = vmatpush1.bf16.msra.mxu0 %v2564_v19  ;;  %1734 = vmatprep.subr.bf16.mxu1 %v2569_v20  ;;  %v2656_v19 = vld [vmem:[%s3660_s1 + $0x6f4] ss:$8 sps:$4 sm:$0xff]   ;;  %v2651_v20 = vld [vmem:[%s3660_s1 + $0x2f0] ss:$8 sps:$4 sm:$0xff]  }
  0x85   :  { %1906 = vmatprep.subr.bf16.mxu0 %v2572_v21  ;;  %1764 = vmatprep.mubr.bf16.mxu1 %v2070_v28  ;;  %v2654_v21 = vld [vmem:[%s3660_s1 + $0x6f0] ss:$8 sps:$4 sm:$0xff]   ;;  %v2077_v28 = vcombine.low %v3247_v29, %v3252_v30  ;;  %v2665_v29 = vld [vmem:[%s3660_s1 + $0x314] ss:$8 sps:$4 sm:$0xff]  }
  0x86   :  { %1936 = vmatprep.mubr.bf16.mxu0 %v2078_v31  ;;  %v3436_v31 = vld [vmem:[%s3661_s0 + $0x58] sm:$0xff] }
  0x87   :  { %1735 = vmatpush1.bf16.msra.mxu1 %v2567_v22  ;;  %v2659_v22 = vld [vmem:[%s3660_s1 + $0x304] ss:$8 sps:$4 sm:$0xff]   ;;  %v2668_v30 = vld [vmem:[%s3660_s1 + $0x714] ss:$8 sps:$4 sm:$0xff]  }
  0x88   :  { %1907 = vmatpush1.bf16.msra.mxu0 %v2570_v23  ;;  %1736 = vmatprep.subr.bf16.mxu1 %v2575_v26  ;;  %v2662_v23 = vld [vmem:[%s3660_s1 + $0x704] ss:$8 sps:$4 sm:$0xff]   ;;  %v3427_v26 = vld [vmem:[%s3661_s0 + $0x18] sm:$0xff] }
  0x89   :  { %1908 = vmatprep.subr.bf16.mxu0 %v2578_v27  ;;  %v2069_v27 = vcombine.low %v3229_v24, %v3234_v25  ;;  %v2657_v24 = vld [vmem:[%s3660_s1 + $0x300] ss:$8 sps:$4 sm:$0xff]  }
  0x8a   :  { %v2660_v25 = vld [vmem:[%s3660_s1 + $0x700] ss:$8 sps:$4 sm:$0xff]  }
  0x8b   :  { %1737 = vmatpush1.bf16.msra.mxu1 %v2573_v32  ;;  %v3441_v32 = vld [vmem:[%s3661_s0 + $0x38] sm:$0xff] }
  0x8c   :  { %1909 = vmatpush1.bf16.msra.mxu0 %v2576_v33  ;;  %1738 = vmatprep.subr.bf16.mxu1 %v2581_v34  ;;  %v3446_v33 = vld [vmem:[%s3661_s0 + $0x78] sm:$0xff]  ;;  %v2072_v34 = vcombine.high %v3427_v26, %v3436_v31 }
  0x8d   :  { %1910 = vmatprep.subr.bf16.mxu0 %v2584_v35  ;;  %v2080_v35 = vcombine.high %v3441_v32, %v3446_v33 }
  0x8f   :  { %1739 = vmatpush1.bf16.msra.mxu1 %v2579_v36  ;;  %v2663_v36 = vld [vmem:[%s3660_s1 + $0x310] ss:$8 sps:$4 sm:$0xff]  }
  0x90   :  { %1911 = vmatpush1.bf16.msra.mxu0 %v2582_v37  ;;  %1740 = vmatprep.subr.bf16.mxu1 %v2587_v38  ;;  %v2666_v37 = vld [vmem:[%s3660_s1 + $0x710] ss:$8 sps:$4 sm:$0xff]   ;;  %v2671_v38 = vld [vmem:[%s3660_s1 + $0x324] ss:$8 sps:$4 sm:$0xff]  }
  0x91   :  { %1912 = vmatprep.subr.bf16.mxu0 %v2590_v39  ;;  %v2674_v39 = vld [vmem:[%s3660_s1 + $0x724] ss:$8 sps:$4 sm:$0xff]  }
  0x93   :  { %1741 = vmatpush1.bf16.msra.mxu1 %v2585_v40  ;;  %v2669_v40 = vld [vmem:[%s3660_s1 + $0x320] ss:$8 sps:$4 sm:$0xff]  }
  0x94   :  { %1913 = vmatpush1.bf16.msra.mxu0 %v2588_v41  ;;  %1742 = vmatprep.subr.bf16.mxu1 %v2593_v42  ;;  %v2672_v41 = vld [vmem:[%s3660_s1 + $0x720] ss:$8 sps:$4 sm:$0xff]   ;;  %v2677_v42 = vld [vmem:[%s3660_s1 + $0x334] ss:$8 sps:$4 sm:$0xff]  }
  0x95   :  { %1914 = vmatprep.subr.bf16.mxu0 %v2596_v43  ;;  %v2680_v43 = vld [vmem:[%s3660_s1 + $0x734] ss:$8 sps:$4 sm:$0xff]  }
  0x97   :  { %1743 = vmatpush1.bf16.msra.mxu1 %v2591_v44  ;;  %v2675_v44 = vld [vmem:[%s3660_s1 + $0x330] ss:$8 sps:$4 sm:$0xff]  }
  0x98   :  { %1915 = vmatpush1.bf16.msra.mxu0 %v2594_v45  ;;  %1744 = vmatprep.subr.bf16.mxu1 %v2599_v46  ;;  %v2678_v45 = vld [vmem:[%s3660_s1 + $0x730] ss:$8 sps:$4 sm:$0xff]   ;;  %v2683_v46 = vld [vmem:[%s3660_s1 + $0x344] ss:$8 sps:$4 sm:$0xff]  }
  0x99   :  { %1916 = vmatprep.subr.bf16.mxu0 %v2602_v47  ;;  %v2686_v47 = vld [vmem:[%s3660_s1 + $0x744] ss:$8 sps:$4 sm:$0xff]  }
  0x9b   :  { %1745 = vmatpush1.bf16.msra.mxu1 %v2597_v48  ;;  %v2681_v48 = vld [vmem:[%s3660_s1 + $0x340] ss:$8 sps:$4 sm:$0xff]  }
  0x9c   :  { %1917 = vmatpush1.bf16.msra.mxu0 %v2600_v49  ;;  %1746 = vmatprep.subr.bf16.mxu1 %v2605_v50  ;;  %v2684_v49 = vld [vmem:[%s3660_s1 + $0x740] ss:$8 sps:$4 sm:$0xff]   ;;  %v2689_v50 = vld [vmem:[%s3660_s1 + $0x354] ss:$8 sps:$4 sm:$0xff]  }
  0x9d   :  { %1918 = vmatprep.subr.bf16.mxu0 %v2608_v51  ;;  %v2692_v51 = vld [vmem:[%s3660_s1 + $0x754] ss:$8 sps:$4 sm:$0xff]  }
  0x9f   :  { %1747 = vmatpush1.bf16.msra.mxu1 %v2603_v52  ;;  %v2687_v52 = vld [vmem:[%s3660_s1 + $0x350] ss:$8 sps:$4 sm:$0xff]  }
  0xa0   :  { %1919 = vmatpush1.bf16.msra.mxu0 %v2606_v53  ;;  %1748 = vmatprep.subr.bf16.mxu1 %v2611_v54  ;;  %v2690_v53 = vld [vmem:[%s3660_s1 + $0x750] ss:$8 sps:$4 sm:$0xff]   ;;  %v2695_v54 = vld [vmem:[%s3660_s1 + $0x364] ss:$8 sps:$4 sm:$0xff]  }
  0xa1   :  { %1920 = vmatprep.subr.bf16.mxu0 %v2614_v55  ;;  %v2698_v55 = vld [vmem:[%s3660_s1 + $0x764] ss:$8 sps:$4 sm:$0xff]  }
  0xa3   :  { %1749 = vmatpush1.bf16.msra.mxu1 %v2609_v56  ;;  %v2693_v56 = vld [vmem:[%s3660_s1 + $0x360] ss:$8 sps:$4 sm:$0xff]  }
  0xa4   :  { %1921 = vmatpush1.bf16.msra.mxu0 %v2612_v57  ;;  %1750 = vmatprep.subr.bf16.mxu1 %v2617_v58  ;;  %v2696_v57 = vld [vmem:[%s3660_s1 + $0x760] ss:$8 sps:$4 sm:$0xff]   ;;  %v2701_v58 = vld [vmem:[%s3660_s1 + $0x374] ss:$8 sps:$4 sm:$0xff]  }
  0xa5   :  { %1922 = vmatprep.subr.bf16.mxu0 %v2620_v59  ;;  %v2704_v59 = vld [vmem:[%s3660_s1 + $0x774] ss:$8 sps:$4 sm:$0xff]  }
  0xa7   :  { %1751 = vmatpush1.bf16.msra.mxu1 %v2615_v60  ;;  %v2699_v60 = vld [vmem:[%s3660_s1 + $0x370] ss:$8 sps:$4 sm:$0xff]  }
  0xa8   :  { %1923 = vmatpush1.bf16.msra.mxu0 %v2618_v61  ;;  %1752 = vmatprep.subr.bf16.mxu1 %v2623_v62  ;;  %v2702_v61 = vld [vmem:[%s3660_s1 + $0x770] ss:$8 sps:$4 sm:$0xff]   ;;  %v2707_v62 = vld [vmem:[%s3660_s1 + $0x384] ss:$8 sps:$4 sm:$0xff]  }
  0xa9   :  { %1924 = vmatprep.subr.bf16.mxu0 %v2626_v63  ;;  %v2710_v63 = vld [vmem:[%s3660_s1 + $0x784] ss:$8 sps:$4 sm:$0xff]  }
  0xab   :  { %1753 = vmatpush1.bf16.msra.mxu1 %v2621_v0  ;;  %v2705_v0 = vld [vmem:[%s3660_s1 + $0x380] ss:$8 sps:$4 sm:$0xff]  }
  0xac   :  { %1925 = vmatpush1.bf16.msra.mxu0 %v2624_v1  ;;  %1754 = vmatprep.subr.bf16.mxu1 %v2629_v2  ;;  %v2708_v1 = vld [vmem:[%s3660_s1 + $0x780] ss:$8 sps:$4 sm:$0xff]   ;;  %v2713_v2 = vld [vmem:[%s3660_s1 + $0x394] ss:$8 sps:$4 sm:$0xff]  }
  0xad   :  { %1926 = vmatprep.subr.bf16.mxu0 %v2632_v3  ;;  %v2716_v3 = vld [vmem:[%s3660_s1 + $0x794] ss:$8 sps:$4 sm:$0xff]  }
  0xaf   :  { %1755 = vmatpush1.bf16.msra.mxu1 %v2627_v4  ;;  %v2711_v4 = vld [vmem:[%s3660_s1 + $0x390] ss:$8 sps:$4 sm:$0xff]  }
  0xb0   :  { %1927 = vmatpush1.bf16.msra.mxu0 %v2630_v5  ;;  %1756 = vmatprep.subr.bf16.mxu1 %v2635_v6  ;;  %v2714_v5 = vld [vmem:[%s3660_s1 + $0x790] ss:$8 sps:$4 sm:$0xff]   ;;  %v2719_v6 = vld [vmem:[%s3660_s1 + $0x3a4] ss:$8 sps:$4 sm:$0xff]  }
  0xb1   :  { %1928 = vmatprep.subr.bf16.mxu0 %v2638_v7  ;;  %v2722_v7 = vld [vmem:[%s3660_s1 + $0x7a4] ss:$8 sps:$4 sm:$0xff]  }
  0xb3   :  { %1757 = vmatpush1.bf16.msra.mxu1 %v2633_v8  ;;  %v2717_v8 = vld [vmem:[%s3660_s1 + $0x3a0] ss:$8 sps:$4 sm:$0xff]  }
  0xb4   :  { %1929 = vmatpush1.bf16.msra.mxu0 %v2636_v9  ;;  %1758 = vmatprep.subr.bf16.mxu1 %v2641_v10  ;;  %v2720_v9 = vld [vmem:[%s3660_s1 + $0x7a0] ss:$8 sps:$4 sm:$0xff]   ;;  %v2725_v10 = vld [vmem:[%s3660_s1 + $0x3b4] ss:$8 sps:$4 sm:$0xff]  }
  0xb5   :  { %1930 = vmatprep.subr.bf16.mxu0 %v2644_v11  ;;  %v2728_v11 = vld [vmem:[%s3660_s1 + $0x7b4] ss:$8 sps:$4 sm:$0xff]  }
  0xb7   :  { %1759 = vmatpush1.bf16.msra.mxu1 %v2639_v12  ;;  %v2723_v12 = vld [vmem:[%s3660_s1 + $0x3b0] ss:$8 sps:$4 sm:$0xff]  }
  0xb8   :  { %1931 = vmatpush1.bf16.msra.mxu0 %v2642_v13  ;;  %1760 = vmatprep.subr.bf16.mxu1 %v2647_v14  ;;  %v2726_v13 = vld [vmem:[%s3660_s1 + $0x7b0] ss:$8 sps:$4 sm:$0xff]   ;;  %v2731_v14 = vld [vmem:[%s3660_s1 + $0x3c4] ss:$8 sps:$4 sm:$0xff]  }
  0xb9   :  { %1932 = vmatprep.subr.bf16.mxu0 %v2650_v15  ;;  %v2734_v15 = vld [vmem:[%s3660_s1 + $0x7c4] ss:$8 sps:$4 sm:$0xff]  }
  0xbb   :  { %1761 = vmatpush1.bf16.msra.mxu1 %v2645_v16  ;;  %v2729_v16 = vld [vmem:[%s3660_s1 + $0x3c0] ss:$8 sps:$4 sm:$0xff]  }
  0xbc   :  { %1933 = vmatpush1.bf16.msra.mxu0 %v2648_v17  ;;  %1762 = vmatprep.subr.bf16.mxu1 %v2653_v18  ;;  %v2732_v17 = vld [vmem:[%s3660_s1 + $0x7c0] ss:$8 sps:$4 sm:$0xff]   ;;  %v2737_v18 = vld [vmem:[%s3660_s1 + $0x3d4] ss:$8 sps:$4 sm:$0xff]  }
  0xbd   :  { %1934 = vmatprep.subr.bf16.mxu0 %v2656_v19  ;;  %v2740_v19 = vld [vmem:[%s3660_s1 + $0x7d4] ss:$8 sps:$4 sm:$0xff]  }
  0xbf   :  { %1763 = vmatpush1.bf16.msra.mxu1 %v2651_v20  ;;  %v2735_v20 = vld [vmem:[%s3660_s1 + $0x3d0] ss:$8 sps:$4 sm:$0xff]  }
  0xc0   :  { %1935 = vmatpush1.bf16.msra.mxu0 %v2654_v21  ;;  %1775 = vmatprep.subr.bf16.mxu1 %v2659_v22  ;;  %v2738_v21 = vld [vmem:[%s3660_s1 + $0x7d0] ss:$8 sps:$4 sm:$0xff]   ;;  %v2743_v22 = vld [vmem:[%s3660_s1 + $0x3e4] ss:$8 sps:$4 sm:$0xff]  }
  0xc1   :  { %1947 = vmatprep.subr.bf16.mxu0 %v2662_v23  ;;  %v2746_v23 = vld [vmem:[%s3660_s1 + $0x7e4] ss:$8 sps:$4 sm:$0xff]  }
  0xc2   :  { %1765 = vmatmul.mubr.bf16.vlgmr.msra.gmra.mrb[0].mxu1 %v2069_v27  ;;  %v2741_v27 = vld [vmem:[%s3660_s1 + $0x3e0] ss:$8 sps:$4 sm:$0xff]  }
  0xc3   :  { %1937 = vmatmul.mubr.bf16.vlgmr.msra.gmra.mrb[0].mxu0 %v2077_v28  ;;  %1776 = vmatpush1.bf16.msra.mxu1 %v2657_v24  ;;  %v2744_v28 = vld [vmem:[%s3660_s1 + $0x7e0] ss:$8 sps:$4 sm:$0xff]   ;;  %v2749_v24 = vld [vmem:[%s3660_s1 + $0x3f4] ss:$8 sps:$4 sm:$0xff]  }
  0xc4   :  { %1948 = vmatpush1.bf16.msra.mxu0 %v2660_v25  ;;  %1777 = vmatprep.subr.bf16.mxu1 %v2665_v29  ;;  %v2752_v25 = vld [vmem:[%s3660_s1 + $0x7f4] ss:$8 sps:$4 sm:$0xff]   ;;  %v2747_v29 = vld [vmem:[%s3660_s1 + $0x3f0] ss:$8 sps:$4 sm:$0xff]  }
  0xc5   :  { %1949 = vmatprep.subr.bf16.mxu0 %v2668_v30  ;;  %1807 = vmatprep.mubr.bf16.mxu1 %v2072_v34  ;;  %v2750_v30 = vld [vmem:[%s3660_s1 + $0x7f0] ss:$8 sps:$4 sm:$0xff]   ;;  %v2071_v34 = vcombine.low %v3427_v26, %v3436_v31 }
  0xc6   :  { %1979 = vmatprep.mubr.bf16.mxu0 %v2080_v35  ;;  %v2079_v35 = vcombine.low %v3441_v32, %v3446_v33 }
  0xc7   :  { %1778 = vmatpush1.bf16.msra.mxu1 %v2663_v36 }
  0xc8   :  { %1950 = vmatpush1.bf16.msra.mxu0 %v2666_v37  ;;  %1779 = vmatprep.subr.bf16.mxu1 %v2671_v38 }
  0xc9   :  { %1951 = vmatprep.subr.bf16.mxu0 %v2674_v39 }
  0xcb   :  { %1780 = vmatpush1.bf16.msra.mxu1 %v2669_v40 }
  0xcc   :  { %1952 = vmatpush1.bf16.msra.mxu0 %v2672_v41  ;;  %1781 = vmatprep.subr.bf16.mxu1 %v2677_v42 }
  0xcd   :  { %1953 = vmatprep.subr.bf16.mxu0 %v2680_v43 }
  0xcf   :  { %1782 = vmatpush1.bf16.msra.mxu1 %v2675_v44 }
  0xd0   :  { %1954 = vmatpush1.bf16.msra.mxu0 %v2678_v45  ;;  %1783 = vmatprep.subr.bf16.mxu1 %v2683_v46 }
  0xd1   :  { %1955 = vmatprep.subr.bf16.mxu0 %v2686_v47 }
  0xd3   :  { %1784 = vmatpush1.bf16.msra.mxu1 %v2681_v48 }
  0xd4   :  { %1956 = vmatpush1.bf16.msra.mxu0 %v2684_v49  ;;  %1785 = vmatprep.subr.bf16.mxu1 %v2689_v50 }
  0xd5   :  { %1957 = vmatprep.subr.bf16.mxu0 %v2692_v51 }
  0xd7   :  { %1786 = vmatpush1.bf16.msra.mxu1 %v2687_v52 }
  0xd8   :  { %1958 = vmatpush1.bf16.msra.mxu0 %v2690_v53  ;;  %1787 = vmatprep.subr.bf16.mxu1 %v2695_v54 }
  0xd9   :  { %1959 = vmatprep.subr.bf16.mxu0 %v2698_v55 }
  0xdb   :  { %1788 = vmatpush1.bf16.msra.mxu1 %v2693_v56 }
  0xdc   :  { %1960 = vmatpush1.bf16.msra.mxu0 %v2696_v57  ;;  %1789 = vmatprep.subr.bf16.mxu1 %v2701_v58 }
  0xdd   :  { %1961 = vmatprep.subr.bf16.mxu0 %v2704_v59 }
  0xdf   :  { %1790 = vmatpush1.bf16.msra.mxu1 %v2699_v60 }
  0xe0   :  { %1962 = vmatpush1.bf16.msra.mxu0 %v2702_v61  ;;  %1791 = vmatprep.subr.bf16.mxu1 %v2707_v62 }
  0xe1   :  { %1963 = vmatprep.subr.bf16.mxu0 %v2710_v63 }
  0xe3   :  { %1792 = vmatpush1.bf16.msra.mxu1 %v2705_v0 }
  0xe4   :  { %1964 = vmatpush1.bf16.msra.mxu0 %v2708_v1  ;;  %1793 = vmatprep.subr.bf16.mxu1 %v2713_v2 }
  0xe5   :  { %1965 = vmatprep.subr.bf16.mxu0 %v2716_v3 }
  0xe7   :  { %1794 = vmatpush1.bf16.msra.mxu1 %v2711_v4 }
  0xe8   :  { %1966 = vmatpush1.bf16.msra.mxu0 %v2714_v5  ;;  %1795 = vmatprep.subr.bf16.mxu1 %v2719_v6 }
  0xe9   :  { %1967 = vmatprep.subr.bf16.mxu0 %v2722_v7 }
  0xeb   :  { %1796 = vmatpush1.bf16.msra.mxu1 %v2717_v8 }
  0xec   :  { %1968 = vmatpush1.bf16.msra.mxu0 %v2720_v9  ;;  %1797 = vmatprep.subr.bf16.mxu1 %v2725_v10 }
  0xed   :  { %1969 = vmatprep.subr.bf16.mxu0 %v2728_v11 }
  0xef   :  { %1798 = vmatpush1.bf16.msra.mxu1 %v2723_v12 }
  0xf0   :  { %1970 = vmatpush1.bf16.msra.mxu0 %v2726_v13  ;;  %1799 = vmatprep.subr.bf16.mxu1 %v2731_v14 }
  0xf1   :  { %1971 = vmatprep.subr.bf16.mxu0 %v2734_v15 }
  0xf3   :  { %1800 = vmatpush1.bf16.msra.mxu1 %v2729_v16 }
  0xf4   :  { %1972 = vmatpush1.bf16.msra.mxu0 %v2732_v17  ;;  %1801 = vmatprep.subr.bf16.mxu1 %v2737_v18 }
  0xf5   :  { %1973 = vmatprep.subr.bf16.mxu0 %v2740_v19 }
  0xf7   :  { %1802 = vmatpush1.bf16.msra.mxu1 %v2735_v20 }
  0xf8   :  { %1974 = vmatpush1.bf16.msra.mxu0 %v2738_v21  ;;  %1803 = vmatprep.subr.bf16.mxu1 %v2743_v22 }
  0xf9   :  { %1975 = vmatprep.subr.bf16.mxu0 %v2746_v23 }
  0xfb   :  { %1804 = vmatpush1.bf16.msra.mxu1 %v2741_v27 }
  0xfc   :  { %1976 = vmatpush1.bf16.msra.mxu0 %v2744_v28  ;;  %1805 = vmatprep.subr.bf16.mxu1 %v2749_v24 }
  0xfd   :  { %1977 = vmatprep.subr.bf16.mxu0 %v2752_v25 }
  0xff   :  { %1806 = vmatpush1.bf16.msra.mxu1 %v2747_v29 }
 0x100   :  { %1978 = vmatpush1.bf16.msra.mxu0 %v2750_v30 }
 0x102   :  { %1808 = vmatmul.mubr.bf16.vlgmr.msra.gmra.mrb[0].mxu1 %v2071_v34 }
 0x103   :  { %1980 = vmatmul.mubr.bf16.vlgmr.msra.gmra.mrb[0].mxu0 %v2079_v35 }
 0x1d5   :  { %v1809_v36 = vpop.f32.mrb[0].mxu1 }
 0x1d6   :  { %v1981_v37 = vpop.f32.mrb[0].mxu0  ;;  %v1811_v39 = vpop.f32.mrb[1].mxu1 }
 0x1d7   :  { %v2341_v38 = vadd.f32 %v1981_v37, %v1809_v36  ;;  %v1983_v40 = vpop.f32.mrb[1].mxu0  ;;  %v1813_v42 = vpop.f32.mrb[2].mxu1 }
 0x1d8   :  { %v2342_v41 = vadd.f32 %v1983_v40, %v1811_v39  ;;  %v1985_v43 = vpop.f32.mrb[2].mxu0  ;;  %v1815_v47 = vpop.f32.mrb[3].mxu1 }
 0x1d9   :  { %v2018_v44 = vrot.slane %v2341_v38, 4  ;;  %v2031_v45 = vmul.f32 %v2341_v38, %v2341_v38  ;;  %v2343_v46 = vadd.f32 %v1985_v43, %v1813_v42  ;;  %v1987_v26 = vpop.f32.mrb[3].mxu0 }
 0x1da   :  { %v2025_v31 = vrot.slane %v2342_v41, 4  ;;  %v2032_v48 = vmul.f32 %v2342_v41, %v2342_v41  ;;  %v2344_v32 = vadd.f32 %v1987_v26, %v1815_v47  ;;  %v2339_v33 = vpack.c.bf16 %v2342_v41, %v2341_v38 }
 0x1db   :  { %v2019_v49 = vadd.f32 %v2341_v38, %v2018_v44  ;;  %v2036_v50 = vrot.slane %v2031_v45, 4 }
 0x1dc   :  { %v2026_v51 = vadd.f32 %v2342_v41, %v2025_v31  ;;  %v2043_v52 = vrot.slane %v2032_v48, 4  ;;  %v2340_v53 = vpack.c.bf16 %v2344_v32, %v2343_v46  ;;  %2002 = vst [vmem:[%s3662_s2] sm:$0xff] %v2339_v33 }
 0x1dd   :  { %v2020_v54 = vrot.slane %v2019_v49, 2  ;;  %v2037_v55 = vadd.f32 %v2036_v50, %v2031_v45 }
 0x1de   :  { %v2027_v56 = vrot.slane %v2026_v51, 2  ;;  %v2044_v57 = vadd.f32 %v2043_v52, %v2032_v48  ;;  %2003 = vst [vmem:[%s3662_s2 + $0x8] sm:$0xff] %v2340_v53 }
 0x1df   :  { %v2021_v58 = vadd.f32 %v2020_v54, %v2019_v49  ;;  %v2038_v59 = vrot.slane %v2037_v55, 2 }
 0x1e0   :  { %v2028_v60 = vadd.f32 %v2027_v56, %v2026_v51  ;;  %v2045_v61 = vrot.slane %v2044_v57, 2 }
 0x1e1   :  { %v2022_v62 = vrot.slane %v2021_v58, 1  ;;  %v2039_v63 = vadd.f32 %v2038_v59, %v2037_v55 }
 0x1e2   :  { %v2029_v0 = vrot.slane %v2028_v60, 1  ;;  %v2046_v1 = vadd.f32 %v2045_v61, %v2044_v57 }
 0x1e3   :  { %v2023_v2 = vadd.f32 %v2022_v62, %v2021_v58  ;;  %v2040_v3 = vrot.slane %v2039_v63, 1 }
 0x1e4   :  { %v2030_v4 = vadd.f32 %v2029_v0, %v2028_v60  ;;  %v2047_v5 = vrot.slane %v2046_v1, 1 }
 0x1e5   :  { %v2041_v6 = vadd.f32 %v2040_v3, %v2039_v63  ;;  %2049 = vst [vmem:[%s3663_s3] sm:$0xff] %v2023_v2 }
 0x1e6   :  { %v2048_v7 = vadd.f32 %v2047_v5, %v2046_v1  ;;  %2050 = vst [vmem:[%s3663_s3 + $0x8] sm:$0xff] %v2030_v4 }
 0x1e7   :  { %2051 = vst [vmem:[%s3664_s4] sm:$0xff] %v2041_v6 }
 0x1e8   :  { %2052 = vst [vmem:[%s3664_s4 + $0x8] sm:$0xff] %v2048_v7 }

// kernel: patchgan_forward.11
= control target key start
LH: loop header
LB: loop body
LE: loop exit
PB: predicated region body
PF: predicated region fallthrough
CT: control target
= control target key end

     0   :  { %s4714_s1 = inlined_call_operand.vmem [shape: bf16[4096,128], index: 1, kind: input, shape index: {}]   ;;  %s4715_s0 = inlined_call_operand.vmem [shape: bf16[16,4096], index: 0, kind: input, shape index: {}]   ;;  %s4716_s2 = inlined_call_operand.vmem [shape: f32[1,128], index: 2, kind: input, shape index: {}]   ;;  %s4717_s3 = inlined_call_operand.vmem [shape: f32[16,128], index: 3, kind: output, shape index: {}]  }
   0x1   :  { %v3565_v0 = vld [vmem:[%s4714_s1 + $0x40] sm:$0xff]   ;;  %v3569_v4 = vld [vmem:[%s4714_s1 + $0x48] sm:$0xff]   ;;  %v3573_v8 = vld [vmem:[%s4714_s1 + $0x50] sm:$0xff]  }
   0x2   :  { %v3566_v1 = vld [vmem:[%s4714_s1 + $0xc0] sm:$0xff]   ;;  %3213 = vmatprep.subr.bf16.mxu0 %v3565_v0  ;;  %v3570_v5 = vld [vmem:[%s4714_s1 + $0xc8] sm:$0xff]   ;;  %v3574_v9 = vld [vmem:[%s4714_s1 + $0xd0] sm:$0xff]  }
   0x3   :  { %v3567_v2 = vld [vmem:[%s4714_s1] sm:$0xff]   ;;  %3235 = vmatprep.subr.bf16.mxu1 %v3566_v1  ;;  %v3571_v6 = vld [vmem:[%s4714_s1 + $0x8] sm:$0xff]   ;;  %v3575_v10 = vld [vmem:[%s4714_s1 + $0x10] sm:$0xff]  }
   0x4   :  { %v3568_v3 = vld [vmem:[%s4714_s1 + $0x80] sm:$0xff]   ;;  %3214 = vmatpush3.bf16.msra.mxu0 %v3567_v2  ;;  %v3572_v7 = vld [vmem:[%s4714_s1 + $0x88] sm:$0xff]   ;;  %v3576_v11 = vld [vmem:[%s4714_s1 + $0x90] sm:$0xff]  }
   0x5   :  { %3236 = vmatpush3.bf16.msra.mxu1 %v3568_v3  ;;  %3215 = vmatprep.subr.bf16.mxu0 %v3569_v4  ;;  %v3577_v12 = vld [vmem:[%s4714_s1 + $0x58] sm:$0xff]   ;;  %v3581_v16 = vld [vmem:[%s4714_s1 + $0x60] sm:$0xff]   ;;  %v3585_v20 = vld [vmem:[%s4714_s1 + $0x68] sm:$0xff]  }
   0x6   :  { %3237 = vmatprep.subr.bf16.mxu1 %v3570_v5  ;;  %v3578_v13 = vld [vmem:[%s4714_s1 + $0xd8] sm:$0xff]   ;;  %v3582_v17 = vld [vmem:[%s4714_s1 + $0xe0] sm:$0xff]   ;;  %v3586_v21 = vld [vmem:[%s4714_s1 + $0xe8] sm:$0xff]  }
   0x7   :  { %v3579_v14 = vld [vmem:[%s4714_s1 + $0x18] sm:$0xff]   ;;  %v3583_v18 = vld [vmem:[%s4714_s1 + $0x20] sm:$0xff]   ;;  %v3587_v22 = vld [vmem:[%s4714_s1 + $0x28] sm:$0xff]  }
   0x8   :  { %3216 = vmatpush3.bf16.msra.mxu0 %v3571_v6  ;;  %v3580_v15 = vld [vmem:[%s4714_s1 + $0x98] sm:$0xff]   ;;  %v3584_v19 = vld [vmem:[%s4714_s1 + $0xa0] sm:$0xff]   ;;  %v3588_v23 = vld [vmem:[%s4714_s1 + $0xa8] sm:$0xff]  }
   0x9   :  { %3238 = vmatpush3.bf16.msra.mxu1 %v3572_v7  ;;  %3217 = vmatprep.subr.bf16.mxu0 %v3573_v8  ;;  %v3589_v24 = vld [vmem:[%s4714_s1 + $0x70] sm:$0xff]   ;;  %v3593_v28 = vld [vmem:[%s4714_s1 + $0x78] sm:$0xff]   ;;  %v15_v32 = vld [vmem:[%s4715_s0] sm:$0xff] }
   0xa   :  { %3239 = vmatprep.subr.bf16.mxu1 %v3574_v9  ;;  %v3590_v25 = vld [vmem:[%s4714_s1 + $0xf0] sm:$0xff]   ;;  %v3594_v29 = vld [vmem:[%s4714_s1 + $0xf8] sm:$0xff]   ;;  %v31_v33 = vld [vmem:[%s4715_s0 + $0x80] sm:$0xff] }
   0xb   :  { %v3591_v26 = vld [vmem:[%s4714_s1 + $0x30] sm:$0xff]   ;;  %v3595_v30 = vld [vmem:[%s4714_s1 + $0x38] sm:$0xff]   ;;  %v16_v34 = vld [vmem:[%s4715_s0 + $0x8] sm:$0xff]  ;;  %v2925_v35 = vcombine.low %v15_v32, %v31_v33  ;;  %v2926_v36 = vcombine.high %v15_v32, %v31_v33 }
   0xc   :  { %3218 = vmatpush3.bf16.msra.mxu0 %v3575_v10  ;;  %v3592_v27 = vld [vmem:[%s4714_s1 + $0xb0] sm:$0xff]   ;;  %v3596_v31 = vld [vmem:[%s4714_s1 + $0xb8] sm:$0xff]   ;;  %v32_v37 = vld [vmem:[%s4715_s0 + $0x88] sm:$0xff] }
   0xd   :  { %3240 = vmatpush3.bf16.msra.mxu1 %v3576_v11  ;;  %3219 = vmatprep.subr.bf16.mxu0 %v3577_v12  ;;  %v2927_v38 = vcombine.low %v16_v34, %v32_v37  ;;  %v2928_v39 = vcombine.high %v16_v34, %v32_v37  ;;  %v3597_v40 = vld [vmem:[%s4714_s1 + $0x140] sm:$0xff]   ;;  %v3601_v44 = vld [vmem:[%s4714_s1 + $0x148] sm:$0xff]   ;;  %v3605_v48 = vld [vmem:[%s4714_s1 + $0x150] sm:$0xff]  }
   0xe   :  { %3241 = vmatprep.subr.bf16.mxu1 %v3578_v13  ;;  %2294 = vmatprep.mubr.bf16.mxu0 %v2926_v36  ;;  %v3598_v41 = vld [vmem:[%s4714_s1 + $0x1c0] sm:$0xff]   ;;  %v3602_v45 = vld [vmem:[%s4714_s1 + $0x1c8] sm:$0xff]   ;;  %v3606_v49 = vld [vmem:[%s4714_s1 + $0x1d0] sm:$0xff]  }
   0xf   :  { %2335 = vmatprep.mubr.bf16.mxu1 %v2928_v39  ;;  %v3599_v42 = vld [vmem:[%s4714_s1 + $0x100] sm:$0xff]   ;;  %v3603_v46 = vld [vmem:[%s4714_s1 + $0x108] sm:$0xff]   ;;  %v3607_v50 = vld [vmem:[%s4714_s1 + $0x110] sm:$0xff]  }
  0x10   :  { %3220 = vmatpush3.bf16.msra.mxu0 %v3579_v14  ;;  %v3600_v43 = vld [vmem:[%s4714_s1 + $0x180] sm:$0xff]   ;;  %v3604_v47 = vld [vmem:[%s4714_s1 + $0x188] sm:$0xff]   ;;  %v3608_v51 = vld [vmem:[%s4714_s1 + $0x190] sm:$0xff]  }
  0x11   :  { %3242 = vmatpush3.bf16.msra.mxu1 %v3580_v15  ;;  %3221 = vmatprep.subr.bf16.mxu0 %v3581_v16  ;;  %v3609_v52 = vld [vmem:[%s4714_s1 + $0x158] sm:$0xff]   ;;  %v3613_v56 = vld [vmem:[%s4714_s1 + $0x160] sm:$0xff]   ;;  %v3617_v60 = vld [vmem:[%s4714_s1 + $0x168] sm:$0xff]  }
  0x12   :  { %3243 = vmatprep.subr.bf16.mxu1 %v3582_v17  ;;  %v3610_v53 = vld [vmem:[%s4714_s1 + $0x1d8] sm:$0xff]   ;;  %v3614_v57 = vld [vmem:[%s4714_s1 + $0x1e0] sm:$0xff]   ;;  %v3618_v61 = vld [vmem:[%s4714_s1 + $0x1e8] sm:$0xff]  }
  0x13   :  { %v3611_v54 = vld [vmem:[%s4714_s1 + $0x118] sm:$0xff]   ;;  %v3615_v58 = vld [vmem:[%s4714_s1 + $0x120] sm:$0xff]   ;;  %v3619_v62 = vld [vmem:[%s4714_s1 + $0x128] sm:$0xff]  }
  0x14   :  { %3222 = vmatpush3.bf16.msra.mxu0 %v3583_v18  ;;  %v3612_v55 = vld [vmem:[%s4714_s1 + $0x198] sm:$0xff]   ;;  %v3616_v59 = vld [vmem:[%s4714_s1 + $0x1a0] sm:$0xff]   ;;  %v3620_v63 = vld [vmem:[%s4714_s1 + $0x1a8] sm:$0xff]  }
  0x15   :  { %3244 = vmatpush3.bf16.msra.mxu1 %v3584_v19  ;;  %3223 = vmatprep.subr.bf16.mxu0 %v3585_v20  ;;  %v3621_v0 = vld [vmem:[%s4714_s1 + $0x170] sm:$0xff]   ;;  %v3625_v4 = vld [vmem:[%s4714_s1 + $0x178] sm:$0xff]   ;;  %v3629_v16 = vld [vmem:[%s4714_s1 + $0x240] sm:$0xff]  }
  0x16   :  { %3245 = vmatprep.subr.bf16.mxu1 %v3586_v21  ;;  %v3622_v1 = vld [vmem:[%s4714_s1 + $0x1f0] sm:$0xff]   ;;  %v3626_v5 = vld [vmem:[%s4714_s1 + $0x1f8] sm:$0xff]   ;;  %v3630_v17 = vld [vmem:[%s4714_s1 + $0x2c0] sm:$0xff]  }
  0x17   :  { %v3623_v2 = vld [vmem:[%s4714_s1 + $0x130] sm:$0xff]   ;;  %v3627_v6 = vld [vmem:[%s4714_s1 + $0x138] sm:$0xff]   ;;  %v3631_v18 = vld [vmem:[%s4714_s1 + $0x200] sm:$0xff]  }
  0x18   :  { %3224 = vmatpush3.bf16.msra.mxu0 %v3587_v22  ;;  %v3624_v3 = vld [vmem:[%s4714_s1 + $0x1b0] sm:$0xff]   ;;  %v3628_v7 = vld [vmem:[%s4714_s1 + $0x1b8] sm:$0xff]   ;;  %v3632_v19 = vld [vmem:[%s4714_s1 + $0x280] sm:$0xff]  }
  0x19   :  { %3246 = vmatpush3.bf16.msra.mxu1 %v3588_v23  ;;  %3225 = vmatprep.subr.bf16.mxu0 %v3589_v24  ;;  %v17_v8 = vld [vmem:[%s4715_s0 + $0x10] sm:$0xff]  ;;  %v18_v12 = vld [vmem:[%s4715_s0 + $0x18] sm:$0xff]  ;;  %v3633_v20 = vld [vmem:[%s4714_s1 + $0x248] sm:$0xff]  }
  0x1a   :  { %3247 = vmatprep.subr.bf16.mxu1 %v3590_v25  ;;  %v33_v9 = vld [vmem:[%s4715_s0 + $0x90] sm:$0xff]  ;;  %v34_v13 = vld [vmem:[%s4715_s0 + $0x98] sm:$0xff]  ;;  %v3634_v21 = vld [vmem:[%s4714_s1 + $0x2c8] sm:$0xff]  }
  0x1b   :  { %v2929_v10 = vcombine.low %v17_v8, %v33_v9  ;;  %v2930_v11 = vcombine.high %v17_v8, %v33_v9  ;;  %v2931_v14 = vcombine.low %v18_v12, %v34_v13  ;;  %v2932_v15 = vcombine.high %v18_v12, %v34_v13  ;;  %v3635_v22 = vld [vmem:[%s4714_s1 + $0x208] sm:$0xff]   ;;  %v3637_v24 = vld [vmem:[%s4714_s1 + $0x250] sm:$0xff]   ;;  %v3645_v32 = vld [vmem:[%s4714_s1 + $0x260] sm:$0xff]  }
  0x1c   :  { %3226 = vmatpush3.bf16.msra.mxu0 %v3591_v26  ;;  %v3636_v23 = vld [vmem:[%s4714_s1 + $0x288] sm:$0xff]   ;;  %v3638_v25 = vld [vmem:[%s4714_s1 + $0x2d0] sm:$0xff]   ;;  %v3646_v33 = vld [vmem:[%s4714_s1 + $0x2e0] sm:$0xff]  }
  0x1d   :  { %3248 = vmatpush3.bf16.msra.mxu1 %v3592_v27  ;;  %3227 = vmatprep.subr.bf16.mxu0 %v3593_v28  ;;  %v3639_v26 = vld [vmem:[%s4714_s1 + $0x210] sm:$0xff]   ;;  %v3641_v28 = vld [vmem:[%s4714_s1 + $0x258] sm:$0xff]   ;;  %v3647_v34 = vld [vmem:[%s4714_s1 + $0x220] sm:$0xff]  }
  0x1e   :  { %3249 = vmatprep.subr.bf16.mxu1 %v3594_v29  ;;  %v3640_v27 = vld [vmem:[%s4714_s1 + $0x290] sm:$0xff]   ;;  %v3642_v29 = vld [vmem:[%s4714_s1 + $0x2d8] sm:$0xff]   ;;  %v3649_v36 = vld [vmem:[%s4714_s1 + $0x268] sm:$0xff]  }
  0x1f   :  { %v3650_v37 = vld [vmem:[%s4714_s1 + $0x2e8] sm:$0xff]   ;;  %v3677_v8 = vld [vmem:[%s4714_s1 + $0x360] sm:$0xff]  }
  0x20   :  { %3228 = vmatpush3.bf16.msra.mxu0 %v3595_v30  ;;  %v3643_v30 = vld [vmem:[%s4714_s1 + $0x218] sm:$0xff]   ;;  %v3652_v39 = vld [vmem:[%s4714_s1 + $0x2a8] sm:$0xff]   ;;  %v3678_v9 = vld [vmem:[%s4714_s1 + $0x3e0] sm:$0xff]  }
  0x21   :  { %3250 = vmatpush3.bf16.msra.mxu1 %v3596_v31  ;;  %3257 = vmatprep.subr.bf16.mxu0 %v3597_v40  ;;  %v3644_v31 = vld [vmem:[%s4714_s1 + $0x298] sm:$0xff]   ;;  %v3653_v40 = vld [vmem:[%s4714_s1 + $0x270] sm:$0xff]   ;;  %v3681_v12 = vld [vmem:[%s4714_s1 + $0x368] sm:$0xff]  }
  0x22   :  { %3279 = vmatprep.subr.bf16.mxu1 %v3598_v41  ;;  %v3654_v41 = vld [vmem:[%s4714_s1 + $0x2f0] sm:$0xff]   ;;  %v3682_v13 = vld [vmem:[%s4714_s1 + $0x3e8] sm:$0xff]  }
  0x23   :  { %2295 = vmatmul.mubr.bf16.vlgmr.msra.gmra.mrb[0].mxu0 %v2925_v35  ;;  %v3648_v35 = vld [vmem:[%s4714_s1 + $0x2a0] sm:$0xff]  }
  0x24   :  { %2336 = vmatmul.mubr.bf16.vlgmr.msra.gmra.mrb[0].mxu1 %v2927_v38  ;;  %3258 = vmatpush3.bf16.msra.mxu0 %v3599_v42  ;;  %v3651_v38 = vld [vmem:[%s4714_s1 + $0x228] sm:$0xff]   ;;  %v3655_v42 = vld [vmem:[%s4714_s1 + $0x230] sm:$0xff]  }
  0x25   :  { %3280 = vmatpush3.bf16.msra.mxu1 %v3600_v43  ;;  %3259 = vmatprep.subr.bf16.mxu0 %v3601_v44  ;;  %v3656_v43 = vld [vmem:[%s4714_s1 + $0x2b0] sm:$0xff]   ;;  %v3657_v44 = vld [vmem:[%s4714_s1 + $0x278] sm:$0xff]  }
  0x26   :  { %3281 = vmatprep.subr.bf16.mxu1 %v3602_v45  ;;  %2376 = vmatprep.mubr.bf16.mxu0 %v2930_v11  ;;  %v3658_v45 = vld [vmem:[%s4714_s1 + $0x2f8] sm:$0xff]   ;;  %v3680_v11 = vld [vmem:[%s4714_s1 + $0x3a0] sm:$0xff]  }
  0x27   :  { %2417 = vmatprep.mubr.bf16.mxu1 %v2932_v15  ;;  %v3684_v15 = vld [vmem:[%s4714_s1 + $0x3a8] sm:$0xff]  }
  0x28   :  { %3260 = vmatpush3.bf16.msra.mxu0 %v3603_v46  ;;  %v3659_v46 = vld [vmem:[%s4714_s1 + $0x238] sm:$0xff]  }
  0x29   :  { %3282 = vmatpush3.bf16.msra.mxu1 %v3604_v47  ;;  %3261 = vmatprep.subr.bf16.mxu0 %v3605_v48  ;;  %v3660_v47 = vld [vmem:[%s4714_s1 + $0x2b8] sm:$0xff]   ;;  %v19_v48 = vld [vmem:[%s4715_s0 + $0x20] sm:$0xff] }
  0x2a   :  { %3283 = vmatprep.subr.bf16.mxu1 %v3606_v49  ;;  %v35_v49 = vld [vmem:[%s4715_s0 + $0xa0] sm:$0xff] }
  0x2c   :  { %3262 = vmatpush3.bf16.msra.mxu0 %v3607_v50  ;;  %v20_v50 = vld [vmem:[%s4715_s0 + $0x28] sm:$0xff] }
  0x2d   :  { %3284 = vmatpush3.bf16.msra.mxu1 %v3608_v51  ;;  %3263 = vmatprep.subr.bf16.mxu0 %v3609_v52  ;;  %v36_v51 = vld [vmem:[%s4715_s0 + $0xa8] sm:$0xff]  ;;  %v2933_v52 = vcombine.low %v19_v48, %v35_v49 }
  0x2e   :  { %3285 = vmatprep.subr.bf16.mxu1 %v3610_v53  ;;  %v2934_v53 = vcombine.high %v19_v48, %v35_v49  ;;  %v3709_v48 = vld [vmem:[%s4714_s1 + $0x460] sm:$0xff]  }
  0x2f   :  { %v3710_v49 = vld [vmem:[%s4714_s1 + $0x4e0] sm:$0xff]  }
  0x30   :  { %3264 = vmatpush3.bf16.msra.mxu0 %v3611_v54  ;;  %v2935_v54 = vcombine.low %v20_v50, %v36_v51 }
  0x31   :  { %3286 = vmatpush3.bf16.msra.mxu1 %v3612_v55  ;;  %3265 = vmatprep.subr.bf16.mxu0 %v3613_v56  ;;  %v2936_v55 = vcombine.high %v20_v50, %v36_v51  ;;  %v3661_v56 = vld [vmem:[%s4714_s1 + $0x340] sm:$0xff]  }
  0x32   :  { %3287 = vmatprep.subr.bf16.mxu1 %v3614_v57  ;;  %v3662_v57 = vld [vmem:[%s4714_s1 + $0x3c0] sm:$0xff]  }
  0x33   :  { %v3711_v50 = vld [vmem:[%s4714_s1 + $0x420] sm:$0xff]  }
  0x34   :  { %3266 = vmatpush3.bf16.msra.mxu0 %v3615_v58  ;;  %v3663_v58 = vld [vmem:[%s4714_s1 + $0x300] sm:$0xff]  }
  0x35   :  { %3288 = vmatpush3.bf16.msra.mxu1 %v3616_v59  ;;  %3267 = vmatprep.subr.bf16.mxu0 %v3617_v60  ;;  %v3664_v59 = vld [vmem:[%s4714_s1 + $0x380] sm:$0xff]   ;;  %v3665_v60 = vld [vmem:[%s4714_s1 + $0x348] sm:$0xff]  }
  0x36   :  { %3289 = vmatprep.subr.bf16.mxu1 %v3618_v61  ;;  %v3666_v61 = vld [vmem:[%s4714_s1 + $0x3c8] sm:$0xff]   ;;  %v3712_v51 = vld [vmem:[%s4714_s1 + $0x4a0] sm:$0xff]  }
  0x38   :  { %3268 = vmatpush3.bf16.msra.mxu0 %v3619_v62  ;;  %v3667_v62 = vld [vmem:[%s4714_s1 + $0x308] sm:$0xff]  }
  0x39   :  { %3290 = vmatpush3.bf16.msra.mxu1 %v3620_v63  ;;  %3269 = vmatprep.subr.bf16.mxu0 %v3621_v0  ;;  %v3668_v63 = vld [vmem:[%s4714_s1 + $0x388] sm:$0xff]   ;;  %v3669_v0 = vld [vmem:[%s4714_s1 + $0x350] sm:$0xff]  }
  0x3a   :  { %3291 = vmatprep.subr.bf16.mxu1 %v3622_v1  ;;  %v3670_v1 = vld [vmem:[%s4714_s1 + $0x3d0] sm:$0xff]  }
  0x3c   :  { %3270 = vmatpush3.bf16.msra.mxu0 %v3623_v2  ;;  %v3671_v2 = vld [vmem:[%s4714_s1 + $0x310] sm:$0xff]  }
  0x3d   :  { %3292 = vmatpush3.bf16.msra.mxu1 %v3624_v3  ;;  %3271 = vmatprep.subr.bf16.mxu0 %v3625_v4  ;;  %v3672_v3 = vld [vmem:[%s4714_s1 + $0x390] sm:$0xff]   ;;  %v3673_v4 = vld [vmem:[%s4714_s1 + $0x358] sm:$0xff]  }
  0x3e   :  { %3293 = vmatprep.subr.bf16.mxu1 %v3626_v5  ;;  %v3674_v5 = vld [vmem:[%s4714_s1 + $0x3d8] sm:$0xff]  }
  0x40   :  { %3272 = vmatpush3.bf16.msra.mxu0 %v3627_v6  ;;  %v3675_v6 = vld [vmem:[%s4714_s1 + $0x318] sm:$0xff]  }
  0x41   :  { %3294 = vmatpush3.bf16.msra.mxu1 %v3628_v7  ;;  %3301 = vmatprep.subr.bf16.mxu0 %v3629_v16  ;;  %v3676_v7 = vld [vmem:[%s4714_s1 + $0x398] sm:$0xff]   ;;  %v3685_v16 = vld [vmem:[%s4714_s1 + $0x370] sm:$0xff]  }
  0x42   :  { %3323 = vmatprep.subr.bf16.mxu1 %v3630_v17  ;;  %v3686_v17 = vld [vmem:[%s4714_s1 + $0x3f0] sm:$0xff]  }
  0x43   :  { %2377 = vmatmul.mubr.bf16.vlgmr.msra.gmra.mrb[4].mxu0 %v2929_v10  ;;  %v3679_v10 = vld [vmem:[%s4714_s1 + $0x320] sm:$0xff]  }
  0x44   :  { %2418 = vmatmul.mubr.bf16.vlgmr.msra.gmra.mrb[4].mxu1 %v2931_v14  ;;  %3302 = vmatpush3.bf16.msra.mxu0 %v3631_v18  ;;  %v3683_v14 = vld [vmem:[%s4714_s1 + $0x328] sm:$0xff]   ;;  %v3687_v18 = vld [vmem:[%s4714_s1 + $0x330] sm:$0xff]  }
  0x45   :  { %3324 = vmatpush3.bf16.msra.mxu1 %v3632_v19  ;;  %3303 = vmatprep.subr.bf16.mxu0 %v3633_v20  ;;  %v3688_v19 = vld [vmem:[%s4714_s1 + $0x3b0] sm:$0xff]   ;;  %v3689_v20 = vld [vmem:[%s4714_s1 + $0x378] sm:$0xff]  }
  0x46   :  { %3325 = vmatprep.subr.bf16.mxu1 %v3634_v21  ;;  %2458 = vmatprep.mubr.bf16.mxu0 %v2934_v53  ;;  %v3690_v21 = vld [vmem:[%s4714_s1 + $0x3f8] sm:$0xff]   ;;  %v3714_v53 = vld [vmem:[%s4714_s1 + $0x4e8] sm:$0xff]  }
  0x47   :  { %2499 = vmatprep.mubr.bf16.mxu1 %v2936_v55  ;;  %v3716_v55 = vld [vmem:[%s4714_s1 + $0x4a8] sm:$0xff]  }
  0x48   :  { %3304 = vmatpush3.bf16.msra.mxu0 %v3635_v22  ;;  %v3691_v22 = vld [vmem:[%s4714_s1 + $0x338] sm:$0xff]  }
  0x49   :  { %3326 = vmatpush3.bf16.msra.mxu1 %v3636_v23  ;;  %3305 = vmatprep.subr.bf16.mxu0 %v3637_v24  ;;  %v3692_v23 = vld [vmem:[%s4714_s1 + $0x3b8] sm:$0xff]   ;;  %v21_v24 = vld [vmem:[%s4715_s0 + $0x30] sm:$0xff] }
  0x4a   :  { %3327 = vmatprep.subr.bf16.mxu1 %v3638_v25  ;;  %v37_v25 = vld [vmem:[%s4715_s0 + $0xb0] sm:$0xff] }
  0x4c   :  { %3306 = vmatpush3.bf16.msra.mxu0 %v3639_v26  ;;  %v22_v26 = vld [vmem:[%s4715_s0 + $0x38] sm:$0xff] }
  0x4d   :  { %3328 = vmatpush3.bf16.msra.mxu1 %v3640_v27  ;;  %3307 = vmatprep.subr.bf16.mxu0 %v3641_v28  ;;  %v2937_v27 = vcombine.low %v21_v24, %v37_v25  ;;  %v2938_v28 = vcombine.high %v21_v24, %v37_v25  ;;  %v3741_v24 = vld [vmem:[%s4714_s1 + $0x560] sm:$0xff]  }
  0x4e   :  { %3329 = vmatprep.subr.bf16.mxu1 %v3642_v29  ;;  %v38_v29 = vld [vmem:[%s4715_s0 + $0xb8] sm:$0xff]  ;;  %v3742_v25 = vld [vmem:[%s4714_s1 + $0x5e0] sm:$0xff]  }
  0x50   :  { %3308 = vmatpush3.bf16.msra.mxu0 %v3643_v30  ;;  %v2939_v30 = vcombine.low %v22_v26, %v38_v29 }
  0x51   :  { %3330 = vmatpush3.bf16.msra.mxu1 %v3644_v31  ;;  %3309 = vmatprep.subr.bf16.mxu0 %v3645_v32  ;;  %v2940_v31 = vcombine.high %v22_v26, %v38_v29  ;;  %v3693_v32 = vld [vmem:[%s4714_s1 + $0x440] sm:$0xff]   ;;  %v3746_v29 = vld [vmem:[%s4714_s1 + $0x5e8] sm:$0xff]  }
  0x52   :  { %3331 = vmatprep.subr.bf16.mxu1 %v3646_v33  ;;  %v3694_v33 = vld [vmem:[%s4714_s1 + $0x4c0] sm:$0xff]  }
  0x53   :  { %v3743_v26 = vld [vmem:[%s4714_s1 + $0x520] sm:$0xff]  }
  0x54   :  { %3310 = vmatpush3.bf16.msra.mxu0 %v3647_v34  ;;  %v3695_v34 = vld [vmem:[%s4714_s1 + $0x400] sm:$0xff]  }
  0x55   :  { %3332 = vmatpush3.bf16.msra.mxu1 %v3648_v35  ;;  %3311 = vmatprep.subr.bf16.mxu0 %v3649_v36  ;;  %v3696_v35 = vld [vmem:[%s4714_s1 + $0x480] sm:$0xff]   ;;  %v3697_v36 = vld [vmem:[%s4714_s1 + $0x448] sm:$0xff]  }
  0x56   :  { %3333 = vmatprep.subr.bf16.mxu1 %v3650_v37  ;;  %v3698_v37 = vld [vmem:[%s4714_s1 + $0x4c8] sm:$0xff]  }
  0x58   :  { %3312 = vmatpush3.bf16.msra.mxu0 %v3651_v38  ;;  %v3699_v38 = vld [vmem:[%s4714_s1 + $0x408] sm:$0xff]  }
  0x59   :  { %3334 = vmatpush3.bf16.msra.mxu1 %v3652_v39  ;;  %3313 = vmatprep.subr.bf16.mxu0 %v3653_v40  ;;  %v3700_v39 = vld [vmem:[%s4714_s1 + $0x488] sm:$0xff]   ;;  %v3701_v40 = vld [vmem:[%s4714_s1 + $0x450] sm:$0xff]  }
  0x5a   :  { %3335 = vmatprep.subr.bf16.mxu1 %v3654_v41  ;;  %v3702_v41 = vld [vmem:[%s4714_s1 + $0x4d0] sm:$0xff]  }
  0x5c   :  { %3314 = vmatpush3.bf16.msra.mxu0 %v3655_v42  ;;  %v3703_v42 = vld [vmem:[%s4714_s1 + $0x410] sm:$0xff]  }
  0x5d   :  { %3336 = vmatpush3.bf16.msra.mxu1 %v3656_v43  ;;  %3315 = vmatprep.subr.bf16.mxu0 %v3657_v44  ;;  %v3704_v43 = vld [vmem:[%s4714_s1 + $0x490] sm:$0xff]   ;;  %v3705_v44 = vld [vmem:[%s4714_s1 + $0x458] sm:$0xff]  }
  0x5e   :  { %3337 = vmatprep.subr.bf16.mxu1 %v3658_v45  ;;  %v3706_v45 = vld [vmem:[%s4714_s1 + $0x4d8] sm:$0xff]  }
  0x60   :  { %3316 = vmatpush3.bf16.msra.mxu0 %v3659_v46  ;;  %v3707_v46 = vld [vmem:[%s4714_s1 + $0x418] sm:$0xff]  }
  0x61   :  { %3338 = vmatpush3.bf16.msra.mxu1 %v3660_v47  ;;  %3345 = vmatprep.subr.bf16.mxu0 %v3661_v56  ;;  %v3708_v47 = vld [vmem:[%s4714_s1 + $0x498] sm:$0xff]   ;;  %v3717_v56 = vld [vmem:[%s4714_s1 + $0x470] sm:$0xff]  }
  0x62   :  { %3367 = vmatprep.subr.bf16.mxu1 %v3662_v57  ;;  %v3718_v57 = vld [vmem:[%s4714_s1 + $0x4f0] sm:$0xff]  }
  0x63   :  { %2459 = vmatmul.mubr.bf16.vlgmr.msra.gmra.mrb[8].mxu0 %v2933_v52  ;;  %v3713_v52 = vld [vmem:[%s4714_s1 + $0x468] sm:$0xff]  }
  0x64   :  { %2500 = vmatmul.mubr.bf16.vlgmr.msra.gmra.mrb[8].mxu1 %v2935_v54  ;;  %3346 = vmatpush3.bf16.msra.mxu0 %v3663_v58  ;;  %v3715_v54 = vld [vmem:[%s4714_s1 + $0x428] sm:$0xff]   ;;  %v3719_v58 = vld [vmem:[%s4714_s1 + $0x430] sm:$0xff]  }
  0x65   :  { %3368 = vmatpush3.bf16.msra.mxu1 %v3664_v59  ;;  %3347 = vmatprep.subr.bf16.mxu0 %v3665_v60  ;;  %v3720_v59 = vld [vmem:[%s4714_s1 + $0x4b0] sm:$0xff]   ;;  %v3721_v60 = vld [vmem:[%s4714_s1 + $0x478] sm:$0xff]  }
  0x66   :  { %3369 = vmatprep.subr.bf16.mxu1 %v3666_v61  ;;  %2540 = vmatprep.mubr.bf16.mxu0 %v2938_v28  ;;  %v3722_v61 = vld [vmem:[%s4714_s1 + $0x4f8] sm:$0xff]   ;;  %v3745_v28 = vld [vmem:[%s4714_s1 + $0x568] sm:$0xff]  }
  0x67   :  { %2581 = vmatprep.mubr.bf16.mxu1 %v2940_v31  ;;  %v3748_v31 = vld [vmem:[%s4714_s1 + $0x5a8] sm:$0xff]  }
  0x68   :  { %3348 = vmatpush3.bf16.msra.mxu0 %v3667_v62  ;;  %v3723_v62 = vld [vmem:[%s4714_s1 + $0x438] sm:$0xff]  }
  0x69   :  { %3370 = vmatpush3.bf16.msra.mxu1 %v3668_v63  ;;  %3349 = vmatprep.subr.bf16.mxu0 %v3669_v0  ;;  %v3724_v63 = vld [vmem:[%s4714_s1 + $0x4b8] sm:$0xff]   ;;  %v23_v0 = vld [vmem:[%s4715_s0 + $0x40] sm:$0xff] }
  0x6a   :  { %3371 = vmatprep.subr.bf16.mxu1 %v3670_v1  ;;  %v39_v1 = vld [vmem:[%s4715_s0 + $0xc0] sm:$0xff] }
  0x6c   :  { %3350 = vmatpush3.bf16.msra.mxu0 %v3671_v2  ;;  %v2941_v2 = vcombine.low %v23_v0, %v39_v1 }
  0x6d   :  { %3372 = vmatpush3.bf16.msra.mxu1 %v3672_v3  ;;  %3351 = vmatprep.subr.bf16.mxu0 %v3673_v4  ;;  %v2942_v3 = vcombine.high %v23_v0, %v39_v1  ;;  %v24_v4 = vld [vmem:[%s4715_s0 + $0x48] sm:$0xff]  ;;  %v3773_v0 = vld [vmem:[%s4714_s1 + $0x660] sm:$0xff]  }
  0x6e   :  { %3373 = vmatprep.subr.bf16.mxu1 %v3674_v5  ;;  %v40_v5 = vld [vmem:[%s4715_s0 + $0xc8] sm:$0xff]  ;;  %v3774_v1 = vld [vmem:[%s4714_s1 + $0x6e0] sm:$0xff]  }
  0x70   :  { %3352 = vmatpush3.bf16.msra.mxu0 %v3675_v6  ;;  %v2943_v6 = vcombine.low %v24_v4, %v40_v5 }
  0x71   :  { %3374 = vmatpush3.bf16.msra.mxu1 %v3676_v7  ;;  %3353 = vmatprep.subr.bf16.mxu0 %v3677_v8  ;;  %v2944_v7 = vcombine.high %v24_v4, %v40_v5  ;;  %v3725_v8 = vld [vmem:[%s4714_s1 + $0x540] sm:$0xff]   ;;  %v3777_v4 = vld [vmem:[%s4714_s1 + $0x668] sm:$0xff]  }
  0x72   :  { %3375 = vmatprep.subr.bf16.mxu1 %v3678_v9  ;;  %v3726_v9 = vld [vmem:[%s4714_s1 + $0x5c0] sm:$0xff]   ;;  %v3778_v5 = vld [vmem:[%s4714_s1 + $0x6e8] sm:$0xff]  }
  0x74   :  { %3354 = vmatpush3.bf16.msra.mxu0 %v3679_v10  ;;  %v3727_v10 = vld [vmem:[%s4714_s1 + $0x500] sm:$0xff]  }
  0x75   :  { %3376 = vmatpush3.bf16.msra.mxu1 %v3680_v11  ;;  %3355 = vmatprep.subr.bf16.mxu0 %v3681_v12  ;;  %v3728_v11 = vld [vmem:[%s4714_s1 + $0x580] sm:$0xff]   ;;  %v3729_v12 = vld [vmem:[%s4714_s1 + $0x548] sm:$0xff]  }
  0x76   :  { %3377 = vmatprep.subr.bf16.mxu1 %v3682_v13  ;;  %v3730_v13 = vld [vmem:[%s4714_s1 + $0x5c8] sm:$0xff]  }
  0x78   :  { %3356 = vmatpush3.bf16.msra.mxu0 %v3683_v14  ;;  %v3731_v14 = vld [vmem:[%s4714_s1 + $0x508] sm:$0xff]  }
  0x79   :  { %3378 = vmatpush3.bf16.msra.mxu1 %v3684_v15  ;;  %3357 = vmatprep.subr.bf16.mxu0 %v3685_v16  ;;  %v3732_v15 = vld [vmem:[%s4714_s1 + $0x588] sm:$0xff]   ;;  %v3733_v16 = vld [vmem:[%s4714_s1 + $0x550] sm:$0xff]  }
  0x7a   :  { %3379 = vmatprep.subr.bf16.mxu1 %v3686_v17  ;;  %v3734_v17 = vld [vmem:[%s4714_s1 + $0x5d0] sm:$0xff]  }
  0x7c   :  { %3358 = vmatpush3.bf16.msra.mxu0 %v3687_v18  ;;  %v3735_v18 = vld [vmem:[%s4714_s1 + $0x510] sm:$0xff]  }
  0x7d   :  { %3380 = vmatpush3.bf16.msra.mxu1 %v3688_v19  ;;  %3359 = vmatprep.subr.bf16.mxu0 %v3689_v20  ;;  %v3736_v19 = vld [vmem:[%s4714_s1 + $0x590] sm:$0xff]   ;;  %v3737_v20 = vld [vmem:[%s4714_s1 + $0x558] sm:$0xff]  }
  0x7e   :  { %3381 = vmatprep.subr.bf16.mxu1 %v3690_v21  ;;  %v3738_v21 = vld [vmem:[%s4714_s1 + $0x5d8] sm:$0xff]  }
  0x80   :  { %3360 = vmatpush3.bf16.msra.mxu0 %v3691_v22  ;;  %v3739_v22 = vld [vmem:[%s4714_s1 + $0x518] sm:$0xff]  }
  0x81   :  { %3382 = vmatpush3.bf16.msra.mxu1 %v3692_v23  ;;  %3389 = vmatprep.subr.bf16.mxu0 %v3693_v32  ;;  %v3740_v23 = vld [vmem:[%s4714_s1 + $0x598] sm:$0xff]   ;;  %v3749_v32 = vld [vmem:[%s4714_s1 + $0x570] sm:$0xff]  }
  0x82   :  { %3411 = vmatprep.subr.bf16.mxu1 %v3694_v33  ;;  %v3750_v33 = vld [vmem:[%s4714_s1 + $0x5f0] sm:$0xff]  }
  0x83   :  { %2541 = vmatmul.mubr.bf16.vlgmr.msra.gmra.mrb[12].mxu0 %v2937_v27  ;;  %v3744_v27 = vld [vmem:[%s4714_s1 + $0x5a0] sm:$0xff]  }
  0x84   :  { %2582 = vmatmul.mubr.bf16.vlgmr.msra.gmra.mrb[12].mxu1 %v2939_v30  ;;  %3390 = vmatpush3.bf16.msra.mxu0 %v3695_v34  ;;  %v3747_v30 = vld [vmem:[%s4714_s1 + $0x528] sm:$0xff]   ;;  %v3751_v34 = vld [vmem:[%s4714_s1 + $0x530] sm:$0xff]  }
  0x85   :  { %3412 = vmatpush3.bf16.msra.mxu1 %v3696_v35  ;;  %3391 = vmatprep.subr.bf16.mxu0 %v3697_v36  ;;  %v3752_v35 = vld [vmem:[%s4714_s1 + $0x5b0] sm:$0xff]   ;;  %v3753_v36 = vld [vmem:[%s4714_s1 + $0x578] sm:$0xff]  }
  0x86   :  { %3413 = vmatprep.subr.bf16.mxu1 %v3698_v37  ;;  %2622 = vmatprep.mubr.bf16.mxu0 %v2942_v3  ;;  %v3754_v37 = vld [vmem:[%s4714_s1 + $0x5f8] sm:$0xff]   ;;  %v3776_v3 = vld [vmem:[%s4714_s1 + $0x6a0] sm:$0xff]  }
  0x87   :  { %2663 = vmatprep.mubr.bf16.mxu1 %v2944_v7  ;;  %v3780_v7 = vld [vmem:[%s4714_s1 + $0x6a8] sm:$0xff]  }
  0x88   :  { %3392 = vmatpush3.bf16.msra.mxu0 %v3699_v38  ;;  %v3755_v38 = vld [vmem:[%s4714_s1 + $0x538] sm:$0xff]  }
  0x89   :  { %3414 = vmatpush3.bf16.msra.mxu1 %v3700_v39  ;;  %3393 = vmatprep.subr.bf16.mxu0 %v3701_v40  ;;  %v3756_v39 = vld [vmem:[%s4714_s1 + $0x5b8] sm:$0xff]   ;;  %v25_v40 = vld [vmem:[%s4715_s0 + $0x50] sm:$0xff] }
  0x8a   :  { %3415 = vmatprep.subr.bf16.mxu1 %v3702_v41  ;;  %v41_v41 = vld [vmem:[%s4715_s0 + $0xd0] sm:$0xff] }
  0x8c   :  { %3394 = vmatpush3.bf16.msra.mxu0 %v3703_v42  ;;  %v26_v42 = vld [vmem:[%s4715_s0 + $0x58] sm:$0xff] }
  0x8d   :  { %3416 = vmatpush3.bf16.msra.mxu1 %v3704_v43  ;;  %3395 = vmatprep.subr.bf16.mxu0 %v3705_v44  ;;  %v42_v43 = vld [vmem:[%s4715_s0 + $0xd8] sm:$0xff]  ;;  %v2945_v44 = vcombine.low %v25_v40, %v41_v41 }
  0x8e   :  { %3417 = vmatprep.subr.bf16.mxu1 %v3706_v45  ;;  %v2946_v45 = vcombine.high %v25_v40, %v41_v41  ;;  %v3804_v41 = vld [vmem:[%s4714_s1 + $0x798] sm:$0xff]  }
  0x90   :  { %3396 = vmatpush3.bf16.msra.mxu0 %v3707_v46  ;;  %v2947_v46 = vcombine.low %v26_v42, %v42_v43 }
  0x91   :  { %3418 = vmatpush3.bf16.msra.mxu1 %v3708_v47  ;;  %3397 = vmatprep.subr.bf16.mxu0 %v3709_v48  ;;  %v2948_v47 = vcombine.high %v26_v42, %v42_v43  ;;  %v3757_v48 = vld [vmem:[%s4714_s1 + $0x640] sm:$0xff]  }
  0x92   :  { %3419 = vmatprep.subr.bf16.mxu1 %v3710_v49  ;;  %v3758_v49 = vld [vmem:[%s4714_s1 + $0x6c0] sm:$0xff]  }
  0x93   :  { %v3805_v43 = vld [vmem:[%s4714_s1 + $0x760] sm:$0xff]  }
  0x94   :  { %3398 = vmatpush3.bf16.msra.mxu0 %v3711_v50  ;;  %v3759_v50 = vld [vmem:[%s4714_s1 + $0x600] sm:$0xff]  }
  0x95   :  { %3420 = vmatpush3.bf16.msra.mxu1 %v3712_v51  ;;  %3399 = vmatprep.subr.bf16.mxu0 %v3713_v52  ;;  %v3760_v51 = vld [vmem:[%s4714_s1 + $0x680] sm:$0xff]   ;;  %v3761_v52 = vld [vmem:[%s4714_s1 + $0x648] sm:$0xff]  }
  0x96   :  { %3421 = vmatprep.subr.bf16.mxu1 %v3714_v53  ;;  %v3762_v53 = vld [vmem:[%s4714_s1 + $0x6c8] sm:$0xff]  }
  0x98   :  { %3400 = vmatpush3.bf16.msra.mxu0 %v3715_v54  ;;  %v3763_v54 = vld [vmem:[%s4714_s1 + $0x608] sm:$0xff]  }
  0x99   :  { %3422 = vmatpush3.bf16.msra.mxu1 %v3716_v55  ;;  %3401 = vmatprep.subr.bf16.mxu0 %v3717_v56  ;;  %v3764_v55 = vld [vmem:[%s4714_s1 + $0x688] sm:$0xff]   ;;  %v3765_v56 = vld [vmem:[%s4714_s1 + $0x650] sm:$0xff]  }
  0x9a   :  { %3423 = vmatprep.subr.bf16.mxu1 %v3718_v57  ;;  %v3766_v57 = vld [vmem:[%s4714_s1 + $0x6d0] sm:$0xff]  }
  0x9c   :  { %3402 = vmatpush3.bf16.msra.mxu0 %v3719_v58  ;;  %v3767_v58 = vld [vmem:[%s4714_s1 + $0x610] sm:$0xff]  }
  0x9d   :  { %3424 = vmatpush3.bf16.msra.mxu1 %v3720_v59  ;;  %3403 = vmatprep.subr.bf16.mxu0 %v3721_v60  ;;  %v3768_v59 = vld [vmem:[%s4714_s1 + $0x690] sm:$0xff]   ;;  %v3769_v60 = vld [vmem:[%s4714_s1 + $0x658] sm:$0xff]  }
  0x9e   :  { %3425 = vmatprep.subr.bf16.mxu1 %v3722_v61  ;;  %v3770_v61 = vld [vmem:[%s4714_s1 + $0x6d8] sm:$0xff]  }
  0xa0   :  { %3404 = vmatpush3.bf16.msra.mxu0 %v3723_v62  ;;  %v3771_v62 = vld [vmem:[%s4714_s1 + $0x618] sm:$0xff]  }
  0xa1   :  { %3426 = vmatpush3.bf16.msra.mxu1 %v3724_v63  ;;  %3433 = vmatprep.subr.bf16.mxu0 %v3725_v8  ;;  %v3772_v63 = vld [vmem:[%s4714_s1 + $0x698] sm:$0xff]   ;;  %v3781_v8 = vld [vmem:[%s4714_s1 + $0x670] sm:$0xff]  }
  0xa2   :  { %3455 = vmatprep.subr.bf16.mxu1 %v3726_v9  ;;  %v3782_v9 = vld [vmem:[%s4714_s1 + $0x6f0] sm:$0xff]  }
  0xa3   :  { %2623 = vmatmul.mubr.bf16.vlgmr.msra.gmra.mrb[16].mxu0 %v2941_v2  ;;  %v3775_v2 = vld [vmem:[%s4714_s1 + $0x620] sm:$0xff]  }
  0xa4   :  { %2664 = vmatmul.mubr.bf16.vlgmr.msra.gmra.mrb[16].mxu1 %v2943_v6  ;;  %3434 = vmatpush3.bf16.msra.mxu0 %v3727_v10  ;;  %v3779_v6 = vld [vmem:[%s4714_s1 + $0x628] sm:$0xff]   ;;  %v3783_v10 = vld [vmem:[%s4714_s1 + $0x630] sm:$0xff]  }
  0xa5   :  { %3456 = vmatpush3.bf16.msra.mxu1 %v3728_v11  ;;  %3435 = vmatprep.subr.bf16.mxu0 %v3729_v12  ;;  %v3784_v11 = vld [vmem:[%s4714_s1 + $0x6b0] sm:$0xff]   ;;  %v3785_v12 = vld [vmem:[%s4714_s1 + $0x678] sm:$0xff]  }
  0xa6   :  { %3457 = vmatprep.subr.bf16.mxu1 %v3730_v13  ;;  %2704 = vmatprep.mubr.bf16.mxu0 %v2946_v45  ;;  %v3786_v13 = vld [vmem:[%s4714_s1 + $0x6f8] sm:$0xff]  }
  0xa7   :  { %2745 = vmatprep.mubr.bf16.mxu1 %v2948_v47 }
  0xa8   :  { %3436 = vmatpush3.bf16.msra.mxu0 %v3731_v14  ;;  %v3787_v14 = vld [vmem:[%s4714_s1 + $0x638] sm:$0xff]  }
  0xa9   :  { %3458 = vmatpush3.bf16.msra.mxu1 %v3732_v15  ;;  %3437 = vmatprep.subr.bf16.mxu0 %v3733_v16  ;;  %v3788_v15 = vld [vmem:[%s4714_s1 + $0x6b8] sm:$0xff]   ;;  %v27_v16 = vld [vmem:[%s4715_s0 + $0x60] sm:$0xff] }
  0xaa   :  { %3459 = vmatprep.subr.bf16.mxu1 %v3734_v17  ;;  %v43_v17 = vld [vmem:[%s4715_s0 + $0xe0] sm:$0xff] }
  0xac   :  { %3438 = vmatpush3.bf16.msra.mxu0 %v3735_v18  ;;  %v28_v18 = vld [vmem:[%s4715_s0 + $0x68] sm:$0xff] }
  0xad   :  { %3460 = vmatpush3.bf16.msra.mxu1 %v3736_v19  ;;  %3439 = vmatprep.subr.bf16.mxu0 %v3737_v20  ;;  %v2949_v19 = vcombine.low %v27_v16, %v43_v17  ;;  %v2950_v20 = vcombine.high %v27_v16, %v43_v17 }
  0xae   :  { %3461 = vmatprep.subr.bf16.mxu1 %v3738_v21  ;;  %v44_v21 = vld [vmem:[%s4715_s0 + $0xe8] sm:$0xff] }
  0xb0   :  { %3440 = vmatpush3.bf16.msra.mxu0 %v3739_v22  ;;  %v2951_v22 = vcombine.low %v28_v18, %v44_v21 }
  0xb1   :  { %3462 = vmatpush3.bf16.msra.mxu1 %v3740_v23  ;;  %3441 = vmatprep.subr.bf16.mxu0 %v3741_v24  ;;  %v2952_v23 = vcombine.high %v28_v18, %v44_v21  ;;  %v3789_v24 = vld [vmem:[%s4714_s1 + $0x740] sm:$0xff]  }
  0xb2   :  { %3463 = vmatprep.subr.bf16.mxu1 %v3742_v25  ;;  %v3790_v25 = vld [vmem:[%s4714_s1 + $0x7c0] sm:$0xff]  }
  0xb4   :  { %3442 = vmatpush3.bf16.msra.mxu0 %v3743_v26  ;;  %v3791_v26 = vld [vmem:[%s4714_s1 + $0x700] sm:$0xff]  }
  0xb5   :  { %3464 = vmatpush3.bf16.msra.mxu1 %v3744_v27  ;;  %3443 = vmatprep.subr.bf16.mxu0 %v3745_v28  ;;  %v3792_v27 = vld [vmem:[%s4714_s1 + $0x780] sm:$0xff]   ;;  %v3793_v28 = vld [vmem:[%s4714_s1 + $0x748] sm:$0xff]  }
  0xb6   :  { %3465 = vmatprep.subr.bf16.mxu1 %v3746_v29  ;;  %v3794_v29 = vld [vmem:[%s4714_s1 + $0x7c8] sm:$0xff]  }
  0xb8   :  { %3444 = vmatpush3.bf16.msra.mxu0 %v3747_v30  ;;  %v3795_v30 = vld [vmem:[%s4714_s1 + $0x708] sm:$0xff]  }
  0xb9   :  { %3466 = vmatpush3.bf16.msra.mxu1 %v3748_v31  ;;  %3445 = vmatprep.subr.bf16.mxu0 %v3749_v32  ;;  %v3796_v31 = vld [vmem:[%s4714_s1 + $0x788] sm:$0xff]   ;;  %v3797_v32 = vld [vmem:[%s4714_s1 + $0x750] sm:$0xff]  }
  0xba   :  { %3467 = vmatprep.subr.bf16.mxu1 %v3750_v33  ;;  %v3798_v33 = vld [vmem:[%s4714_s1 + $0x7d0] sm:$0xff]  }
  0xbc   :  { %3446 = vmatpush3.bf16.msra.mxu0 %v3751_v34  ;;  %v3799_v34 = vld [vmem:[%s4714_s1 + $0x710] sm:$0xff]  }
  0xbd   :  { %3468 = vmatpush3.bf16.msra.mxu1 %v3752_v35  ;;  %3447 = vmatprep.subr.bf16.mxu0 %v3753_v36  ;;  %v3800_v35 = vld [vmem:[%s4714_s1 + $0x790] sm:$0xff]   ;;  %v3801_v36 = vld [vmem:[%s4714_s1 + $0x758] sm:$0xff]  }
  0xbe   :  { %3469 = vmatprep.subr.bf16.mxu1 %v3754_v37  ;;  %v3802_v37 = vld [vmem:[%s4714_s1 + $0x7d8] sm:$0xff]  }
  0xc0   :  { %3448 = vmatpush3.bf16.msra.mxu0 %v3755_v38 }
  0xc1   :  { %3470 = vmatpush3.bf16.msra.mxu1 %v3756_v39  ;;  %3477 = vmatprep.subr.bf16.mxu0 %v3757_v48  ;;  %v3803_v39 = vld [vmem:[%s4714_s1 + $0x718] sm:$0xff]  }
  0xc2   :  { %3499 = vmatprep.subr.bf16.mxu1 %v3758_v49  ;;  %v3807_v49 = vld [vmem:[%s4714_s1 + $0x720] sm:$0xff]  }
  0xc3   :  { %2705 = vmatmul.mubr.bf16.vlgmr.msra.gmra.mrb[20].mxu0 %v2945_v44 }
  0xc4   :  { %2746 = vmatmul.mubr.bf16.vlgmr.msra.gmra.mrb[20].mxu1 %v2947_v46  ;;  %3478 = vmatpush3.bf16.msra.mxu0 %v3759_v50  ;;  %v3806_v46 = vld [vmem:[%s4714_s1 + $0x7e0] sm:$0xff]  }
  0xc5   :  { %3500 = vmatpush3.bf16.msra.mxu1 %v3760_v51  ;;  %3479 = vmatprep.subr.bf16.mxu0 %v3761_v52  ;;  %v3808_v51 = vld [vmem:[%s4714_s1 + $0x7a0] sm:$0xff]  }
  0xc6   :  { %3501 = vmatprep.subr.bf16.mxu1 %v3762_v53  ;;  %2786 = vmatprep.mubr.bf16.mxu0 %v2950_v20  ;;  %v2924_v52 = vld [vmem:[%s4716_s2] ss:$0 sm:$0xff] }
  0xc7   :  { %2827 = vmatprep.mubr.bf16.mxu1 %v2952_v23 }
  0xc8   :  { %3480 = vmatpush3.bf16.msra.mxu0 %v3763_v54 }
  0xc9   :  { %3502 = vmatpush3.bf16.msra.mxu1 %v3764_v55  ;;  %3481 = vmatprep.subr.bf16.mxu0 %v3765_v56  ;;  %v3809_v55 = vld [vmem:[%s4714_s1 + $0x768] sm:$0xff]  }
  0xca   :  { %3503 = vmatprep.subr.bf16.mxu1 %v3766_v57 }
  0xcc   :  { %3482 = vmatpush3.bf16.msra.mxu0 %v3767_v58  ;;  %v3810_v58 = vld [vmem:[%s4714_s1 + $0x7e8] sm:$0xff]  }
  0xcd   :  { %3504 = vmatpush3.bf16.msra.mxu1 %v3768_v59  ;;  %3483 = vmatprep.subr.bf16.mxu0 %v3769_v60 }
  0xce   :  { %3505 = vmatprep.subr.bf16.mxu1 %v3770_v61  ;;  %v3811_v61 = vld [vmem:[%s4714_s1 + $0x728] sm:$0xff]  }
  0xd0   :  { %3484 = vmatpush3.bf16.msra.mxu0 %v3771_v62 }
  0xd1   :  { %3506 = vmatpush3.bf16.msra.mxu1 %v3772_v63  ;;  %3485 = vmatprep.subr.bf16.mxu0 %v3773_v0  ;;  %v3812_v63 = vld [vmem:[%s4714_s1 + $0x7a8] sm:$0xff]  }
  0xd2   :  { %3507 = vmatprep.subr.bf16.mxu1 %v3774_v1  ;;  %v3813_v1 = vld [vmem:[%s4714_s1 + $0x770] sm:$0xff]  }
  0xd4   :  { %3486 = vmatpush3.bf16.msra.mxu0 %v3775_v2  ;;  %v3814_v2 = vld [vmem:[%s4714_s1 + $0x7f0] sm:$0xff]  }
  0xd5   :  { %3508 = vmatpush3.bf16.msra.mxu1 %v3776_v3  ;;  %3487 = vmatprep.subr.bf16.mxu0 %v3777_v4  ;;  %v3815_v3 = vld [vmem:[%s4714_s1 + $0x730] sm:$0xff]  }
  0xd6   :  { %3509 = vmatprep.subr.bf16.mxu1 %v3778_v5  ;;  %v3816_v4 = vld [vmem:[%s4714_s1 + $0x7b0] sm:$0xff]   ;;  %v3817_v5 = vld [vmem:[%s4714_s1 + $0x778] sm:$0xff]  }
  0xd8   :  { %3488 = vmatpush3.bf16.msra.mxu0 %v3779_v6  ;;  %v3818_v6 = vld [vmem:[%s4714_s1 + $0x7f8] sm:$0xff]  }
  0xd9   :  { %3510 = vmatpush3.bf16.msra.mxu1 %v3780_v7  ;;  %3489 = vmatprep.subr.bf16.mxu0 %v3781_v8  ;;  %v3819_v7 = vld [vmem:[%s4714_s1 + $0x738] sm:$0xff]  }
  0xda   :  { %3511 = vmatprep.subr.bf16.mxu1 %v3782_v9  ;;  %v3820_v8 = vld [vmem:[%s4714_s1 + $0x7b8] sm:$0xff]   ;;  %v29_v9 = vld [vmem:[%s4715_s0 + $0x70] sm:$0xff] }
  0xdc   :  { %3490 = vmatpush3.bf16.msra.mxu0 %v3783_v10  ;;  %v45_v10 = vld [vmem:[%s4715_s0 + $0xf0] sm:$0xff] }
  0xdd   :  { %3512 = vmatpush3.bf16.msra.mxu1 %v3784_v11  ;;  %3491 = vmatprep.subr.bf16.mxu0 %v3785_v12  ;;  %v30_v11 = vld [vmem:[%s4715_s0 + $0x78] sm:$0xff] }
  0xde   :  { %3513 = vmatprep.subr.bf16.mxu1 %v3786_v13  ;;  %v46_v12 = vld [vmem:[%s4715_s0 + $0xf8] sm:$0xff]  ;;  %v2953_v13 = vcombine.low %v29_v9, %v45_v10 }
  0xdf   :  { %v2956_v16 = vcombine.high %v30_v11, %v46_v12 }
  0xe0   :  { %3492 = vmatpush3.bf16.msra.mxu0 %v3787_v14  ;;  %v2954_v14 = vcombine.high %v29_v9, %v45_v10 }
  0xe1   :  { %3514 = vmatpush3.bf16.msra.mxu1 %v3788_v15  ;;  %3521 = vmatprep.subr.bf16.mxu0 %v3789_v24  ;;  %v2955_v15 = vcombine.low %v30_v11, %v46_v12 }
  0xe2   :  { %3543 = vmatprep.subr.bf16.mxu1 %v3790_v25 }
  0xe3   :  { %2787 = vmatmul.mubr.bf16.vlgmr.msra.gmra.mrb[24].mxu0 %v2949_v19 }
  0xe4   :  { %2828 = vmatmul.mubr.bf16.vlgmr.msra.gmra.mrb[24].mxu1 %v2951_v22  ;;  %3522 = vmatpush3.bf16.msra.mxu0 %v3791_v26 }
  0xe5   :  { %3544 = vmatpush3.bf16.msra.mxu1 %v3792_v27  ;;  %3523 = vmatprep.subr.bf16.mxu0 %v3793_v28 }
  0xe6   :  { %3545 = vmatprep.subr.bf16.mxu1 %v3794_v29  ;;  %2868 = vmatprep.mubr.bf16.mxu0 %v2954_v14 }
  0xe7   :  { %2909 = vmatprep.mubr.bf16.mxu1 %v2956_v16 }
  0xe8   :  { %3524 = vmatpush3.bf16.msra.mxu0 %v3795_v30 }
  0xe9   :  { %3546 = vmatpush3.bf16.msra.mxu1 %v3796_v31  ;;  %3525 = vmatprep.subr.bf16.mxu0 %v3797_v32 }
  0xea   :  { %3547 = vmatprep.subr.bf16.mxu1 %v3798_v33 }
  0xec   :  { %3526 = vmatpush3.bf16.msra.mxu0 %v3799_v34 }
  0xed   :  { %3548 = vmatpush3.bf16.msra.mxu1 %v3800_v35  ;;  %3527 = vmatprep.subr.bf16.mxu0 %v3801_v36 }
  0xee   :  { %3549 = vmatprep.subr.bf16.mxu1 %v3802_v37 }
  0xf0   :  { %3528 = vmatpush3.bf16.msra.mxu0 %v3803_v39 }
  0xf1   :  { %3550 = vmatpush3.bf16.msra.mxu1 %v3804_v41  ;;  %3529 = vmatprep.subr.bf16.mxu0 %v3805_v43 }
  0xf2   :  { %3551 = vmatprep.subr.bf16.mxu1 %v3806_v46 }
  0xf4   :  { %3530 = vmatpush3.bf16.msra.mxu0 %v3807_v49 }
  0xf5   :  { %3552 = vmatpush3.bf16.msra.mxu1 %v3808_v51  ;;  %3531 = vmatprep.subr.bf16.mxu0 %v3809_v55 }
  0xf6   :  { %v3229_v38 = vpop.f32.mrb[0].mxu0  ;;  %3553 = vmatprep.subr.bf16.mxu1 %v3810_v58 }
  0xf7   :  { %v3251_v40 = vpop.f32.mrb[0].mxu1  ;;  %v3230_v42 = vpop.f32.mrb[1].mxu0 }
  0xf8   :  { %v3231_v44 = vadd.f32 %v3230_v42, %v3229_v38  ;;  %v3252_v45 = vpop.f32.mrb[1].mxu1  ;;  %v3232_v48 = vpop.f32.mrb[2].mxu0  ;;  %3532 = vmatpush3.bf16.msra.mxu0 %v3811_v61 }
  0xf9   :  { %v3253_v47 = vadd.f32 %v3252_v45, %v3251_v40  ;;  %v3254_v50 = vpop.f32.mrb[2].mxu1  ;;  %v3233_v53 = vpop.f32.mrb[3].mxu0  ;;  %3554 = vmatpush3.bf16.msra.mxu1 %v3812_v63  ;;  %3533 = vmatprep.subr.bf16.mxu0 %v3813_v1 }
  0xfa   :  { %v2297_v54 = vadd.f32 %v3231_v44, %v2924_v52  ;;  %v3234_v56 = vadd.f32 %v3233_v53, %v3232_v48  ;;  %v3255_v57 = vpop.f32.mrb[3].mxu1  ;;  %3555 = vmatprep.subr.bf16.mxu1 %v3814_v2 }
  0xfb   :  { %v3256_v59 = vadd.f32 %v3255_v57, %v3254_v50 }
  0xfc   :  { %v2338_v60 = vadd.f32 %v3253_v47, %v2297_v54  ;;  %v2300_v62 = vadd.f32 %v3234_v56, %v2924_v52  ;;  %3534 = vmatpush3.bf16.msra.mxu0 %v3815_v3 }
  0xfd   :  { %3556 = vmatpush3.bf16.msra.mxu1 %v3816_v4  ;;  %3535 = vmatprep.subr.bf16.mxu0 %v3817_v5 }
  0xfe   :  { %v2341_v0 = vadd.f32 %v3256_v59, %v2300_v62  ;;  %3557 = vmatprep.subr.bf16.mxu1 %v3818_v6 }
 0x100   :  { %3536 = vmatpush3.bf16.msra.mxu0 %v3819_v7 }
 0x101   :  { %3558 = vmatpush3.bf16.msra.mxu1 %v3820_v8 }
 0x103   :  { %2869 = vmatmul.mubr.bf16.vlgmr.msra.gmra.mrb[28].mxu0 %v2953_v13 }
 0x104   :  { %2910 = vmatmul.mubr.bf16.vlgmr.msra.gmra.mrb[28].mxu1 %v2955_v15 }
 0x116   :  { %v3273_v17 = vpop.f32.mrb[4].mxu0 }
 0x117   :  { %v3295_v18 = vpop.f32.mrb[4].mxu1  ;;  %v3274_v19 = vpop.f32.mrb[5].mxu0 }
 0x118   :  { %v3275_v20 = vadd.f32 %v3274_v19, %v3273_v17  ;;  %v3296_v21 = vpop.f32.mrb[5].mxu1  ;;  %v3276_v22 = vpop.f32.mrb[6].mxu0 }
 0x119   :  { %v3297_v23 = vadd.f32 %v3296_v21, %v3295_v18  ;;  %v3298_v24 = vpop.f32.mrb[6].mxu1  ;;  %v3277_v25 = vpop.f32.mrb[7].mxu0 }
 0x11a   :  { %v2379_v26 = vadd.f32 %v3275_v20, %v2338_v60  ;;  %v3278_v27 = vadd.f32 %v3277_v25, %v3276_v22  ;;  %v3299_v28 = vpop.f32.mrb[7].mxu1 }
 0x11b   :  { %v3300_v29 = vadd.f32 %v3299_v28, %v3298_v24 }
 0x11c   :  { %v2420_v30 = vadd.f32 %v3297_v23, %v2379_v26  ;;  %v2382_v31 = vadd.f32 %v3278_v27, %v2341_v0 }
 0x11e   :  { %v2423_v32 = vadd.f32 %v3300_v29, %v2382_v31 }
 0x136   :  { %v3317_v33 = vpop.f32.mrb[8].mxu0 }
 0x137   :  { %v3339_v34 = vpop.f32.mrb[8].mxu1  ;;  %v3318_v35 = vpop.f32.mrb[9].mxu0 }
 0x138   :  { %v3340_v36 = vpop.f32.mrb[9].mxu1  ;;  %v3319_v37 = vadd.f32 %v3318_v35, %v3317_v33  ;;  %v3320_v39 = vpop.f32.mrb[10].mxu0 }
 0x139   :  { %v3341_v38 = vadd.f32 %v3340_v36, %v3339_v34  ;;  %v3342_v40 = vpop.f32.mrb[10].mxu1  ;;  %v3321_v41 = vpop.f32.mrb[11].mxu0 }
 0x13a   :  { %v3343_v42 = vpop.f32.mrb[11].mxu1  ;;  %v2461_v43 = vadd.f32 %v3319_v37, %v2420_v30  ;;  %v3322_v44 = vadd.f32 %v3321_v41, %v3320_v39 }
 0x13b   :  { %v3344_v45 = vadd.f32 %v3343_v42, %v3342_v40 }
 0x13c   :  { %v2502_v46 = vadd.f32 %v3341_v38, %v2461_v43  ;;  %v2464_v47 = vadd.f32 %v3322_v44, %v2423_v32 }
 0x13e   :  { %v2505_v48 = vadd.f32 %v3344_v45, %v2464_v47 }
 0x156   :  { %v3361_v49 = vpop.f32.mrb[12].mxu0 }
 0x157   :  { %v3383_v50 = vpop.f32.mrb[12].mxu1  ;;  %v3362_v51 = vpop.f32.mrb[13].mxu0 }
 0x158   :  { %v3363_v52 = vadd.f32 %v3362_v51, %v3361_v49  ;;  %v3384_v53 = vpop.f32.mrb[13].mxu1  ;;  %v3364_v54 = vpop.f32.mrb[14].mxu0 }
 0x159   :  { %v3385_v55 = vadd.f32 %v3384_v53, %v3383_v50  ;;  %v3386_v56 = vpop.f32.mrb[14].mxu1  ;;  %v3365_v57 = vpop.f32.mrb[15].mxu0 }
 0x15a   :  { %v2543_v58 = vadd.f32 %v3363_v52, %v2502_v46  ;;  %v3366_v59 = vadd.f32 %v3365_v57, %v3364_v54  ;;  %v3387_v60 = vpop.f32.mrb[15].mxu1 }
 0x15b   :  { %v3388_v61 = vadd.f32 %v3387_v60, %v3386_v56 }
 0x15c   :  { %v2584_v62 = vadd.f32 %v3385_v55, %v2543_v58  ;;  %v2546_v63 = vadd.f32 %v3366_v59, %v2505_v48 }
 0x15e   :  { %v2587_v0 = vadd.f32 %v3388_v61, %v2546_v63 }
 0x176   :  { %v3405_v1 = vpop.f32.mrb[16].mxu0 }
 0x177   :  { %v3427_v2 = vpop.f32.mrb[16].mxu1  ;;  %v3406_v3 = vpop.f32.mrb[17].mxu0 }
 0x178   :  { %v3407_v4 = vadd.f32 %v3406_v3, %v3405_v1  ;;  %v3428_v5 = vpop.f32.mrb[17].mxu1  ;;  %v3408_v6 = vpop.f32.mrb[18].mxu0 }
 0x179   :  { %v3429_v7 = vadd.f32 %v3428_v5, %v3427_v2  ;;  %v3430_v8 = vpop.f32.mrb[18].mxu1  ;;  %v3409_v9 = vpop.f32.mrb[19].mxu0 }
 0x17a   :  { %v2625_v10 = vadd.f32 %v3407_v4, %v2584_v62  ;;  %v3410_v11 = vadd.f32 %v3409_v9, %v3408_v6  ;;  %v3431_v12 = vpop.f32.mrb[19].mxu1 }
 0x17b   :  { %v3432_v13 = vadd.f32 %v3431_v12, %v3430_v8 }
 0x17c   :  { %v2666_v14 = vadd.f32 %v3429_v7, %v2625_v10  ;;  %v2628_v15 = vadd.f32 %v3410_v11, %v2587_v0 }
 0x17e   :  { %v2669_v16 = vadd.f32 %v3432_v13, %v2628_v15 }
 0x196   :  { %v3449_v17 = vpop.f32.mrb[20].mxu0 }
 0x197   :  { %v3471_v18 = vpop.f32.mrb[20].mxu1  ;;  %v3450_v19 = vpop.f32.mrb[21].mxu0 }
 0x198   :  { %v3472_v20 = vpop.f32.mrb[21].mxu1  ;;  %v3451_v21 = vadd.f32 %v3450_v19, %v3449_v17  ;;  %v3452_v23 = vpop.f32.mrb[22].mxu0 }
 0x199   :  { %v3473_v22 = vadd.f32 %v3472_v20, %v3471_v18  ;;  %v3474_v24 = vpop.f32.mrb[22].mxu1  ;;  %v3453_v25 = vpop.f32.mrb[23].mxu0 }
 0x19a   :  { %v3475_v26 = vpop.f32.mrb[23].mxu1  ;;  %v2707_v27 = vadd.f32 %v3451_v21, %v2666_v14  ;;  %v3454_v28 = vadd.f32 %v3453_v25, %v3452_v23 }
 0x19b   :  { %v3476_v29 = vadd.f32 %v3475_v26, %v3474_v24 }
 0x19c   :  { %v2748_v30 = vadd.f32 %v3473_v22, %v2707_v27  ;;  %v2710_v31 = vadd.f32 %v3454_v28, %v2669_v16 }
 0x19e   :  { %v2751_v32 = vadd.f32 %v3476_v29, %v2710_v31 }
 0x1b6   :  { %v3493_v33 = vpop.f32.mrb[24].mxu0 }
 0x1b7   :  { %v3515_v34 = vpop.f32.mrb[24].mxu1  ;;  %v3494_v35 = vpop.f32.mrb[25].mxu0 }
 0x1b8   :  { %v3495_v36 = vadd.f32 %v3494_v35, %v3493_v33  ;;  %v3516_v37 = vpop.f32.mrb[25].mxu1  ;;  %v3496_v38 = vpop.f32.mrb[26].mxu0 }
 0x1b9   :  { %v3517_v39 = vadd.f32 %v3516_v37, %v3515_v34  ;;  %v3518_v40 = vpop.f32.mrb[26].mxu1  ;;  %v3497_v41 = vpop.f32.mrb[27].mxu0 }
 0x1ba   :  { %v2789_v42 = vadd.f32 %v3495_v36, %v2748_v30  ;;  %v3498_v43 = vadd.f32 %v3497_v41, %v3496_v38  ;;  %v3519_v44 = vpop.f32.mrb[27].mxu1 }
 0x1bb   :  { %v3520_v45 = vadd.f32 %v3519_v44, %v3518_v40 }
 0x1bc   :  { %v2830_v46 = vadd.f32 %v3517_v39, %v2789_v42  ;;  %v2792_v47 = vadd.f32 %v3498_v43, %v2751_v32 }
 0x1be   :  { %v2833_v48 = vadd.f32 %v3520_v45, %v2792_v47 }
 0x1d6   :  { %v3537_v49 = vpop.f32.mrb[28].mxu0 }
 0x1d7   :  { %v3559_v50 = vpop.f32.mrb[28].mxu1  ;;  %v3538_v51 = vpop.f32.mrb[29].mxu0 }
 0x1d8   :  { %v3560_v52 = vpop.f32.mrb[29].mxu1  ;;  %v3539_v53 = vadd.f32 %v3538_v51, %v3537_v49  ;;  %v3540_v55 = vpop.f32.mrb[30].mxu0 }
 0x1d9   :  { %v3561_v54 = vadd.f32 %v3560_v52, %v3559_v50  ;;  %v3562_v56 = vpop.f32.mrb[30].mxu1  ;;  %v3541_v57 = vpop.f32.mrb[31].mxu0 }
 0x1da   :  { %v3563_v58 = vpop.f32.mrb[31].mxu1  ;;  %v2871_v59 = vadd.f32 %v3539_v53, %v2830_v46  ;;  %v3542_v60 = vadd.f32 %v3541_v57, %v3540_v55 }
 0x1db   :  { %v3564_v61 = vadd.f32 %v3563_v58, %v3562_v56 }
 0x1dc   :  { %v2912_v62 = vadd.f32 %v3561_v54, %v2871_v59  ;;  %v2874_v63 = vadd.f32 %v3542_v60, %v2833_v48 }
 0x1de   :  { %2918 = vst [vmem:[%s4717_s3] sm:$0xff] %v2912_v62  ;;  %v2915_v0 = vadd.f32 %v3564_v61, %v2874_v63 }
 0x1e0   :  { %2919 = vst [vmem:[%s4717_s3 + $0x8] sm:$0xff] %v2915_v0 }

</bundles_post_ra>
